<compile_context>
chip_gen: v7x
topology: tpu7x:2x2x1
jax: 0.10.0
libtpu: 0.0.40
codegen_flags: <defaults>
</compile_context>

<pallas_src>
import functools
import math

import jax
import jax.numpy as jnp
from jax.experimental import pallas as pl
from jax.experimental.pallas import tpu as pltpu


def _round_up(x: int, m: int) -> int:
    return ((x + m - 1) // m) * m


# --------------------------------------------------------------------------
# 1) Projection kernel: Qp = (Q @ Wq) * 1/sqrt(d), Kp = K @ Wq, Vp = V @ Wv
#    (head-major, lane-padded outputs).  Runs once per (batch, seq tile).
# --------------------------------------------------------------------------
def _proj_kernel(q_ref, k_ref, v_ref, wq_ref, wv_ref,
                 qo_ref, ko_ref, vo_ref, *, n_heads, scale):
    # q/k/v_ref : (1, tp, Hp) bf16   wq/wv_ref : (n_heads, Hp, dp) bf16
    # qo/ko/vo  : (1, n_heads, tp, dp) bf16
    for h in range(n_heads):
        qo_ref[0, h] = (jnp.dot(q_ref[0], wq_ref[h],
                                preferred_element_type=jnp.float32)
                        * scale).astype(qo_ref.dtype)
        # K is projected with the *query* weights, matching self.query(K).
        ko_ref[0, h] = jnp.dot(k_ref[0], wq_ref[h],
                               preferred_element_type=jnp.float32
                               ).astype(ko_ref.dtype)
        vo_ref[0, h] = jnp.dot(v_ref[0], wv_ref[h],
                               preferred_element_type=jnp.float32
                               ).astype(vo_ref.dtype)


# --------------------------------------------------------------------------
# 2) Flash-attention kernel with fused output Linear (+bias).
# --------------------------------------------------------------------------
def _flash_kernel(qp_ref, kp_ref, vp_ref, wo_ref, b_ref, o_ref,
                  acc_ref, m_ref, l_ref, *, n_heads):
    ki = pl.program_id(2)
    nk = pl.num_programs(2)

    @pl.when(ki == 0)
    def _init():
        m_ref[...] = jnp.full_like(m_ref, -jnp.inf)
        l_ref[...] = jnp.zeros_like(l_ref)
        acc_ref[...] = jnp.zeros_like(acc_ref)

    # Heads-batched score matmul: (h, tq, d) x (h, tk, d) -> (h, tq, tk).
    s = jnp.einsum("hqd,hkd->hqk", qp_ref[0], kp_ref[0],
                   preferred_element_type=jnp.float32)

    # TODO(synk): optional attention mask (masked_fill(mask == 0, -inf) before
    # the row max) is not wired in; the wrapper only supports mask=None.

    m_prev = m_ref[...]
    m_new = jnp.maximum(m_prev, jnp.max(s, axis=-1, keepdims=True))
    alpha = jnp.exp(m_prev - m_new)
    p = jnp.exp(s - m_new)
    l_ref[...] = alpha * l_ref[...] + jnp.sum(p, axis=-1, keepdims=True)
    acc_ref[...] = alpha * acc_ref[...] + jnp.einsum(
        "hqk,hkd->hqd", p.astype(jnp.bfloat16), vp_ref[0],
        preferred_element_type=jnp.float32)
    m_ref[...] = m_new

    @pl.when(ki == nk - 1)
    def _finalize():
        # Exact per-row normalization (once per q tile), then the fused output
        # Linear: out = sum_h (head_h @ Wo_h) + bias, stored lane-dense.
        out = b_ref[...] + jnp.dot(
            (acc_ref[0] / l_ref[0]).astype(jnp.bfloat16), wo_ref[0],
            preferred_element_type=jnp.float32)
        for h in range(1, n_heads):
            out = out + jnp.dot(
                (acc_ref[h] / l_ref[h]).astype(jnp.bfloat16), wo_ref[h],
                preferred_element_type=jnp.float32)
        o_ref[0] = out.astype(o_ref.dtype)


# --------------------------------------------------------------------------
# Wrapper
# --------------------------------------------------------------------------
def multi_head_attention(Q, K, V, Wq_heads, Wv_heads, W_lin, b_lin, *,
                         q_tile=128, kv_tile=256, proj_tile=256,
                         single_buffer_weights=True):
    """Pallas MHA matching the PyTorch MultiHeadAttention forward (mask=None).

    Q, K, V      : (B, S, H)
    Wq_heads     : (n_heads, H, d)  per-head query weights, (in, out) layout
    Wv_heads     : (n_heads, H, d)  per-head value weights, (in, out) layout
    W_lin, b_lin : output nn.Linear weight (H, H) [out, in] and bias (H,)
    """
    B, S, H = Q.shape
    n_heads, _, d = Wq_heads.shape
    assert n_heads * d == H, "head_dim * n_heads != hidden_size"

    Hp = _round_up(H, 128)        # lane-padded hidden dim
    dp = _round_up(d, 128)        # lane-padded per-head dim
    hpad, dpad = Hp - H, dp - d

    # ---- wrapper-side layout plumbing (lane-dense, bf16 MXU inputs) --------
    def pad_h(x):
        return jnp.pad(x, ((0, 0), (0, 0), (0, hpad))) if hpad else x

    Qb = pad_h(Q).astype(jnp.bfloat16)
    Kb = pad_h(K).astype(jnp.bfloat16)
    Vb = pad_h(V).astype(jnp.bfloat16)

    Wq_hm = jnp.pad(Wq_heads, ((0, 0), (0, hpad), (0, dpad))).astype(jnp.bfloat16)
    Wv_hm = jnp.pad(Wv_heads, ((0, 0), (0, hpad), (0, dpad))).astype(jnp.bfloat16)
    # Output Linear applied as concat @ W_lin.T + b; split head-major row blocks.
    Wo_hm = jnp.pad(W_lin.T.reshape(n_heads, d, H),
                    ((0, 0), (0, dpad), (0, hpad))).astype(jnp.bfloat16)
    bias = jnp.pad(b_lin.reshape(1, H), ((0, 0), (0, hpad))).astype(jnp.float32)

    tp = min(proj_tile, S)
    tq = min(q_tile, S)
    tk = min(kv_tile, S)
    assert S % tp == 0 and S % tq == 0 and S % tk == 0, \
        "S must divide the projection / q / kv tile sizes"

    def weight_spec(shape, index_map):
        # Grid-invariant weights: single-buffer to halve resident VMEM (v7x).
        if single_buffer_weights:
            return pl.BlockSpec(shape, index_map, pipeline_mode=pl.Buffered(1))
        return pl.BlockSpec(shape, index_map)

    scale = 1.0 / math.sqrt(d)
    vmem_cap = 48 * 1024 * 1024   # <= v7x physical (64 MiB) with headroom

    # ---- 1) projections (hoisted: once per (b, seq tile), never per q tile) --
    proj = pl.pallas_call(
        functools.partial(_proj_kernel, n_heads=n_heads, scale=scale),
        out_shape=(jax.ShapeDtypeStruct((B, n_heads, S, dp), jnp.bfloat16),
                   jax.ShapeDtypeStruct((B, n_heads, S, dp), jnp.bfloat16),
                   jax.ShapeDtypeStruct((B, n_heads, S, dp), jnp.bfloat16)),
        grid_spec=pltpu.PrefetchScalarGridSpec(
            num_scalar_prefetch=0,
            grid=(B, S // tp),
            in_specs=[
                pl.BlockSpec((1, tp, Hp), lambda b, si: (b, si, 0)),   # Q
                pl.BlockSpec((1, tp, Hp), lambda b, si: (b, si, 0)),   # K
                pl.BlockSpec((1, tp, Hp), lambda b, si: (b, si, 0)),   # V
                weight_spec((n_heads, Hp, dp), lambda b, si: (0, 0, 0)),  # Wq
                weight_spec((n_heads, Hp, dp), lambda b, si: (0, 0, 0)),  # Wv
            ],
            out_specs=(
                pl.BlockSpec((1, n_heads, tp, dp), lambda b, si: (b, 0, si, 0)),
                pl.BlockSpec((1, n_heads, tp, dp), lambda b, si: (b, 0, si, 0)),
                pl.BlockSpec((1, n_heads, tp, dp), lambda b, si: (b, 0, si, 0)),
            ),
        ),
        compiler_params=pltpu.CompilerParams(
            dimension_semantics=("parallel", "parallel"),
            vmem_limit_bytes=vmem_cap,
        ),
    )
    Qp, Kp, Vp = proj(Qb, Kb, Vb, Wq_hm, Wv_hm)

    # ---- 2) flash attention + fused output Linear ---------------------------
    flash = pl.pallas_call(
        functools.partial(_flash_kernel, n_heads=n_heads),
        out_shape=jax.ShapeDtypeStruct((B, S, Hp), jnp.float32),
        grid_spec=pltpu.PrefetchScalarGridSpec(
            num_scalar_prefetch=0,
            grid=(B, S // tq, S // tk),
            in_specs=[
                pl.BlockSpec((1, n_heads, tq, dp),
                             lambda b, qi, ki: (b, 0, qi, 0)),          # Qp
                pl.BlockSpec((1, n_heads, tk, dp),
                             lambda b, qi, ki: (b, 0, ki, 0)),          # Kp
                pl.BlockSpec((1, n_heads, tk, dp),
                             lambda b, qi, ki: (b, 0, ki, 0)),          # Vp
                weight_spec((n_heads, dp, Hp), lambda b, qi, ki: (0, 0, 0)),  # Wo
                weight_spec((1, Hp), lambda b, qi, ki: (0, 0)),               # bias
            ],
            out_specs=pl.BlockSpec((1, tq, Hp), lambda b, qi, ki: (b, qi, 0)),
            scratch_shapes=[
                pltpu.VMEM((n_heads, tq, dp), jnp.float32),   # flash accumulator
                pltpu.VMEM((n_heads, tq, 1), jnp.float32),    # running max m
                pltpu.VMEM((n_heads, tq, 1), jnp.float32),    # running denom l
            ],
        ),
        compiler_params=pltpu.CompilerParams(
            dimension_semantics=("parallel", "parallel", "arbitrary"),
            vmem_limit_bytes=vmem_cap,
        ),
    )
    out = flash(Qp, Kp, Vp, Wo_hm, bias)
    return out[..., :H] if hpad else out


def reference_mha(Q, K, V, Wq_heads, Wv_heads, W_lin, b_lin):
    """Plain-JAX f32 reference mirroring the PyTorch module (mask=None)."""
    n_heads, H, d = Wq_heads.shape
    outs = []
    for h in range(n_heads):
        q = Q @ Wq_heads[h]
        k = K @ Wq_heads[h]          # PyTorch module applies self.query(K)
        v = V @ Wv_heads[h]
        scores = jnp.einsum("bqd,bkd->bqk", q, k) / math.sqrt(d)
        w = jax.nn.softmax(scores, axis=-1)
        outs.append(jnp.einsum("bqk,bkd->bqd", w, v))
    concat = jnp.concatenate(outs, axis=-1)
    return concat @ W_lin.T + b_lin


if __name__ == "__main__":
    B, S, H, n_heads = 2, 8, 32, 4
    d = H // n_heads

    key = jax.random.PRNGKey(0)
    ks = jax.random.split(key, 8)

    # Inputs.
    Q = jax.random.normal(ks[0], (B, S, H), jnp.float32)
    K = jax.random.normal(ks[1], (B, S, H), jnp.float32)
    V = jax.random.normal(ks[2], (B, S, H), jnp.float32)

    # Parameters (deterministic synthetic init, PyTorch-Linear-like scale).
    bound = 1.0 / math.sqrt(H)
    Wq = jax.random.uniform(ks[3], (n_heads, H, d), jnp.float32, -bound, bound)
    Wk = jax.random.uniform(ks[4], (n_heads, H, d), jnp.float32, -bound, bound)  # mirrors self.key: never used in forward
    Wv = jax.random.uniform(ks[5], (n_heads, H, d), jnp.float32, -bound, bound)
    W_lin = jax.random.uniform(ks[6], (H, H), jnp.float32, -bound, bound)        # (out, in)
    b_lin = jax.random.uniform(ks[7], (H,), jnp.float32, -bound, bound)

    mha = jax.jit(multi_head_attention, static_argnames=("single_buffer_weights",))
    try:
        out = jax.block_until_ready(
            mha(Q, K, V, Wq, Wv, W_lin, b_lin, single_buffer_weights=True))
    except Exception:
        # Fallback if this JAX/libtpu build rejects pl.Buffered(1) weight specs.
        out = jax.block_until_ready(
            mha(Q, K, V, Wq, Wv, W_lin, b_lin, single_buffer_weights=False))

    ref = reference_mha(Q, K, V, Wq, Wv, W_lin, b_lin)
    assert out.shape == ref.shape
    # bf16 MXU inputs with f32 accumulation -> modest tolerance vs f32 reference.
    assert jnp.allclose(out, ref, atol=3e-2, rtol=3e-2), "mismatch vs reference"

    print("KERNEL_OK")
</pallas_src>

<mosaic_0001>
module attributes {stable_mosaic.version = 11 : i64} {
  func.func @_proj_kernel(%arg0: i32, %arg1: i32, %arg2: memref<1x8x128xbf16, #tpu.memory_space<vmem>>, %arg3: memref<1x8x128xbf16, #tpu.memory_space<vmem>>, %arg4: memref<1x8x128xbf16, #tpu.memory_space<vmem>>, %arg5: memref<4x128x128xbf16, #tpu.memory_space<vmem>>, %arg6: memref<4x128x128xbf16, #tpu.memory_space<vmem>>, %arg7: memref<1x4x8x128xbf16, #tpu.memory_space<vmem>>, %arg8: memref<1x4x8x128xbf16, #tpu.memory_space<vmem>>, %arg9: memref<1x4x8x128xbf16, #tpu.memory_space<vmem>>) attributes {dimension_semantics = [#tpu.dimension_semantics<parallel>, #tpu.dimension_semantics<parallel>], iteration_bounds = array<i64: 2, 1>, scalar_prefetch = 0 : i64, scratch_operands = 0 : i64, tpu.core_type = #tpu.core_type<tc>, window_params = [{transform_indices = @transform_0, window_bounds = array<i64: 1, 8, 128>}, {transform_indices = @transform_1, window_bounds = array<i64: 1, 8, 128>}, {transform_indices = @transform_2, window_bounds = array<i64: 1, 8, 128>}, {pipeline_mode = #tpu.pipeline_mode<synchronous>, transform_indices = @transform_3, window_bounds = array<i64: 4, 128, 128>}, {pipeline_mode = #tpu.pipeline_mode<synchronous>, transform_indices = @transform_4, window_bounds = array<i64: 4, 128, 128>}, {transform_indices = @transform_5, window_bounds = array<i64: 1, 4, 8, 128>}, {transform_indices = @transform_6, window_bounds = array<i64: 1, 4, 8, 128>}, {transform_indices = @transform_7, window_bounds = array<i64: 1, 4, 8, 128>}]} {
    %c0 = arith.constant 0 : index
    %c0_0 = arith.constant 0 : index
    %c0_1 = arith.constant 0 : index
    %0 = vector.load %arg2[%c0, %c0_0, %c0_1] : memref<1x8x128xbf16, #tpu.memory_space<vmem>>, vector<1x8x128xbf16>
    %1 = vector.shape_cast %0 : vector<1x8x128xbf16> to vector<8x128xbf16>
    %c0_2 = arith.constant 0 : index
    %c0_3 = arith.constant 0 : index
    %c0_4 = arith.constant 0 : index
    %2 = vector.load %arg5[%c0_2, %c0_3, %c0_4] : memref<4x128x128xbf16, #tpu.memory_space<vmem>>, vector<1x128x128xbf16>
    %3 = vector.shape_cast %2 : vector<1x128x128xbf16> to vector<128x128xbf16>
    %cst = arith.constant dense<0.000000e+00> : vector<8x128xf32>
    %4 = tpu.matmul %1, %3, %cst {dimension_numbers = #tpu.dot_dimension_numbers<[1], [0], [0], [1], [0, 0, 1, 1], [], []>} : vector<8x128xbf16>, vector<128x128xbf16>, vector<8x128xf32> -> vector<8x128xf32>
    %cst_5 = arith.constant 0.353553385 : f32
    %5 = vector.broadcast %cst_5 : f32 to vector<8x128xf32>
    %6 = arith.mulf %4, %5 : vector<8x128xf32>
    %7 = arith.truncf %6 : vector<8x128xf32> to vector<8x128xbf16>
    %c0_6 = arith.constant 0 : index
    %c0_7 = arith.constant 0 : index
    %c0_8 = arith.constant 0 : index
    %c0_9 = arith.constant 0 : index
    %8 = vector.load %arg7[%c0_6, %c0_7, %c0_8, %c0_9] : memref<1x4x8x128xbf16, #tpu.memory_space<vmem>>, vector<1x1x8x128xbf16>
    %9 = vector.shape_cast %8 : vector<1x1x8x128xbf16> to vector<8x128xbf16>
    %10 = vector.shape_cast %7 : vector<8x128xbf16> to vector<1x1x8x128xbf16>
    tpu.vector_store %arg7[%c0_6, %c0_7, %c0_8, %c0_9], %10 {strides = array<i32>} : memref<1x4x8x128xbf16, #tpu.memory_space<vmem>>, vector<1x1x8x128xbf16>,
    %c0_10 = arith.constant 0 : index
    %c0_11 = arith.constant 0 : index
    %c0_12 = arith.constant 0 : index
    %11 = vector.load %arg3[%c0_10, %c0_11, %c0_12] : memref<1x8x128xbf16, #tpu.memory_space<vmem>>, vector<1x8x128xbf16>
    %12 = vector.shape_cast %11 : vector<1x8x128xbf16> to vector<8x128xbf16>
    %c0_13 = arith.constant 0 : index
    %c0_14 = arith.constant 0 : index
    %c0_15 = arith.constant 0 : index
    %13 = vector.load %arg5[%c0_13, %c0_14, %c0_15] : memref<4x128x128xbf16, #tpu.memory_space<vmem>>, vector<1x128x128xbf16>
    %14 = vector.shape_cast %13 : vector<1x128x128xbf16> to vector<128x128xbf16>
    %cst_16 = arith.constant dense<0.000000e+00> : vector<8x128xf32>
    %15 = tpu.matmul %12, %14, %cst_16 {dimension_numbers = #tpu.dot_dimension_numbers<[1], [0], [0], [1], [0, 0, 1, 1], [], []>} : vector<8x128xbf16>, vector<128x128xbf16>, vector<8x128xf32> -> vector<8x128xf32>
    %16 = arith.truncf %15 : vector<8x128xf32> to vector<8x128xbf16>
    %c0_17 = arith.constant 0 : index
    %c0_18 = arith.constant 0 : index
    %c0_19 = arith.constant 0 : index
    %c0_20 = arith.constant 0 : index
    %17 = vector.load %arg8[%c0_17, %c0_18, %c0_19, %c0_20] : memref<1x4x8x128xbf16, #tpu.memory_space<vmem>>, vector<1x1x8x128xbf16>
    %18 = vector.shape_cast %17 : vector<1x1x8x128xbf16> to vector<8x128xbf16>
    %19 = vector.shape_cast %16 : vector<8x128xbf16> to vector<1x1x8x128xbf16>
    tpu.vector_store %arg8[%c0_17, %c0_18, %c0_19, %c0_20], %19 {strides = array<i32>} : memref<1x4x8x128xbf16, #tpu.memory_space<vmem>>, vector<1x1x8x128xbf16>,
    %c0_21 = arith.constant 0 : index
    %c0_22 = arith.constant 0 : index
    %c0_23 = arith.constant 0 : index
    %20 = vector.load %arg4[%c0_21, %c0_22, %c0_23] : memref<1x8x128xbf16, #tpu.memory_space<vmem>>, vector<1x8x128xbf16>
    %21 = vector.shape_cast %20 : vector<1x8x128xbf16> to vector<8x128xbf16>
    %c0_24 = arith.constant 0 : index
    %c0_25 = arith.constant 0 : index
    %c0_26 = arith.constant 0 : index
    %22 = vector.load %arg6[%c0_24, %c0_25, %c0_26] : memref<4x128x128xbf16, #tpu.memory_space<vmem>>, vector<1x128x128xbf16>
    %23 = vector.shape_cast %22 : vector<1x128x128xbf16> to vector<128x128xbf16>
    %cst_27 = arith.constant dense<0.000000e+00> : vector<8x128xf32>
    %24 = tpu.matmul %21, %23, %cst_27 {dimension_numbers = #tpu.dot_dimension_numbers<[1], [0], [0], [1], [0, 0, 1, 1], [], []>} : vector<8x128xbf16>, vector<128x128xbf16>, vector<8x128xf32> -> vector<8x128xf32>
    %25 = arith.truncf %24 : vector<8x128xf32> to vector<8x128xbf16>
    %c0_28 = arith.constant 0 : index
    %c0_29 = arith.constant 0 : index
    %c0_30 = arith.constant 0 : index
    %c0_31 = arith.constant 0 : index
    %26 = vector.load %arg9[%c0_28, %c0_29, %c0_30, %c0_31] : memref<1x4x8x128xbf16, #tpu.memory_space<vmem>>, vector<1x1x8x128xbf16>
    %27 = vector.shape_cast %26 : vector<1x1x8x128xbf16> to vector<8x128xbf16>
    %28 = vector.shape_cast %25 : vector<8x128xbf16> to vector<1x1x8x128xbf16>
    tpu.vector_store %arg9[%c0_28, %c0_29, %c0_30, %c0_31], %28 {strides = array<i32>} : memref<1x4x8x128xbf16, #tpu.memory_space<vmem>>, vector<1x1x8x128xbf16>,
    %c0_32 = arith.constant 0 : index
    %c0_33 = arith.constant 0 : index
    %c0_34 = arith.constant 0 : index
    %29 = vector.load %arg2[%c0_32, %c0_33, %c0_34] : memref<1x8x128xbf16, #tpu.memory_space<vmem>>, vector<1x8x128xbf16>
    %30 = vector.shape_cast %29 : vector<1x8x128xbf16> to vector<8x128xbf16>
    %c1 = arith.constant 1 : index
    %c0_35 = arith.constant 0 : index
    %c0_36 = arith.constant 0 : index
    %31 = vector.load %arg5[%c1, %c0_35, %c0_36] : memref<4x128x128xbf16, #tpu.memory_space<vmem>>, vector<1x128x128xbf16>
    %32 = vector.shape_cast %31 : vector<1x128x128xbf16> to vector<128x128xbf16>
    %cst_37 = arith.constant dense<0.000000e+00> : vector<8x128xf32>
    %33 = tpu.matmul %30, %32, %cst_37 {dimension_numbers = #tpu.dot_dimension_numbers<[1], [0], [0], [1], [0, 0, 1, 1], [], []>} : vector<8x128xbf16>, vector<128x128xbf16>, vector<8x128xf32> -> vector<8x128xf32>
    %cst_38 = arith.constant 0.353553385 : f32
    %34 = vector.broadcast %cst_38 : f32 to vector<8x128xf32>
    %35 = arith.mulf %33, %34 : vector<8x128xf32>
    %36 = arith.truncf %35 : vector<8x128xf32> to vector<8x128xbf16>
    %c0_39 = arith.constant 0 : index
    %c1_40 = arith.constant 1 : index
    %c0_41 = arith.constant 0 : index
    %c0_42 = arith.constant 0 : index
    %37 = vector.load %arg7[%c0_39, %c1_40, %c0_41, %c0_42] : memref<1x4x8x128xbf16, #tpu.memory_space<vmem>>, vector<1x1x8x128xbf16>
    %38 = vector.shape_cast %37 : vector<1x1x8x128xbf16> to vector<8x128xbf16>
    %39 = vector.shape_cast %36 : vector<8x128xbf16> to vector<1x1x8x128xbf16>
    tpu.vector_store %arg7[%c0_39, %c1_40, %c0_41, %c0_42], %39 {strides = array<i32>} : memref<1x4x8x128xbf16, #tpu.memory_space<vmem>>, vector<1x1x8x128xbf16>,
    %c0_43 = arith.constant 0 : index
    %c0_44 = arith.constant 0 : index
    %c0_45 = arith.constant 0 : index
    %40 = vector.load %arg3[%c0_43, %c0_44, %c0_45] : memref<1x8x128xbf16, #tpu.memory_space<vmem>>, vector<1x8x128xbf16>
    %41 = vector.shape_cast %40 : vector<1x8x128xbf16> to vector<8x128xbf16>
    %c1_46 = arith.constant 1 : index
    %c0_47 = arith.constant 0 : index
    %c0_48 = arith.constant 0 : index
    %42 = vector.load %arg5[%c1_46, %c0_47, %c0_48] : memref<4x128x128xbf16, #tpu.memory_space<vmem>>, vector<1x128x128xbf16>
    %43 = vector.shape_cast %42 : vector<1x128x128xbf16> to vector<128x128xbf16>
    %cst_49 = arith.constant dense<0.000000e+00> : vector<8x128xf32>
    %44 = tpu.matmul %41, %43, %cst_49 {dimension_numbers = #tpu.dot_dimension_numbers<[1], [0], [0], [1], [0, 0, 1, 1], [], []>} : vector<8x128xbf16>, vector<128x128xbf16>, vector<8x128xf32> -> vector<8x128xf32>
    %45 = arith.truncf %44 : vector<8x128xf32> to vector<8x128xbf16>
    %c0_50 = arith.constant 0 : index
    %c1_51 = arith.constant 1 : index
    %c0_52 = arith.constant 0 : index
    %c0_53 = arith.constant 0 : index
    %46 = vector.load %arg8[%c0_50, %c1_51, %c0_52, %c0_53] : memref<1x4x8x128xbf16, #tpu.memory_space<vmem>>, vector<1x1x8x128xbf16>
    %47 = vector.shape_cast %46 : vector<1x1x8x128xbf16> to vector<8x128xbf16>
    %48 = vector.shape_cast %45 : vector<8x128xbf16> to vector<1x1x8x128xbf16>
    tpu.vector_store %arg8[%c0_50, %c1_51, %c0_52, %c0_53], %48 {strides = array<i32>} : memref<1x4x8x128xbf16, #tpu.memory_space<vmem>>, vector<1x1x8x128xbf16>,
    %c0_54 = arith.constant 0 : index
    %c0_55 = arith.constant 0 : index
    %c0_56 = arith.constant 0 : index
    %49 = vector.load %arg4[%c0_54, %c0_55, %c0_56] : memref<1x8x128xbf16, #tpu.memory_space<vmem>>, vector<1x8x128xbf16>
    %50 = vector.shape_cast %49 : vector<1x8x128xbf16> to vector<8x128xbf16>
    %c1_57 = arith.constant 1 : index
    %c0_58 = arith.constant 0 : index
    %c0_59 = arith.constant 0 : index
    %51 = vector.load %arg6[%c1_57, %c0_58, %c0_59] : memref<4x128x128xbf16, #tpu.memory_space<vmem>>, vector<1x128x128xbf16>
    %52 = vector.shape_cast %51 : vector<1x128x128xbf16> to vector<128x128xbf16>
    %cst_60 = arith.constant dense<0.000000e+00> : vector<8x128xf32>
    %53 = tpu.matmul %50, %52, %cst_60 {dimension_numbers = #tpu.dot_dimension_numbers<[1], [0], [0], [1], [0, 0, 1, 1], [], []>} : vector<8x128xbf16>, vector<128x128xbf16>, vector<8x128xf32> -> vector<8x128xf32>
    %54 = arith.truncf %53 : vector<8x128xf32> to vector<8x128xbf16>
    %c0_61 = arith.constant 0 : index
    %c1_62 = arith.constant 1 : index
    %c0_63 = arith.constant 0 : index
    %c0_64 = arith.constant 0 : index
    %55 = vector.load %arg9[%c0_61, %c1_62, %c0_63, %c0_64] : memref<1x4x8x128xbf16, #tpu.memory_space<vmem>>, vector<1x1x8x128xbf16>
    %56 = vector.shape_cast %55 : vector<1x1x8x128xbf16> to vector<8x128xbf16>
    %57 = vector.shape_cast %54 : vector<8x128xbf16> to vector<1x1x8x128xbf16>
    tpu.vector_store %arg9[%c0_61, %c1_62, %c0_63, %c0_64], %57 {strides = array<i32>} : memref<1x4x8x128xbf16, #tpu.memory_space<vmem>>, vector<1x1x8x128xbf16>,
    %c0_65 = arith.constant 0 : index
    %c0_66 = arith.constant 0 : index
    %c0_67 = arith.constant 0 : index
    %58 = vector.load %arg2[%c0_65, %c0_66, %c0_67] : memref<1x8x128xbf16, #tpu.memory_space<vmem>>, vector<1x8x128xbf16>
    %59 = vector.shape_cast %58 : vector<1x8x128xbf16> to vector<8x128xbf16>
    %c2 = arith.constant 2 : index
    %c0_68 = arith.constant 0 : index
    %c0_69 = arith.constant 0 : index
    %60 = vector.load %arg5[%c2, %c0_68, %c0_69] : memref<4x128x128xbf16, #tpu.memory_space<vmem>>, vector<1x128x128xbf16>
    %61 = vector.shape_cast %60 : vector<1x128x128xbf16> to vector<128x128xbf16>
    %cst_70 = arith.constant dense<0.000000e+00> : vector<8x128xf32>
    %62 = tpu.matmul %59, %61, %cst_70 {dimension_numbers = #tpu.dot_dimension_numbers<[1], [0], [0], [1], [0, 0, 1, 1], [], []>} : vector<8x128xbf16>, vector<128x128xbf16>, vector<8x128xf32> -> vector<8x128xf32>
    %cst_71 = arith.constant 0.353553385 : f32
    %63 = vector.broadcast %cst_71 : f32 to vector<8x128xf32>
    %64 = arith.mulf %62, %63 : vector<8x128xf32>
    %65 = arith.truncf %64 : vector<8x128xf32> to vector<8x128xbf16>
    %c0_72 = arith.constant 0 : index
    %c2_73 = arith.constant 2 : index
    %c0_74 = arith.constant 0 : index
    %c0_75 = arith.constant 0 : index
    %66 = vector.load %arg7[%c0_72, %c2_73, %c0_74, %c0_75] : memref<1x4x8x128xbf16, #tpu.memory_space<vmem>>, vector<1x1x8x128xbf16>
    %67 = vector.shape_cast %66 : vector<1x1x8x128xbf16> to vector<8x128xbf16>
    %68 = vector.shape_cast %65 : vector<8x128xbf16> to vector<1x1x8x128xbf16>
    tpu.vector_store %arg7[%c0_72, %c2_73, %c0_74, %c0_75], %68 {strides = array<i32>} : memref<1x4x8x128xbf16, #tpu.memory_space<vmem>>, vector<1x1x8x128xbf16>,
    %c0_76 = arith.constant 0 : index
    %c0_77 = arith.constant 0 : index
    %c0_78 = arith.constant 0 : index
    %69 = vector.load %arg3[%c0_76, %c0_77, %c0_78] : memref<1x8x128xbf16, #tpu.memory_space<vmem>>, vector<1x8x128xbf16>
    %70 = vector.shape_cast %69 : vector<1x8x128xbf16> to vector<8x128xbf16>
    %c2_79 = arith.constant 2 : index
    %c0_80 = arith.constant 0 : index
    %c0_81 = arith.constant 0 : index
    %71 = vector.load %arg5[%c2_79, %c0_80, %c0_81] : memref<4x128x128xbf16, #tpu.memory_space<vmem>>, vector<1x128x128xbf16>
    %72 = vector.shape_cast %71 : vector<1x128x128xbf16> to vector<128x128xbf16>
    %cst_82 = arith.constant dense<0.000000e+00> : vector<8x128xf32>
    %73 = tpu.matmul %70, %72, %cst_82 {dimension_numbers = #tpu.dot_dimension_numbers<[1], [0], [0], [1], [0, 0, 1, 1], [], []>} : vector<8x128xbf16>, vector<128x128xbf16>, vector<8x128xf32> -> vector<8x128xf32>
    %74 = arith.truncf %73 : vector<8x128xf32> to vector<8x128xbf16>
    %c0_83 = arith.constant 0 : index
    %c2_84 = arith.constant 2 : index
    %c0_85 = arith.constant 0 : index
    %c0_86 = arith.constant 0 : index
    %75 = vector.load %arg8[%c0_83, %c2_84, %c0_85, %c0_86] : memref<1x4x8x128xbf16, #tpu.memory_space<vmem>>, vector<1x1x8x128xbf16>
    %76 = vector.shape_cast %75 : vector<1x1x8x128xbf16> to vector<8x128xbf16>
    %77 = vector.shape_cast %74 : vector<8x128xbf16> to vector<1x1x8x128xbf16>
    tpu.vector_store %arg8[%c0_83, %c2_84, %c0_85, %c0_86], %77 {strides = array<i32>} : memref<1x4x8x128xbf16, #tpu.memory_space<vmem>>, vector<1x1x8x128xbf16>,
    %c0_87 = arith.constant 0 : index
    %c0_88 = arith.constant 0 : index
    %c0_89 = arith.constant 0 : index
    %78 = vector.load %arg4[%c0_87, %c0_88, %c0_89] : memref<1x8x128xbf16, #tpu.memory_space<vmem>>, vector<1x8x128xbf16>
    %79 = vector.shape_cast %78 : vector<1x8x128xbf16> to vector<8x128xbf16>
    %c2_90 = arith.constant 2 : index
    %c0_91 = arith.constant 0 : index
    %c0_92 = arith.constant 0 : index
    %80 = vector.load %arg6[%c2_90, %c0_91, %c0_92] : memref<4x128x128xbf16, #tpu.memory_space<vmem>>, vector<1x128x128xbf16>
    %81 = vector.shape_cast %80 : vector<1x128x128xbf16> to vector<128x128xbf16>
    %cst_93 = arith.constant dense<0.000000e+00> : vector<8x128xf32>
    %82 = tpu.matmul %79, %81, %cst_93 {dimension_numbers = #tpu.dot_dimension_numbers<[1], [0], [0], [1], [0, 0, 1, 1], [], []>} : vector<8x128xbf16>, vector<128x128xbf16>, vector<8x128xf32> -> vector<8x128xf32>
    %83 = arith.truncf %82 : vector<8x128xf32> to vector<8x128xbf16>
    %c0_94 = arith.constant 0 : index
    %c2_95 = arith.constant 2 : index
    %c0_96 = arith.constant 0 : index
    %c0_97 = arith.constant 0 : index
    %84 = vector.load %arg9[%c0_94, %c2_95, %c0_96, %c0_97] : memref<1x4x8x128xbf16, #tpu.memory_space<vmem>>, vector<1x1x8x128xbf16>
    %85 = vector.shape_cast %84 : vector<1x1x8x128xbf16> to vector<8x128xbf16>
    %86 = vector.shape_cast %83 : vector<8x128xbf16> to vector<1x1x8x128xbf16>
    tpu.vector_store %arg9[%c0_94, %c2_95, %c0_96, %c0_97], %86 {strides = array<i32>} : memref<1x4x8x128xbf16, #tpu.memory_space<vmem>>, vector<1x1x8x128xbf16>,
    %c0_98 = arith.constant 0 : index
    %c0_99 = arith.constant 0 : index
    %c0_100 = arith.constant 0 : index
    %87 = vector.load %arg2[%c0_98, %c0_99, %c0_100] : memref<1x8x128xbf16, #tpu.memory_space<vmem>>, vector<1x8x128xbf16>
    %88 = vector.shape_cast %87 : vector<1x8x128xbf16> to vector<8x128xbf16>
    %c3 = arith.constant 3 : index
    %c0_101 = arith.constant 0 : index
    %c0_102 = arith.constant 0 : index
    %89 = vector.load %arg5[%c3, %c0_101, %c0_102] : memref<4x128x128xbf16, #tpu.memory_space<vmem>>, vector<1x128x128xbf16>
    %90 = vector.shape_cast %89 : vector<1x128x128xbf16> to vector<128x128xbf16>
    %cst_103 = arith.constant dense<0.000000e+00> : vector<8x128xf32>
    %91 = tpu.matmul %88, %90, %cst_103 {dimension_numbers = #tpu.dot_dimension_numbers<[1], [0], [0], [1], [0, 0, 1, 1], [], []>} : vector<8x128xbf16>, vector<128x128xbf16>, vector<8x128xf32> -> vector<8x128xf32>
    %cst_104 = arith.constant 0.353553385 : f32
    %92 = vector.broadcast %cst_104 : f32 to vector<8x128xf32>
    %93 = arith.mulf %91, %92 : vector<8x128xf32>
    %94 = arith.truncf %93 : vector<8x128xf32> to vector<8x128xbf16>
    %c0_105 = arith.constant 0 : index
    %c3_106 = arith.constant 3 : index
    %c0_107 = arith.constant 0 : index
    %c0_108 = arith.constant 0 : index
    %95 = vector.load %arg7[%c0_105, %c3_106, %c0_107, %c0_108] : memref<1x4x8x128xbf16, #tpu.memory_space<vmem>>, vector<1x1x8x128xbf16>
    %96 = vector.shape_cast %95 : vector<1x1x8x128xbf16> to vector<8x128xbf16>
    %97 = vector.shape_cast %94 : vector<8x128xbf16> to vector<1x1x8x128xbf16>
    tpu.vector_store %arg7[%c0_105, %c3_106, %c0_107, %c0_108], %97 {strides = array<i32>} : memref<1x4x8x128xbf16, #tpu.memory_space<vmem>>, vector<1x1x8x128xbf16>,
    %c0_109 = arith.constant 0 : index
    %c0_110 = arith.constant 0 : index
    %c0_111 = arith.constant 0 : index
    %98 = vector.load %arg3[%c0_109, %c0_110, %c0_111] : memref<1x8x128xbf16, #tpu.memory_space<vmem>>, vector<1x8x128xbf16>
    %99 = vector.shape_cast %98 : vector<1x8x128xbf16> to vector<8x128xbf16>
    %c3_112 = arith.constant 3 : index
    %c0_113 = arith.constant 0 : index
    %c0_114 = arith.constant 0 : index
    %100 = vector.load %arg5[%c3_112, %c0_113, %c0_114] : memref<4x128x128xbf16, #tpu.memory_space<vmem>>, vector<1x128x128xbf16>
    %101 = vector.shape_cast %100 : vector<1x128x128xbf16> to vector<128x128xbf16>
    %cst_115 = arith.constant dense<0.000000e+00> : vector<8x128xf32>
    %102 = tpu.matmul %99, %101, %cst_115 {dimension_numbers = #tpu.dot_dimension_numbers<[1], [0], [0], [1], [0, 0, 1, 1], [], []>} : vector<8x128xbf16>, vector<128x128xbf16>, vector<8x128xf32> -> vector<8x128xf32>
    %103 = arith.truncf %102 : vector<8x128xf32> to vector<8x128xbf16>
    %c0_116 = arith.constant 0 : index
    %c3_117 = arith.constant 3 : index
    %c0_118 = arith.constant 0 : index
    %c0_119 = arith.constant 0 : index
    %104 = vector.load %arg8[%c0_116, %c3_117, %c0_118, %c0_119] : memref<1x4x8x128xbf16, #tpu.memory_space<vmem>>, vector<1x1x8x128xbf16>
    %105 = vector.shape_cast %104 : vector<1x1x8x128xbf16> to vector<8x128xbf16>
    %106 = vector.shape_cast %103 : vector<8x128xbf16> to vector<1x1x8x128xbf16>
    tpu.vector_store %arg8[%c0_116, %c3_117, %c0_118, %c0_119], %106 {strides = array<i32>} : memref<1x4x8x128xbf16, #tpu.memory_space<vmem>>, vector<1x1x8x128xbf16>,
    %c0_120 = arith.constant 0 : index
    %c0_121 = arith.constant 0 : index
    %c0_122 = arith.constant 0 : index
    %107 = vector.load %arg4[%c0_120, %c0_121, %c0_122] : memref<1x8x128xbf16, #tpu.memory_space<vmem>>, vector<1x8x128xbf16>
    %108 = vector.shape_cast %107 : vector<1x8x128xbf16> to vector<8x128xbf16>
    %c3_123 = arith.constant 3 : index
    %c0_124 = arith.constant 0 : index
    %c0_125 = arith.constant 0 : index
    %109 = vector.load %arg6[%c3_123, %c0_124, %c0_125] : memref<4x128x128xbf16, #tpu.memory_space<vmem>>, vector<1x128x128xbf16>
    %110 = vector.shape_cast %109 : vector<1x128x128xbf16> to vector<128x128xbf16>
    %cst_126 = arith.constant dense<0.000000e+00> : vector<8x128xf32>
    %111 = tpu.matmul %108, %110, %cst_126 {dimension_numbers = #tpu.dot_dimension_numbers<[1], [0], [0], [1], [0, 0, 1, 1], [], []>} : vector<8x128xbf16>, vector<128x128xbf16>, vector<8x128xf32> -> vector<8x128xf32>
    %112 = arith.truncf %111 : vector<8x128xf32> to vector<8x128xbf16>
    %c0_127 = arith.constant 0 : index
    %c3_128 = arith.constant 3 : index
    %c0_129 = arith.constant 0 : index
    %c0_130 = arith.constant 0 : index
    %113 = vector.load %arg9[%c0_127, %c3_128, %c0_129, %c0_130] : memref<1x4x8x128xbf16, #tpu.memory_space<vmem>>, vector<1x1x8x128xbf16>
    %114 = vector.shape_cast %113 : vector<1x1x8x128xbf16> to vector<8x128xbf16>
    %115 = vector.shape_cast %112 : vector<8x128xbf16> to vector<1x1x8x128xbf16>
    tpu.vector_store %arg9[%c0_127, %c3_128, %c0_129, %c0_130], %115 {strides = array<i32>} : memref<1x4x8x128xbf16, #tpu.memory_space<vmem>>, vector<1x1x8x128xbf16>,
    return
  }
  func.func @transform_0(%arg0: i32, %arg1: i32) -> (i32, i32, i32) {
    %c0_i32 = arith.constant 0 : i32
    %c0_i32_0 = arith.constant 0 : i32
    return %arg0, %arg1, %c0_i32 : i32, i32, i32
  }
  func.func @transform_1(%arg0: i32, %arg1: i32) -> (i32, i32, i32) {
    %c0_i32 = arith.constant 0 : i32
    %c0_i32_0 = arith.constant 0 : i32
    return %arg0, %arg1, %c0_i32 : i32, i32, i32
  }
  func.func @transform_2(%arg0: i32, %arg1: i32) -> (i32, i32, i32) {
    %c0_i32 = arith.constant 0 : i32
    %c0_i32_0 = arith.constant 0 : i32
    return %arg0, %arg1, %c0_i32 : i32, i32, i32
  }
  func.func @transform_3(%arg0: i32, %arg1: i32) -> (i32, i32, i32) {
    %c0_i32 = arith.constant 0 : i32
    %c0_i32_0 = arith.constant 0 : i32
    %c0_i32_1 = arith.constant 0 : i32
    %c0_i32_2 = arith.constant 0 : i32
    return %c0_i32, %c0_i32_0, %c0_i32_1 : i32, i32, i32
  }
  func.func @transform_4(%arg0: i32, %arg1: i32) -> (i32, i32, i32) {
    %c0_i32 = arith.constant 0 : i32
    %c0_i32_0 = arith.constant 0 : i32
    %c0_i32_1 = arith.constant 0 : i32
    %c0_i32_2 = arith.constant 0 : i32
    return %c0_i32, %c0_i32_0, %c0_i32_1 : i32, i32, i32
  }
  func.func @transform_5(%arg0: i32, %arg1: i32) -> (i32, i32, i32, i32) {
    %c0_i32 = arith.constant 0 : i32
    %c0_i32_0 = arith.constant 0 : i32
    %c0_i32_1 = arith.constant 0 : i32
    return %arg0, %c0_i32, %arg1, %c0_i32_0 : i32, i32, i32, i32
  }
  func.func @transform_6(%arg0: i32, %arg1: i32) -> (i32, i32, i32, i32) {
    %c0_i32 = arith.constant 0 : i32
    %c0_i32_0 = arith.constant 0 : i32
    %c0_i32_1 = arith.constant 0 : i32
    return %arg0, %c0_i32, %arg1, %c0_i32_0 : i32, i32, i32, i32
  }
  func.func @transform_7(%arg0: i32, %arg1: i32) -> (i32, i32, i32, i32) {
    %c0_i32 = arith.constant 0 : i32
    %c0_i32_0 = arith.constant 0 : i32
    %c0_i32_1 = arith.constant 0 : i32
    return %arg0, %c0_i32, %arg1, %c0_i32_0 : i32, i32, i32, i32
  }
}

module attributes {stable_mosaic.version = 11 : i64} {
  func.func @_flash_kernel(%arg0: i32, %arg1: i32, %arg2: i32, %arg3: memref<1x4x8x128xbf16, #tpu.memory_space<vmem>>, %arg4: memref<1x4x8x128xbf16, #tpu.memory_space<vmem>>, %arg5: memref<1x4x8x128xbf16, #tpu.memory_space<vmem>>, %arg6: memref<4x128x128xbf16, #tpu.memory_space<vmem>>, %arg7: memref<1x128xf32, #tpu.memory_space<vmem>>, %arg8: memref<1x8x128xf32, #tpu.memory_space<vmem>>, %arg9: memref<4x8x128xf32, #tpu.memory_space<vmem>>, %arg10: memref<4x8x1xf32, #tpu.memory_space<vmem>>, %arg11: memref<4x8x1xf32, #tpu.memory_space<vmem>>) attributes {dimension_semantics = [#tpu.dimension_semantics<parallel>, #tpu.dimension_semantics<parallel>, #tpu.dimension_semantics<arbitrary>], iteration_bounds = array<i64: 2, 1, 1>, scalar_prefetch = 0 : i64, scratch_operands = 3 : i64, tpu.core_type = #tpu.core_type<tc>, window_params = [{transform_indices = @transform_0, window_bounds = array<i64: 1, 4, 8, 128>}, {transform_indices = @transform_1, window_bounds = array<i64: 1, 4, 8, 128>}, {transform_indices = @transform_2, window_bounds = array<i64: 1, 4, 8, 128>}, {pipeline_mode = #tpu.pipeline_mode<synchronous>, transform_indices = @transform_3, window_bounds = array<i64: 4, 128, 128>}, {pipeline_mode = #tpu.pipeline_mode<synchronous>, transform_indices = @transform_4, window_bounds = array<i64: 1, 128>}, {transform_indices = @transform_5, window_bounds = array<i64: 1, 8, 128>}]} {
    %c0_i32 = arith.constant 0 : i32
    %0 = arith.cmpi eq, %arg2, %c0_i32 : i32
    %1 = arith.extui %0 : i1 to i32
    %c0_i32_0 = arith.constant 0 : i32
    %2 = arith.cmpi ne, %1, %c0_i32_0 : i32
    scf.if %2 {
      %cst_35 = arith.constant 0xFF800000 : f32
      %36 = vector.broadcast %cst_35 : f32 to vector<4x8x1xf32>
      %c0_36 = arith.constant 0 : index
      %c0_37 = arith.constant 0 : index
      %c0_38 = arith.constant 0 : index
      %37 = vector.load %arg10[%c0_36, %c0_37, %c0_38] : memref<4x8x1xf32, #tpu.memory_space<vmem>>, vector<4x8x1xf32>
      tpu.vector_store %arg10[%c0_36, %c0_37, %c0_38], %36 {strides = array<i32>} : memref<4x8x1xf32, #tpu.memory_space<vmem>>, vector<4x8x1xf32>,
      %cst_39 = arith.constant 0.000000e+00 : f32
      %38 = vector.broadcast %cst_39 : f32 to vector<4x8x1xf32>
      %c0_40 = arith.constant 0 : index
      %c0_41 = arith.constant 0 : index
      %c0_42 = arith.constant 0 : index
      %39 = vector.load %arg11[%c0_40, %c0_41, %c0_42] : memref<4x8x1xf32, #tpu.memory_space<vmem>>, vector<4x8x1xf32>
      tpu.vector_store %arg11[%c0_40, %c0_41, %c0_42], %38 {strides = array<i32>} : memref<4x8x1xf32, #tpu.memory_space<vmem>>, vector<4x8x1xf32>,
      %cst_43 = arith.constant 0.000000e+00 : f32
      %40 = vector.broadcast %cst_43 : f32 to vector<4x8x128xf32>
      %c0_44 = arith.constant 0 : index
      %c0_45 = arith.constant 0 : index
      %c0_46 = arith.constant 0 : index
      %41 = vector.load %arg9[%c0_44, %c0_45, %c0_46] : memref<4x8x128xf32, #tpu.memory_space<vmem>>, vector<4x8x128xf32>
      tpu.vector_store %arg9[%c0_44, %c0_45, %c0_46], %40 {strides = array<i32>} : memref<4x8x128xf32, #tpu.memory_space<vmem>>, vector<4x8x128xf32>,
    } else {
    }
    %c0 = arith.constant 0 : index
    %c0_1 = arith.constant 0 : index
    %c0_2 = arith.constant 0 : index
    %c0_3 = arith.constant 0 : index
    %3 = vector.load %arg3[%c0, %c0_1, %c0_2, %c0_3] : memref<1x4x8x128xbf16, #tpu.memory_space<vmem>>, vector<1x4x8x128xbf16>
    %4 = vector.shape_cast %3 : vector<1x4x8x128xbf16> to vector<4x8x128xbf16>
    %c0_4 = arith.constant 0 : index
    %c0_5 = arith.constant 0 : index
    %c0_6 = arith.constant 0 : index
    %c0_7 = arith.constant 0 : index
    %5 = vector.load %arg4[%c0_4, %c0_5, %c0_6, %c0_7] : memref<1x4x8x128xbf16, #tpu.memory_space<vmem>>, vector<1x4x8x128xbf16>
    %6 = vector.shape_cast %5 : vector<1x4x8x128xbf16> to vector<4x8x128xbf16>
    "tpu.trace_start"() <{level = 10 : i32, message = "hqd,hkd->hqk"}> : () -> ()
    %cst = arith.constant dense<0.000000e+00> : vector<4x8x8xf32>
    %7 = tpu.matmul %4, %6, %cst {dimension_numbers = #tpu.dot_dimension_numbers<[2], [2], [1], [1], [0, 0, 0, 1, 1, 1], [0], [0]>} : vector<4x8x128xbf16>, vector<4x8x128xbf16>, vector<4x8x8xf32> -> vector<4x8x8xf32>
    "tpu.trace_stop"() : () -> ()
    %c0_8 = arith.constant 0 : index
    %c0_9 = arith.constant 0 : index
    %c0_10 = arith.constant 0 : index
    %8 = vector.load %arg10[%c0_8, %c0_9, %c0_10] : memref<4x8x1xf32, #tpu.memory_space<vmem>>, vector<4x8x1xf32>
    %cst_11 = arith.constant dense<0xFF800000> : vector<4x8xf32>
    %9 = vector.multi_reduction <maximumf>, %7, %cst_11 [2] : vector<4x8x8xf32> to vector<4x8xf32>
    %10 = vector.shape_cast %9 : vector<4x8xf32> to vector<4x8x1xf32>
    %11 = arith.maximumf %8, %10 : vector<4x8x1xf32>
    %12 = arith.subf %8, %11 : vector<4x8x1xf32>
    %13 = math.exp %12 : vector<4x8x1xf32>
    %14 = vector.broadcast %11 : vector<4x8x1xf32> to vector<4x8x8xf32>
    %15 = arith.subf %7, %14 : vector<4x8x8xf32>
    %16 = math.exp %15 : vector<4x8x8xf32>
    %c0_12 = arith.constant 0 : index
    %c0_13 = arith.constant 0 : index
    %c0_14 = arith.constant 0 : index
    %17 = vector.load %arg11[%c0_12, %c0_13, %c0_14] : memref<4x8x1xf32, #tpu.memory_space<vmem>>, vector<4x8x1xf32>
    %18 = arith.mulf %13, %17 : vector<4x8x1xf32>
    %cst_15 = arith.constant dense<0.000000e+00> : vector<4x8xf32>
    %19 = vector.multi_reduction <add>, %16, %cst_15 [2] : vector<4x8x8xf32> to vector<4x8xf32>
    %20 = vector.shape_cast %19 : vector<4x8xf32> to vector<4x8x1xf32>
    %21 = arith.addf %18, %20 : vector<4x8x1xf32>
    %c0_16 = arith.constant 0 : index
    %c0_17 = arith.constant 0 : index
    %c0_18 = arith.constant 0 : index
    %22 = vector.load %arg11[%c0_16, %c0_17, %c0_18] : memref<4x8x1xf32, #tpu.memory_space<vmem>>, vector<4x8x1xf32>
    tpu.vector_store %arg11[%c0_16, %c0_17, %c0_18], %21 {strides = array<i32>} : memref<4x8x1xf32, #tpu.memory_space<vmem>>, vector<4x8x1xf32>,
    %c0_19 = arith.constant 0 : index
    %c0_20 = arith.constant 0 : index
    %c0_21 = arith.constant 0 : index
    %23 = vector.load %arg9[%c0_19, %c0_20, %c0_21] : memref<4x8x128xf32, #tpu.memory_space<vmem>>, vector<4x8x128xf32>
    %24 = vector.broadcast %13 : vector<4x8x1xf32> to vector<4x8x128xf32>
    %25 = arith.mulf %24, %23 : vector<4x8x128xf32>
    %26 = arith.truncf %16 : vector<4x8x8xf32> to vector<4x8x8xbf16>
    %c0_22 = arith.constant 0 : index
    %c0_23 = arith.constant 0 : index
    %c0_24 = arith.constant 0 : index
    %c0_25 = arith.constant 0 : index
    %27 = vector.load %arg5[%c0_22, %c0_23, %c0_24, %c0_25] : memref<1x4x8x128xbf16, #tpu.memory_space<vmem>>, vector<1x4x8x128xbf16>
    %28 = vector.shape_cast %27 : vector<1x4x8x128xbf16> to vector<4x8x128xbf16>
    "tpu.trace_start"() <{level = 10 : i32, message = "hqk,hkd->hqd"}> : () -> ()
    %cst_26 = arith.constant dense<0.000000e+00> : vector<4x8x128xf32>
    %29 = tpu.matmul %26, %28, %cst_26 {dimension_numbers = #tpu.dot_dimension_numbers<[2], [1], [1], [2], [0, 0, 0, 1, 1, 2], [0], [0]>} : vector<4x8x8xbf16>, vector<4x8x128xbf16>, vector<4x8x128xf32> -> vector<4x8x128xf32>
    "tpu.trace_stop"() : () -> ()
    %30 = arith.addf %25, %29 : vector<4x8x128xf32>
    %c0_27 = arith.constant 0 : index
    %c0_28 = arith.constant 0 : index
    %c0_29 = arith.constant 0 : index
    %31 = vector.load %arg9[%c0_27, %c0_28, %c0_29] : memref<4x8x128xf32, #tpu.memory_space<vmem>>, vector<4x8x128xf32>
    tpu.vector_store %arg9[%c0_27, %c0_28, %c0_29], %30 {strides = array<i32>} : memref<4x8x128xf32, #tpu.memory_space<vmem>>, vector<4x8x128xf32>,
    %c0_30 = arith.constant 0 : index
    %c0_31 = arith.constant 0 : index
    %c0_32 = arith.constant 0 : index
    %32 = vector.load %arg10[%c0_30, %c0_31, %c0_32] : memref<4x8x1xf32, #tpu.memory_space<vmem>>, vector<4x8x1xf32>
    tpu.vector_store %arg10[%c0_30, %c0_31, %c0_32], %11 {strides = array<i32>} : memref<4x8x1xf32, #tpu.memory_space<vmem>>, vector<4x8x1xf32>,
    %c0_i32_33 = arith.constant 0 : i32
    %33 = arith.cmpi eq, %arg2, %c0_i32_33 : i32
    %34 = arith.extui %33 : i1 to i32
    %c0_i32_34 = arith.constant 0 : i32
    %35 = arith.cmpi ne, %34, %c0_i32_34 : i32
    scf.if %35 {
      %c0_35 = arith.constant 0 : index
      %c0_36 = arith.constant 0 : index
      %36 = vector.load %arg7[%c0_35, %c0_36] : memref<1x128xf32, #tpu.memory_space<vmem>>, vector<1x128xf32>
      %c0_37 = arith.constant 0 : index
      %c0_38 = arith.constant 0 : index
      %c0_39 = arith.constant 0 : index
      %37 = vector.load %arg9[%c0_37, %c0_38, %c0_39] : memref<4x8x128xf32, #tpu.memory_space<vmem>>, vector<1x8x128xf32>
      %38 = vector.shape_cast %37 : vector<1x8x128xf32> to vector<8x128xf32>
      %c0_40 = arith.constant 0 : index
      %c0_41 = arith.constant 0 : index
      %c0_42 = arith.constant 0 : index
      %39 = vector.load %arg11[%c0_40, %c0_41, %c0_42] : memref<4x8x1xf32, #tpu.memory_space<vmem>>, vector<1x8x1xf32>
      %40 = vector.shape_cast %39 : vector<1x8x1xf32> to vector<8x1xf32>
      %41 = vector.broadcast %40 : vector<8x1xf32> to vector<8x128xf32>
      %42 = arith.divf %38, %41 : vector<8x128xf32>
      %43 = arith.truncf %42 : vector<8x128xf32> to vector<8x128xbf16>
      %c0_43 = arith.constant 0 : index
      %c0_44 = arith.constant 0 : index
      %c0_45 = arith.constant 0 : index
      %44 = vector.load %arg6[%c0_43, %c0_44, %c0_45] : memref<4x128x128xbf16, #tpu.memory_space<vmem>>, vector<1x128x128xbf16>
      %45 = vector.shape_cast %44 : vector<1x128x128xbf16> to vector<128x128xbf16>
      %cst_46 = arith.constant dense<0.000000e+00> : vector<8x128xf32>
      %46 = tpu.matmul %43, %45, %cst_46 {dimension_numbers = #tpu.dot_dimension_numbers<[1], [0], [0], [1], [0, 0, 1, 1], [], []>} : vector<8x128xbf16>, vector<128x128xbf16>, vector<8x128xf32> -> vector<8x128xf32>
      %47 = vector.broadcast %36 : vector<1x128xf32> to vector<8x128xf32>
      %48 = arith.addf %47, %46 : vector<8x128xf32>
      %c1 = arith.constant 1 : index
      %c0_47 = arith.constant 0 : index
      %c0_48 = arith.constant 0 : index
      %49 = vector.load %arg9[%c1, %c0_47, %c0_48] : memref<4x8x128xf32, #tpu.memory_space<vmem>>, vector<1x8x128xf32>
      %50 = vector.shape_cast %49 : vector<1x8x128xf32> to vector<8x128xf32>
      %c1_49 = arith.constant 1 : index
      %c0_50 = arith.constant 0 : index
      %c0_51 = arith.constant 0 : index
      %51 = vector.load %arg11[%c1_49, %c0_50, %c0_51] : memref<4x8x1xf32, #tpu.memory_space<vmem>>, vector<1x8x1xf32>
      %52 = vector.shape_cast %51 : vector<1x8x1xf32> to vector<8x1xf32>
      %53 = vector.broadcast %52 : vector<8x1xf32> to vector<8x128xf32>
      %54 = arith.divf %50, %53 : vector<8x128xf32>
      %55 = arith.truncf %54 : vector<8x128xf32> to vector<8x128xbf16>
      %c1_52 = arith.constant 1 : index
      %c0_53 = arith.constant 0 : index
      %c0_54 = arith.constant 0 : index
      %56 = vector.load %arg6[%c1_52, %c0_53, %c0_54] : memref<4x128x128xbf16, #tpu.memory_space<vmem>>, vector<1x128x128xbf16>
      %57 = vector.shape_cast %56 : vector<1x128x128xbf16> to vector<128x128xbf16>
      %cst_55 = arith.constant dense<0.000000e+00> : vector<8x128xf32>
      %58 = tpu.matmul %55, %57, %cst_55 {dimension_numbers = #tpu.dot_dimension_numbers<[1], [0], [0], [1], [0, 0, 1, 1], [], []>} : vector<8x128xbf16>, vector<128x128xbf16>, vector<8x128xf32> -> vector<8x128xf32>
      %59 = arith.addf %48, %58 : vector<8x128xf32>
      %c2 = arith.constant 2 : index
      %c0_56 = arith.constant 0 : index
      %c0_57 = arith.constant 0 : index
      %60 = vector.load %arg9[%c2, %c0_56, %c0_57] : memref<4x8x128xf32, #tpu.memory_space<vmem>>, vector<1x8x128xf32>
      %61 = vector.shape_cast %60 : vector<1x8x128xf32> to vector<8x128xf32>
      %c2_58 = arith.constant 2 : index
      %c0_59 = arith.constant 0 : index
      %c0_60 = arith.constant 0 : index
      %62 = vector.load %arg11[%c2_58, %c0_59, %c0_60] : memref<4x8x1xf32, #tpu.memory_space<vmem>>, vector<1x8x1xf32>
      %63 = vector.shape_cast %62 : vector<1x8x1xf32> to vector<8x1xf32>
      %64 = vector.broadcast %63 : vector<8x1xf32> to vector<8x128xf32>
      %65 = arith.divf %61, %64 : vector<8x128xf32>
      %66 = arith.truncf %65 : vector<8x128xf32> to vector<8x128xbf16>
      %c2_61 = arith.constant 2 : index
      %c0_62 = arith.constant 0 : index
      %c0_63 = arith.constant 0 : index
      %67 = vector.load %arg6[%c2_61, %c0_62, %c0_63] : memref<4x128x128xbf16, #tpu.memory_space<vmem>>, vector<1x128x128xbf16>
      %68 = vector.shape_cast %67 : vector<1x128x128xbf16> to vector<128x128xbf16>
      %cst_64 = arith.constant dense<0.000000e+00> : vector<8x128xf32>
      %69 = tpu.matmul %66, %68, %cst_64 {dimension_numbers = #tpu.dot_dimension_numbers<[1], [0], [0], [1], [0, 0, 1, 1], [], []>} : vector<8x128xbf16>, vector<128x128xbf16>, vector<8x128xf32> -> vector<8x128xf32>
      %70 = arith.addf %59, %69 : vector<8x128xf32>
      %c3 = arith.constant 3 : index
      %c0_65 = arith.constant 0 : index
      %c0_66 = arith.constant 0 : index
      %71 = vector.load %arg9[%c3, %c0_65, %c0_66] : memref<4x8x128xf32, #tpu.memory_space<vmem>>, vector<1x8x128xf32>
      %72 = vector.shape_cast %71 : vector<1x8x128xf32> to vector<8x128xf32>
      %c3_67 = arith.constant 3 : index
      %c0_68 = arith.constant 0 : index
      %c0_69 = arith.constant 0 : index
      %73 = vector.load %arg11[%c3_67, %c0_68, %c0_69] : memref<4x8x1xf32, #tpu.memory_space<vmem>>, vector<1x8x1xf32>
      %74 = vector.shape_cast %73 : vector<1x8x1xf32> to vector<8x1xf32>
      %75 = vector.broadcast %74 : vector<8x1xf32> to vector<8x128xf32>
      %76 = arith.divf %72, %75 : vector<8x128xf32>
      %77 = arith.truncf %76 : vector<8x128xf32> to vector<8x128xbf16>
      %c3_70 = arith.constant 3 : index
      %c0_71 = arith.constant 0 : index
      %c0_72 = arith.constant 0 : index
      %78 = vector.load %arg6[%c3_70, %c0_71, %c0_72] : memref<4x128x128xbf16, #tpu.memory_space<vmem>>, vector<1x128x128xbf16>
      %79 = vector.shape_cast %78 : vector<1x128x128xbf16> to vector<128x128xbf16>
      %cst_73 = arith.constant dense<0.000000e+00> : vector<8x128xf32>
      %80 = tpu.matmul %77, %79, %cst_73 {dimension_numbers = #tpu.dot_dimension_numbers<[1], [0], [0], [1], [0, 0, 1, 1], [], []>} : vector<8x128xbf16>, vector<128x128xbf16>, vector<8x128xf32> -> vector<8x128xf32>
      %81 = arith.addf %70, %80 : vector<8x128xf32>
      %c0_74 = arith.constant 0 : index
      %c0_75 = arith.constant 0 : index
      %c0_76 = arith.constant 0 : index
      %82 = vector.load %arg8[%c0_74, %c0_75, %c0_76] : memref<1x8x128xf32, #tpu.memory_space<vmem>>, vector<1x8x128xf32>
      %83 = vector.shape_cast %82 : vector<1x8x128xf32> to vector<8x128xf32>
      %84 = vector.shape_cast %81 : vector<8x128xf32> to vector<1x8x128xf32>
      tpu.vector_store %arg8[%c0_74, %c0_75, %c0_76], %84 {strides = array<i32>} : memref<1x8x128xf32, #tpu.memory_space<vmem>>, vector<1x8x128xf32>,
    } else {
    }
    return
  }
  func.func @transform_0(%arg0: i32, %arg1: i32, %arg2: i32) -> (i32, i32, i32, i32) {
    %c0_i32 = arith.constant 0 : i32
    %c0_i32_0 = arith.constant 0 : i32
    %c0_i32_1 = arith.constant 0 : i32
    return %arg0, %c0_i32, %arg1, %c0_i32_0 : i32, i32, i32, i32
  }
  func.func @transform_1(%arg0: i32, %arg1: i32, %arg2: i32) -> (i32, i32, i32, i32) {
    %c0_i32 = arith.constant 0 : i32
    %c0_i32_0 = arith.constant 0 : i32
    %c0_i32_1 = arith.constant 0 : i32
    return %arg0, %c0_i32, %arg2, %c0_i32_0 : i32, i32, i32, i32
  }
  func.func @transform_2(%arg0: i32, %arg1: i32, %arg2: i32) -> (i32, i32, i32, i32) {
    %c0_i32 = arith.constant 0 : i32
    %c0_i32_0 = arith.constant 0 : i32
    %c0_i32_1 = arith.constant 0 : i32
    return %arg0, %c0_i32, %arg2, %c0_i32_0 : i32, i32, i32, i32
  }
  func.func @transform_3(%arg0: i32, %arg1: i32, %arg2: i32) -> (i32, i32, i32) {
    %c0_i32 = arith.constant 0 : i32
    %c0_i32_0 = arith.constant 0 : i32
    %c0_i32_1 = arith.constant 0 : i32
    %c0_i32_2 = arith.constant 0 : i32
    return %c0_i32, %c0_i32_0, %c0_i32_1 : i32, i32, i32
  }
  func.func @transform_4(%arg0: i32, %arg1: i32, %arg2: i32) -> (i32, i32) {
    %c0_i32 = arith.constant 0 : i32
    %c0_i32_0 = arith.constant 0 : i32
    %c0_i32_1 = arith.constant 0 : i32
    return %c0_i32, %c0_i32_0 : i32, i32
  }
  func.func @transform_5(%arg0: i32, %arg1: i32, %arg2: i32) -> (i32, i32, i32) {
    %c0_i32 = arith.constant 0 : i32
    %c0_i32_0 = arith.constant 0 : i32
    return %arg0, %arg1, %c0_i32 : i32, i32, i32
  }
}

module attributes {stable_mosaic.version = 11 : i64} {
  func.func @_proj_kernel(%arg0: i32, %arg1: i32, %arg2: memref<1x8x128xbf16, #tpu.memory_space<vmem>>, %arg3: memref<1x8x128xbf16, #tpu.memory_space<vmem>>, %arg4: memref<1x8x128xbf16, #tpu.memory_space<vmem>>, %arg5: memref<4x128x128xbf16, #tpu.memory_space<vmem>>, %arg6: memref<4x128x128xbf16, #tpu.memory_space<vmem>>, %arg7: memref<1x4x8x128xbf16, #tpu.memory_space<vmem>>, %arg8: memref<1x4x8x128xbf16, #tpu.memory_space<vmem>>, %arg9: memref<1x4x8x128xbf16, #tpu.memory_space<vmem>>) attributes {dimension_semantics = [#tpu.dimension_semantics<parallel>, #tpu.dimension_semantics<parallel>], iteration_bounds = array<i64: 2, 1>, scalar_prefetch = 0 : i64, scratch_operands = 0 : i64, tpu.core_type = #tpu.core_type<tc>, window_params = [{transform_indices = @transform_0, window_bounds = array<i64: 1, 8, 128>}, {transform_indices = @transform_1, window_bounds = array<i64: 1, 8, 128>}, {transform_indices = @transform_2, window_bounds = array<i64: 1, 8, 128>}, {pipeline_mode = #tpu.pipeline_mode<synchronous>, transform_indices = @transform_3, window_bounds = array<i64: 4, 128, 128>}, {pipeline_mode = #tpu.pipeline_mode<synchronous>, transform_indices = @transform_4, window_bounds = array<i64: 4, 128, 128>}, {transform_indices = @transform_5, window_bounds = array<i64: 1, 4, 8, 128>}, {transform_indices = @transform_6, window_bounds = array<i64: 1, 4, 8, 128>}, {transform_indices = @transform_7, window_bounds = array<i64: 1, 4, 8, 128>}]} {
    %c0 = arith.constant 0 : index
    %c0_0 = arith.constant 0 : index
    %c0_1 = arith.constant 0 : index
    %0 = vector.load %arg2[%c0, %c0_0, %c0_1] : memref<1x8x128xbf16, #tpu.memory_space<vmem>>, vector<1x8x128xbf16>
    %1 = vector.shape_cast %0 : vector<1x8x128xbf16> to vector<8x128xbf16>
    %c0_2 = arith.constant 0 : index
    %c0_3 = arith.constant 0 : index
    %c0_4 = arith.constant 0 : index
    %2 = vector.load %arg5[%c0_2, %c0_3, %c0_4] : memref<4x128x128xbf16, #tpu.memory_space<vmem>>, vector<1x128x128xbf16>
    %3 = vector.shape_cast %2 : vector<1x128x128xbf16> to vector<128x128xbf16>
    %cst = arith.constant dense<0.000000e+00> : vector<8x128xf32>
    %4 = tpu.matmul %1, %3, %cst {dimension_numbers = #tpu.dot_dimension_numbers<[1], [0], [0], [1], [0, 0, 1, 1], [], []>} : vector<8x128xbf16>, vector<128x128xbf16>, vector<8x128xf32> -> vector<8x128xf32>
    %cst_5 = arith.constant 0.353553385 : f32
    %5 = vector.broadcast %cst_5 : f32 to vector<8x128xf32>
    %6 = arith.mulf %4, %5 : vector<8x128xf32>
    %7 = arith.truncf %6 : vector<8x128xf32> to vector<8x128xbf16>
    %c0_6 = arith.constant 0 : index
    %c0_7 = arith.constant 0 : index
    %c0_8 = arith.constant 0 : index
    %c0_9 = arith.constant 0 : index
    %8 = vector.load %arg7[%c0_6, %c0_7, %c0_8, %c0_9] : memref<1x4x8x128xbf16, #tpu.memory_space<vmem>>, vector<1x1x8x128xbf16>
    %9 = vector.shape_cast %8 : vector<1x1x8x128xbf16> to vector<8x128xbf16>
    %10 = vector.shape_cast %7 : vector<8x128xbf16> to vector<1x1x8x128xbf16>
    tpu.vector_store %arg7[%c0_6, %c0_7, %c0_8, %c0_9], %10 {strides = array<i32>} : memref<1x4x8x128xbf16, #tpu.memory_space<vmem>>, vector<1x1x8x128xbf16>,
    %c0_10 = arith.constant 0 : index
    %c0_11 = arith.constant 0 : index
    %c0_12 = arith.constant 0 : index
    %11 = vector.load %arg3[%c0_10, %c0_11, %c0_12] : memref<1x8x128xbf16, #tpu.memory_space<vmem>>, vector<1x8x128xbf16>
    %12 = vector.shape_cast %11 : vector<1x8x128xbf16> to vector<8x128xbf16>
    %c0_13 = arith.constant 0 : index
    %c0_14 = arith.constant 0 : index
    %c0_15 = arith.constant 0 : index
    %13 = vector.load %arg5[%c0_13, %c0_14, %c0_15] : memref<4x128x128xbf16, #tpu.memory_space<vmem>>, vector<1x128x128xbf16>
    %14 = vector.shape_cast %13 : vector<1x128x128xbf16> to vector<128x128xbf16>
    %cst_16 = arith.constant dense<0.000000e+00> : vector<8x128xf32>
    %15 = tpu.matmul %12, %14, %cst_16 {dimension_numbers = #tpu.dot_dimension_numbers<[1], [0], [0], [1], [0, 0, 1, 1], [], []>} : vector<8x128xbf16>, vector<128x128xbf16>, vector<8x128xf32> -> vector<8x128xf32>
    %16 = arith.truncf %15 : vector<8x128xf32> to vector<8x128xbf16>
    %c0_17 = arith.constant 0 : index
    %c0_18 = arith.constant 0 : index
    %c0_19 = arith.constant 0 : index
    %c0_20 = arith.constant 0 : index
    %17 = vector.load %arg8[%c0_17, %c0_18, %c0_19, %c0_20] : memref<1x4x8x128xbf16, #tpu.memory_space<vmem>>, vector<1x1x8x128xbf16>
    %18 = vector.shape_cast %17 : vector<1x1x8x128xbf16> to vector<8x128xbf16>
    %19 = vector.shape_cast %16 : vector<8x128xbf16> to vector<1x1x8x128xbf16>
    tpu.vector_store %arg8[%c0_17, %c0_18, %c0_19, %c0_20], %19 {strides = array<i32>} : memref<1x4x8x128xbf16, #tpu.memory_space<vmem>>, vector<1x1x8x128xbf16>,
    %c0_21 = arith.constant 0 : index
    %c0_22 = arith.constant 0 : index
    %c0_23 = arith.constant 0 : index
    %20 = vector.load %arg4[%c0_21, %c0_22, %c0_23] : memref<1x8x128xbf16, #tpu.memory_space<vmem>>, vector<1x8x128xbf16>
    %21 = vector.shape_cast %20 : vector<1x8x128xbf16> to vector<8x128xbf16>
    %c0_24 = arith.constant 0 : index
    %c0_25 = arith.constant 0 : index
    %c0_26 = arith.constant 0 : index
    %22 = vector.load %arg6[%c0_24, %c0_25, %c0_26] : memref<4x128x128xbf16, #tpu.memory_space<vmem>>, vector<1x128x128xbf16>
    %23 = vector.shape_cast %22 : vector<1x128x128xbf16> to vector<128x128xbf16>
    %cst_27 = arith.constant dense<0.000000e+00> : vector<8x128xf32>
    %24 = tpu.matmul %21, %23, %cst_27 {dimension_numbers = #tpu.dot_dimension_numbers<[1], [0], [0], [1], [0, 0, 1, 1], [], []>} : vector<8x128xbf16>, vector<128x128xbf16>, vector<8x128xf32> -> vector<8x128xf32>
    %25 = arith.truncf %24 : vector<8x128xf32> to vector<8x128xbf16>
    %c0_28 = arith.constant 0 : index
    %c0_29 = arith.constant 0 : index
    %c0_30 = arith.constant 0 : index
    %c0_31 = arith.constant 0 : index
    %26 = vector.load %arg9[%c0_28, %c0_29, %c0_30, %c0_31] : memref<1x4x8x128xbf16, #tpu.memory_space<vmem>>, vector<1x1x8x128xbf16>
    %27 = vector.shape_cast %26 : vector<1x1x8x128xbf16> to vector<8x128xbf16>
    %28 = vector.shape_cast %25 : vector<8x128xbf16> to vector<1x1x8x128xbf16>
    tpu.vector_store %arg9[%c0_28, %c0_29, %c0_30, %c0_31], %28 {strides = array<i32>} : memref<1x4x8x128xbf16, #tpu.memory_space<vmem>>, vector<1x1x8x128xbf16>,
    %c0_32 = arith.constant 0 : index
    %c0_33 = arith.constant 0 : index
    %c0_34 = arith.constant 0 : index
    %29 = vector.load %arg2[%c0_32, %c0_33, %c0_34] : memref<1x8x128xbf16, #tpu.memory_space<vmem>>, vector<1x8x128xbf16>
    %30 = vector.shape_cast %29 : vector<1x8x128xbf16> to vector<8x128xbf16>
    %c1 = arith.constant 1 : index
    %c0_35 = arith.constant 0 : index
    %c0_36 = arith.constant 0 : index
    %31 = vector.load %arg5[%c1, %c0_35, %c0_36] : memref<4x128x128xbf16, #tpu.memory_space<vmem>>, vector<1x128x128xbf16>
    %32 = vector.shape_cast %31 : vector<1x128x128xbf16> to vector<128x128xbf16>
    %cst_37 = arith.constant dense<0.000000e+00> : vector<8x128xf32>
    %33 = tpu.matmul %30, %32, %cst_37 {dimension_numbers = #tpu.dot_dimension_numbers<[1], [0], [0], [1], [0, 0, 1, 1], [], []>} : vector<8x128xbf16>, vector<128x128xbf16>, vector<8x128xf32> -> vector<8x128xf32>
    %cst_38 = arith.constant 0.353553385 : f32
    %34 = vector.broadcast %cst_38 : f32 to vector<8x128xf32>
    %35 = arith.mulf %33, %34 : vector<8x128xf32>
    %36 = arith.truncf %35 : vector<8x128xf32> to vector<8x128xbf16>
    %c0_39 = arith.constant 0 : index
    %c1_40 = arith.constant 1 : index
    %c0_41 = arith.constant 0 : index
    %c0_42 = arith.constant 0 : index
    %37 = vector.load %arg7[%c0_39, %c1_40, %c0_41, %c0_42] : memref<1x4x8x128xbf16, #tpu.memory_space<vmem>>, vector<1x1x8x128xbf16>
    %38 = vector.shape_cast %37 : vector<1x1x8x128xbf16> to vector<8x128xbf16>
    %39 = vector.shape_cast %36 : vector<8x128xbf16> to vector<1x1x8x128xbf16>
    tpu.vector_store %arg7[%c0_39, %c1_40, %c0_41, %c0_42], %39 {strides = array<i32>} : memref<1x4x8x128xbf16, #tpu.memory_space<vmem>>, vector<1x1x8x128xbf16>,
    %c0_43 = arith.constant 0 : index
    %c0_44 = arith.constant 0 : index
    %c0_45 = arith.constant 0 : index
    %40 = vector.load %arg3[%c0_43, %c0_44, %c0_45] : memref<1x8x128xbf16, #tpu.memory_space<vmem>>, vector<1x8x128xbf16>
    %41 = vector.shape_cast %40 : vector<1x8x128xbf16> to vector<8x128xbf16>
    %c1_46 = arith.constant 1 : index
    %c0_47 = arith.constant 0 : index
    %c0_48 = arith.constant 0 : index
    %42 = vector.load %arg5[%c1_46, %c0_47, %c0_48] : memref<4x128x128xbf16, #tpu.memory_space<vmem>>, vector<1x128x128xbf16>
    %43 = vector.shape_cast %42 : vector<1x128x128xbf16> to vector<128x128xbf16>
    %cst_49 = arith.constant dense<0.000000e+00> : vector<8x128xf32>
    %44 = tpu.matmul %41, %43, %cst_49 {dimension_numbers = #tpu.dot_dimension_numbers<[1], [0], [0], [1], [0, 0, 1, 1], [], []>} : vector<8x128xbf16>, vector<128x128xbf16>, vector<8x128xf32> -> vector<8x128xf32>
    %45 = arith.truncf %44 : vector<8x128xf32> to vector<8x128xbf16>
    %c0_50 = arith.constant 0 : index
    %c1_51 = arith.constant 1 : index
    %c0_52 = arith.constant 0 : index
    %c0_53 = arith.constant 0 : index
    %46 = vector.load %arg8[%c0_50, %c1_51, %c0_52, %c0_53] : memref<1x4x8x128xbf16, #tpu.memory_space<vmem>>, vector<1x1x8x128xbf16>
    %47 = vector.shape_cast %46 : vector<1x1x8x128xbf16> to vector<8x128xbf16>
    %48 = vector.shape_cast %45 : vector<8x128xbf16> to vector<1x1x8x128xbf16>
    tpu.vector_store %arg8[%c0_50, %c1_51, %c0_52, %c0_53], %48 {strides = array<i32>} : memref<1x4x8x128xbf16, #tpu.memory_space<vmem>>, vector<1x1x8x128xbf16>,
    %c0_54 = arith.constant 0 : index
    %c0_55 = arith.constant 0 : index
    %c0_56 = arith.constant 0 : index
    %49 = vector.load %arg4[%c0_54, %c0_55, %c0_56] : memref<1x8x128xbf16, #tpu.memory_space<vmem>>, vector<1x8x128xbf16>
    %50 = vector.shape_cast %49 : vector<1x8x128xbf16> to vector<8x128xbf16>
    %c1_57 = arith.constant 1 : index
    %c0_58 = arith.constant 0 : index
    %c0_59 = arith.constant 0 : index
    %51 = vector.load %arg6[%c1_57, %c0_58, %c0_59] : memref<4x128x128xbf16, #tpu.memory_space<vmem>>, vector<1x128x128xbf16>
    %52 = vector.shape_cast %51 : vector<1x128x128xbf16> to vector<128x128xbf16>
    %cst_60 = arith.constant dense<0.000000e+00> : vector<8x128xf32>
    %53 = tpu.matmul %50, %52, %cst_60 {dimension_numbers = #tpu.dot_dimension_numbers<[1], [0], [0], [1], [0, 0, 1, 1], [], []>} : vector<8x128xbf16>, vector<128x128xbf16>, vector<8x128xf32> -> vector<8x128xf32>
    %54 = arith.truncf %53 : vector<8x128xf32> to vector<8x128xbf16>
    %c0_61 = arith.constant 0 : index
    %c1_62 = arith.constant 1 : index
    %c0_63 = arith.constant 0 : index
    %c0_64 = arith.constant 0 : index
    %55 = vector.load %arg9[%c0_61, %c1_62, %c0_63, %c0_64] : memref<1x4x8x128xbf16, #tpu.memory_space<vmem>>, vector<1x1x8x128xbf16>
    %56 = vector.shape_cast %55 : vector<1x1x8x128xbf16> to vector<8x128xbf16>
    %57 = vector.shape_cast %54 : vector<8x128xbf16> to vector<1x1x8x128xbf16>
    tpu.vector_store %arg9[%c0_61, %c1_62, %c0_63, %c0_64], %57 {strides = array<i32>} : memref<1x4x8x128xbf16, #tpu.memory_space<vmem>>, vector<1x1x8x128xbf16>,
    %c0_65 = arith.constant 0 : index
    %c0_66 = arith.constant 0 : index
    %c0_67 = arith.constant 0 : index
    %58 = vector.load %arg2[%c0_65, %c0_66, %c0_67] : memref<1x8x128xbf16, #tpu.memory_space<vmem>>, vector<1x8x128xbf16>
    %59 = vector.shape_cast %58 : vector<1x8x128xbf16> to vector<8x128xbf16>
    %c2 = arith.constant 2 : index
    %c0_68 = arith.constant 0 : index
    %c0_69 = arith.constant 0 : index
    %60 = vector.load %arg5[%c2, %c0_68, %c0_69] : memref<4x128x128xbf16, #tpu.memory_space<vmem>>, vector<1x128x128xbf16>
    %61 = vector.shape_cast %60 : vector<1x128x128xbf16> to vector<128x128xbf16>
    %cst_70 = arith.constant dense<0.000000e+00> : vector<8x128xf32>
    %62 = tpu.matmul %59, %61, %cst_70 {dimension_numbers = #tpu.dot_dimension_numbers<[1], [0], [0], [1], [0, 0, 1, 1], [], []>} : vector<8x128xbf16>, vector<128x128xbf16>, vector<8x128xf32> -> vector<8x128xf32>
    %cst_71 = arith.constant 0.353553385 : f32
    %63 = vector.broadcast %cst_71 : f32 to vector<8x128xf32>
    %64 = arith.mulf %62, %63 : vector<8x128xf32>
    %65 = arith.truncf %64 : vector<8x128xf32> to vector<8x128xbf16>
    %c0_72 = arith.constant 0 : index
    %c2_73 = arith.constant 2 : index
    %c0_74 = arith.constant 0 : index
    %c0_75 = arith.constant 0 : index
    %66 = vector.load %arg7[%c0_72, %c2_73, %c0_74, %c0_75] : memref<1x4x8x128xbf16, #tpu.memory_space<vmem>>, vector<1x1x8x128xbf16>
    %67 = vector.shape_cast %66 : vector<1x1x8x128xbf16> to vector<8x128xbf16>
    %68 = vector.shape_cast %65 : vector<8x128xbf16> to vector<1x1x8x128xbf16>
    tpu.vector_store %arg7[%c0_72, %c2_73, %c0_74, %c0_75], %68 {strides = array<i32>} : memref<1x4x8x128xbf16, #tpu.memory_space<vmem>>, vector<1x1x8x128xbf16>,
    %c0_76 = arith.constant 0 : index
    %c0_77 = arith.constant 0 : index
    %c0_78 = arith.constant 0 : index
    %69 = vector.load %arg3[%c0_76, %c0_77, %c0_78] : memref<1x8x128xbf16, #tpu.memory_space<vmem>>, vector<1x8x128xbf16>
    %70 = vector.shape_cast %69 : vector<1x8x128xbf16> to vector<8x128xbf16>
    %c2_79 = arith.constant 2 : index
    %c0_80 = arith.constant 0 : index
    %c0_81 = arith.constant 0 : index
    %71 = vector.load %arg5[%c2_79, %c0_80, %c0_81] : memref<4x128x128xbf16, #tpu.memory_space<vmem>>, vector<1x128x128xbf16>
    %72 = vector.shape_cast %71 : vector<1x128x128xbf16> to vector<128x128xbf16>
    %cst_82 = arith.constant dense<0.000000e+00> : vector<8x128xf32>
    %73 = tpu.matmul %70, %72, %cst_82 {dimension_numbers = #tpu.dot_dimension_numbers<[1], [0], [0], [1], [0, 0, 1, 1], [], []>} : vector<8x128xbf16>, vector<128x128xbf16>, vector<8x128xf32> -> vector<8x128xf32>
    %74 = arith.truncf %73 : vector<8x128xf32> to vector<8x128xbf16>
    %c0_83 = arith.constant 0 : index
    %c2_84 = arith.constant 2 : index
    %c0_85 = arith.constant 0 : index
    %c0_86 = arith.constant 0 : index
    %75 = vector.load %arg8[%c0_83, %c2_84, %c0_85, %c0_86] : memref<1x4x8x128xbf16, #tpu.memory_space<vmem>>, vector<1x1x8x128xbf16>
    %76 = vector.shape_cast %75 : vector<1x1x8x128xbf16> to vector<8x128xbf16>
    %77 = vector.shape_cast %74 : vector<8x128xbf16> to vector<1x1x8x128xbf16>
    tpu.vector_store %arg8[%c0_83, %c2_84, %c0_85, %c0_86], %77 {strides = array<i32>} : memref<1x4x8x128xbf16, #tpu.memory_space<vmem>>, vector<1x1x8x128xbf16>,
    %c0_87 = arith.constant 0 : index
    %c0_88 = arith.constant 0 : index
    %c0_89 = arith.constant 0 : index
    %78 = vector.load %arg4[%c0_87, %c0_88, %c0_89] : memref<1x8x128xbf16, #tpu.memory_space<vmem>>, vector<1x8x128xbf16>
    %79 = vector.shape_cast %78 : vector<1x8x128xbf16> to vector<8x128xbf16>
    %c2_90 = arith.constant 2 : index
    %c0_91 = arith.constant 0 : index
    %c0_92 = arith.constant 0 : index
    %80 = vector.load %arg6[%c2_90, %c0_91, %c0_92] : memref<4x128x128xbf16, #tpu.memory_space<vmem>>, vector<1x128x128xbf16>
    %81 = vector.shape_cast %80 : vector<1x128x128xbf16> to vector<128x128xbf16>
    %cst_93 = arith.constant dense<0.000000e+00> : vector<8x128xf32>
    %82 = tpu.matmul %79, %81, %cst_93 {dimension_numbers = #tpu.dot_dimension_numbers<[1], [0], [0], [1], [0, 0, 1, 1], [], []>} : vector<8x128xbf16>, vector<128x128xbf16>, vector<8x128xf32> -> vector<8x128xf32>
    %83 = arith.truncf %82 : vector<8x128xf32> to vector<8x128xbf16>
    %c0_94 = arith.constant 0 : index
    %c2_95 = arith.constant 2 : index
    %c0_96 = arith.constant 0 : index
    %c0_97 = arith.constant 0 : index
    %84 = vector.load %arg9[%c0_94, %c2_95, %c0_96, %c0_97] : memref<1x4x8x128xbf16, #tpu.memory_space<vmem>>, vector<1x1x8x128xbf16>
    %85 = vector.shape_cast %84 : vector<1x1x8x128xbf16> to vector<8x128xbf16>
    %86 = vector.shape_cast %83 : vector<8x128xbf16> to vector<1x1x8x128xbf16>
    tpu.vector_store %arg9[%c0_94, %c2_95, %c0_96, %c0_97], %86 {strides = array<i32>} : memref<1x4x8x128xbf16, #tpu.memory_space<vmem>>, vector<1x1x8x128xbf16>,
    %c0_98 = arith.constant 0 : index
    %c0_99 = arith.constant 0 : index
    %c0_100 = arith.constant 0 : index
    %87 = vector.load %arg2[%c0_98, %c0_99, %c0_100] : memref<1x8x128xbf16, #tpu.memory_space<vmem>>, vector<1x8x128xbf16>
    %88 = vector.shape_cast %87 : vector<1x8x128xbf16> to vector<8x128xbf16>
    %c3 = arith.constant 3 : index
    %c0_101 = arith.constant 0 : index
    %c0_102 = arith.constant 0 : index
    %89 = vector.load %arg5[%c3, %c0_101, %c0_102] : memref<4x128x128xbf16, #tpu.memory_space<vmem>>, vector<1x128x128xbf16>
    %90 = vector.shape_cast %89 : vector<1x128x128xbf16> to vector<128x128xbf16>
    %cst_103 = arith.constant dense<0.000000e+00> : vector<8x128xf32>
    %91 = tpu.matmul %88, %90, %cst_103 {dimension_numbers = #tpu.dot_dimension_numbers<[1], [0], [0], [1], [0, 0, 1, 1], [], []>} : vector<8x128xbf16>, vector<128x128xbf16>, vector<8x128xf32> -> vector<8x128xf32>
    %cst_104 = arith.constant 0.353553385 : f32
    %92 = vector.broadcast %cst_104 : f32 to vector<8x128xf32>
    %93 = arith.mulf %91, %92 : vector<8x128xf32>
    %94 = arith.truncf %93 : vector<8x128xf32> to vector<8x128xbf16>
    %c0_105 = arith.constant 0 : index
    %c3_106 = arith.constant 3 : index
    %c0_107 = arith.constant 0 : index
    %c0_108 = arith.constant 0 : index
    %95 = vector.load %arg7[%c0_105, %c3_106, %c0_107, %c0_108] : memref<1x4x8x128xbf16, #tpu.memory_space<vmem>>, vector<1x1x8x128xbf16>
    %96 = vector.shape_cast %95 : vector<1x1x8x128xbf16> to vector<8x128xbf16>
    %97 = vector.shape_cast %94 : vector<8x128xbf16> to vector<1x1x8x128xbf16>
    tpu.vector_store %arg7[%c0_105, %c3_106, %c0_107, %c0_108], %97 {strides = array<i32>} : memref<1x4x8x128xbf16, #tpu.memory_space<vmem>>, vector<1x1x8x128xbf16>,
    %c0_109 = arith.constant 0 : index
    %c0_110 = arith.constant 0 : index
    %c0_111 = arith.constant 0 : index
    %98 = vector.load %arg3[%c0_109, %c0_110, %c0_111] : memref<1x8x128xbf16, #tpu.memory_space<vmem>>, vector<1x8x128xbf16>
    %99 = vector.shape_cast %98 : vector<1x8x128xbf16> to vector<8x128xbf16>
    %c3_112 = arith.constant 3 : index
    %c0_113 = arith.constant 0 : index
    %c0_114 = arith.constant 0 : index
    %100 = vector.load %arg5[%c3_112, %c0_113, %c0_114] : memref<4x128x128xbf16, #tpu.memory_space<vmem>>, vector<1x128x128xbf16>
    %101 = vector.shape_cast %100 : vector<1x128x128xbf16> to vector<128x128xbf16>
    %cst_115 = arith.constant dense<0.000000e+00> : vector<8x128xf32>
    %102 = tpu.matmul %99, %101, %cst_115 {dimension_numbers = #tpu.dot_dimension_numbers<[1], [0], [0], [1], [0, 0, 1, 1], [], []>} : vector<8x128xbf16>, vector<128x128xbf16>, vector<8x128xf32> -> vector<8x128xf32>
    %103 = arith.truncf %102 : vector<8x128xf32> to vector<8x128xbf16>
    %c0_116 = arith.constant 0 : index
    %c3_117 = arith.constant 3 : index
    %c0_118 = arith.constant 0 : index
    %c0_119 = arith.constant 0 : index
    %104 = vector.load %arg8[%c0_116, %c3_117, %c0_118, %c0_119] : memref<1x4x8x128xbf16, #tpu.memory_space<vmem>>, vector<1x1x8x128xbf16>
    %105 = vector.shape_cast %104 : vector<1x1x8x128xbf16> to vector<8x128xbf16>
    %106 = vector.shape_cast %103 : vector<8x128xbf16> to vector<1x1x8x128xbf16>
    tpu.vector_store %arg8[%c0_116, %c3_117, %c0_118, %c0_119], %106 {strides = array<i32>} : memref<1x4x8x128xbf16, #tpu.memory_space<vmem>>, vector<1x1x8x128xbf16>,
    %c0_120 = arith.constant 0 : index
    %c0_121 = arith.constant 0 : index
    %c0_122 = arith.constant 0 : index
    %107 = vector.load %arg4[%c0_120, %c0_121, %c0_122] : memref<1x8x128xbf16, #tpu.memory_space<vmem>>, vector<1x8x128xbf16>
    %108 = vector.shape_cast %107 : vector<1x8x128xbf16> to vector<8x128xbf16>
    %c3_123 = arith.constant 3 : index
    %c0_124 = arith.constant 0 : index
    %c0_125 = arith.constant 0 : index
    %109 = vector.load %arg6[%c3_123, %c0_124, %c0_125] : memref<4x128x128xbf16, #tpu.memory_space<vmem>>, vector<1x128x128xbf16>
    %110 = vector.shape_cast %109 : vector<1x128x128xbf16> to vector<128x128xbf16>
    %cst_126 = arith.constant dense<0.000000e+00> : vector<8x128xf32>
    %111 = tpu.matmul %108, %110, %cst_126 {dimension_numbers = #tpu.dot_dimension_numbers<[1], [0], [0], [1], [0, 0, 1, 1], [], []>} : vector<8x128xbf16>, vector<128x128xbf16>, vector<8x128xf32> -> vector<8x128xf32>
    %112 = arith.truncf %111 : vector<8x128xf32> to vector<8x128xbf16>
    %c0_127 = arith.constant 0 : index
    %c3_128 = arith.constant 3 : index
    %c0_129 = arith.constant 0 : index
    %c0_130 = arith.constant 0 : index
    %113 = vector.load %arg9[%c0_127, %c3_128, %c0_129, %c0_130] : memref<1x4x8x128xbf16, #tpu.memory_space<vmem>>, vector<1x1x8x128xbf16>
    %114 = vector.shape_cast %113 : vector<1x1x8x128xbf16> to vector<8x128xbf16>
    %115 = vector.shape_cast %112 : vector<8x128xbf16> to vector<1x1x8x128xbf16>
    tpu.vector_store %arg9[%c0_127, %c3_128, %c0_129, %c0_130], %115 {strides = array<i32>} : memref<1x4x8x128xbf16, #tpu.memory_space<vmem>>, vector<1x1x8x128xbf16>,
    return
  }
  func.func @transform_0(%arg0: i32, %arg1: i32) -> (i32, i32, i32) {
    %c0_i32 = arith.constant 0 : i32
    %c0_i32_0 = arith.constant 0 : i32
    return %arg0, %arg1, %c0_i32 : i32, i32, i32
  }
  func.func @transform_1(%arg0: i32, %arg1: i32) -> (i32, i32, i32) {
    %c0_i32 = arith.constant 0 : i32
    %c0_i32_0 = arith.constant 0 : i32
    return %arg0, %arg1, %c0_i32 : i32, i32, i32
  }
  func.func @transform_2(%arg0: i32, %arg1: i32) -> (i32, i32, i32) {
    %c0_i32 = arith.constant 0 : i32
    %c0_i32_0 = arith.constant 0 : i32
    return %arg0, %arg1, %c0_i32 : i32, i32, i32
  }
  func.func @transform_3(%arg0: i32, %arg1: i32) -> (i32, i32, i32) {
    %c0_i32 = arith.constant 0 : i32
    %c0_i32_0 = arith.constant 0 : i32
    %c0_i32_1 = arith.constant 0 : i32
    %c0_i32_2 = arith.constant 0 : i32
    return %c0_i32, %c0_i32_0, %c0_i32_1 : i32, i32, i32
  }
  func.func @transform_4(%arg0: i32, %arg1: i32) -> (i32, i32, i32) {
    %c0_i32 = arith.constant 0 : i32
    %c0_i32_0 = arith.constant 0 : i32
    %c0_i32_1 = arith.constant 0 : i32
    %c0_i32_2 = arith.constant 0 : i32
    return %c0_i32, %c0_i32_0, %c0_i32_1 : i32, i32, i32
  }
  func.func @transform_5(%arg0: i32, %arg1: i32) -> (i32, i32, i32, i32) {
    %c0_i32 = arith.constant 0 : i32
    %c0_i32_0 = arith.constant 0 : i32
    %c0_i32_1 = arith.constant 0 : i32
    return %arg0, %c0_i32, %arg1, %c0_i32_0 : i32, i32, i32, i32
  }
  func.func @transform_6(%arg0: i32, %arg1: i32) -> (i32, i32, i32, i32) {
    %c0_i32 = arith.constant 0 : i32
    %c0_i32_0 = arith.constant 0 : i32
    %c0_i32_1 = arith.constant 0 : i32
    return %arg0, %c0_i32, %arg1, %c0_i32_0 : i32, i32, i32, i32
  }
  func.func @transform_7(%arg0: i32, %arg1: i32) -> (i32, i32, i32, i32) {
    %c0_i32 = arith.constant 0 : i32
    %c0_i32_0 = arith.constant 0 : i32
    %c0_i32_1 = arith.constant 0 : i32
    return %arg0, %c0_i32, %arg1, %c0_i32_0 : i32, i32, i32, i32
  }
}

module attributes {stable_mosaic.version = 11 : i64} {
  func.func @_flash_kernel(%arg0: i32, %arg1: i32, %arg2: i32, %arg3: memref<1x4x8x128xbf16, #tpu.memory_space<vmem>>, %arg4: memref<1x4x8x128xbf16, #tpu.memory_space<vmem>>, %arg5: memref<1x4x8x128xbf16, #tpu.memory_space<vmem>>, %arg6: memref<4x128x128xbf16, #tpu.memory_space<vmem>>, %arg7: memref<1x128xf32, #tpu.memory_space<vmem>>, %arg8: memref<1x8x128xf32, #tpu.memory_space<vmem>>, %arg9: memref<4x8x128xf32, #tpu.memory_space<vmem>>, %arg10: memref<4x8x1xf32, #tpu.memory_space<vmem>>, %arg11: memref<4x8x1xf32, #tpu.memory_space<vmem>>) attributes {dimension_semantics = [#tpu.dimension_semantics<parallel>, #tpu.dimension_semantics<parallel>, #tpu.dimension_semantics<arbitrary>], iteration_bounds = array<i64: 2, 1, 1>, scalar_prefetch = 0 : i64, scratch_operands = 3 : i64, tpu.core_type = #tpu.core_type<tc>, window_params = [{transform_indices = @transform_0, window_bounds = array<i64: 1, 4, 8, 128>}, {transform_indices = @transform_1, window_bounds = array<i64: 1, 4, 8, 128>}, {transform_indices = @transform_2, window_bounds = array<i64: 1, 4, 8, 128>}, {pipeline_mode = #tpu.pipeline_mode<synchronous>, transform_indices = @transform_3, window_bounds = array<i64: 4, 128, 128>}, {pipeline_mode = #tpu.pipeline_mode<synchronous>, transform_indices = @transform_4, window_bounds = array<i64: 1, 128>}, {transform_indices = @transform_5, window_bounds = array<i64: 1, 8, 128>}]} {
    %c0_i32 = arith.constant 0 : i32
    %0 = arith.cmpi eq, %arg2, %c0_i32 : i32
    %1 = arith.extui %0 : i1 to i32
    %c0_i32_0 = arith.constant 0 : i32
    %2 = arith.cmpi ne, %1, %c0_i32_0 : i32
    scf.if %2 {
      %cst_35 = arith.constant 0xFF800000 : f32
      %36 = vector.broadcast %cst_35 : f32 to vector<4x8x1xf32>
      %c0_36 = arith.constant 0 : index
      %c0_37 = arith.constant 0 : index
      %c0_38 = arith.constant 0 : index
      %37 = vector.load %arg10[%c0_36, %c0_37, %c0_38] : memref<4x8x1xf32, #tpu.memory_space<vmem>>, vector<4x8x1xf32>
      tpu.vector_store %arg10[%c0_36, %c0_37, %c0_38], %36 {strides = array<i32>} : memref<4x8x1xf32, #tpu.memory_space<vmem>>, vector<4x8x1xf32>,
      %cst_39 = arith.constant 0.000000e+00 : f32
      %38 = vector.broadcast %cst_39 : f32 to vector<4x8x1xf32>
      %c0_40 = arith.constant 0 : index
      %c0_41 = arith.constant 0 : index
      %c0_42 = arith.constant 0 : index
      %39 = vector.load %arg11[%c0_40, %c0_41, %c0_42] : memref<4x8x1xf32, #tpu.memory_space<vmem>>, vector<4x8x1xf32>
      tpu.vector_store %arg11[%c0_40, %c0_41, %c0_42], %38 {strides = array<i32>} : memref<4x8x1xf32, #tpu.memory_space<vmem>>, vector<4x8x1xf32>,
      %cst_43 = arith.constant 0.000000e+00 : f32
      %40 = vector.broadcast %cst_43 : f32 to vector<4x8x128xf32>
      %c0_44 = arith.constant 0 : index
      %c0_45 = arith.constant 0 : index
      %c0_46 = arith.constant 0 : index
      %41 = vector.load %arg9[%c0_44, %c0_45, %c0_46] : memref<4x8x128xf32, #tpu.memory_space<vmem>>, vector<4x8x128xf32>
      tpu.vector_store %arg9[%c0_44, %c0_45, %c0_46], %40 {strides = array<i32>} : memref<4x8x128xf32, #tpu.memory_space<vmem>>, vector<4x8x128xf32>,
    } else {
    }
    %c0 = arith.constant 0 : index
    %c0_1 = arith.constant 0 : index
    %c0_2 = arith.constant 0 : index
    %c0_3 = arith.constant 0 : index
    %3 = vector.load %arg3[%c0, %c0_1, %c0_2, %c0_3] : memref<1x4x8x128xbf16, #tpu.memory_space<vmem>>, vector<1x4x8x128xbf16>
    %4 = vector.shape_cast %3 : vector<1x4x8x128xbf16> to vector<4x8x128xbf16>
    %c0_4 = arith.constant 0 : index
    %c0_5 = arith.constant 0 : index
    %c0_6 = arith.constant 0 : index
    %c0_7 = arith.constant 0 : index
    %5 = vector.load %arg4[%c0_4, %c0_5, %c0_6, %c0_7] : memref<1x4x8x128xbf16, #tpu.memory_space<vmem>>, vector<1x4x8x128xbf16>
    %6 = vector.shape_cast %5 : vector<1x4x8x128xbf16> to vector<4x8x128xbf16>
    "tpu.trace_start"() <{level = 10 : i32, message = "hqd,hkd->hqk"}> : () -> ()
    %cst = arith.constant dense<0.000000e+00> : vector<4x8x8xf32>
    %7 = tpu.matmul %4, %6, %cst {dimension_numbers = #tpu.dot_dimension_numbers<[2], [2], [1], [1], [0, 0, 0, 1, 1, 1], [0], [0]>} : vector<4x8x128xbf16>, vector<4x8x128xbf16>, vector<4x8x8xf32> -> vector<4x8x8xf32>
    "tpu.trace_stop"() : () -> ()
    %c0_8 = arith.constant 0 : index
    %c0_9 = arith.constant 0 : index
    %c0_10 = arith.constant 0 : index
    %8 = vector.load %arg10[%c0_8, %c0_9, %c0_10] : memref<4x8x1xf32, #tpu.memory_space<vmem>>, vector<4x8x1xf32>
    %cst_11 = arith.constant dense<0xFF800000> : vector<4x8xf32>
    %9 = vector.multi_reduction <maximumf>, %7, %cst_11 [2] : vector<4x8x8xf32> to vector<4x8xf32>
    %10 = vector.shape_cast %9 : vector<4x8xf32> to vector<4x8x1xf32>
    %11 = arith.maximumf %8, %10 : vector<4x8x1xf32>
    %12 = arith.subf %8, %11 : vector<4x8x1xf32>
    %13 = math.exp %12 : vector<4x8x1xf32>
    %14 = vector.broadcast %11 : vector<4x8x1xf32> to vector<4x8x8xf32>
    %15 = arith.subf %7, %14 : vector<4x8x8xf32>
    %16 = math.exp %15 : vector<4x8x8xf32>
    %c0_12 = arith.constant 0 : index
    %c0_13 = arith.constant 0 : index
    %c0_14 = arith.constant 0 : index
    %17 = vector.load %arg11[%c0_12, %c0_13, %c0_14] : memref<4x8x1xf32, #tpu.memory_space<vmem>>, vector<4x8x1xf32>
    %18 = arith.mulf %13, %17 : vector<4x8x1xf32>
    %cst_15 = arith.constant dense<0.000000e+00> : vector<4x8xf32>
    %19 = vector.multi_reduction <add>, %16, %cst_15 [2] : vector<4x8x8xf32> to vector<4x8xf32>
    %20 = vector.shape_cast %19 : vector<4x8xf32> to vector<4x8x1xf32>
    %21 = arith.addf %18, %20 : vector<4x8x1xf32>
    %c0_16 = arith.constant 0 : index
    %c0_17 = arith.constant 0 : index
    %c0_18 = arith.constant 0 : index
    %22 = vector.load %arg11[%c0_16, %c0_17, %c0_18] : memref<4x8x1xf32, #tpu.memory_space<vmem>>, vector<4x8x1xf32>
    tpu.vector_store %arg11[%c0_16, %c0_17, %c0_18], %21 {strides = array<i32>} : memref<4x8x1xf32, #tpu.memory_space<vmem>>, vector<4x8x1xf32>,
    %c0_19 = arith.constant 0 : index
    %c0_20 = arith.constant 0 : index
    %c0_21 = arith.constant 0 : index
    %23 = vector.load %arg9[%c0_19, %c0_20, %c0_21] : memref<4x8x128xf32, #tpu.memory_space<vmem>>, vector<4x8x128xf32>
    %24 = vector.broadcast %13 : vector<4x8x1xf32> to vector<4x8x128xf32>
    %25 = arith.mulf %24, %23 : vector<4x8x128xf32>
    %26 = arith.truncf %16 : vector<4x8x8xf32> to vector<4x8x8xbf16>
    %c0_22 = arith.constant 0 : index
    %c0_23 = arith.constant 0 : index
    %c0_24 = arith.constant 0 : index
    %c0_25 = arith.constant 0 : index
    %27 = vector.load %arg5[%c0_22, %c0_23, %c0_24, %c0_25] : memref<1x4x8x128xbf16, #tpu.memory_space<vmem>>, vector<1x4x8x128xbf16>
    %28 = vector.shape_cast %27 : vector<1x4x8x128xbf16> to vector<4x8x128xbf16>
    "tpu.trace_start"() <{level = 10 : i32, message = "hqk,hkd->hqd"}> : () -> ()
    %cst_26 = arith.constant dense<0.000000e+00> : vector<4x8x128xf32>
    %29 = tpu.matmul %26, %28, %cst_26 {dimension_numbers = #tpu.dot_dimension_numbers<[2], [1], [1], [2], [0, 0, 0, 1, 1, 2], [0], [0]>} : vector<4x8x8xbf16>, vector<4x8x128xbf16>, vector<4x8x128xf32> -> vector<4x8x128xf32>
    "tpu.trace_stop"() : () -> ()
    %30 = arith.addf %25, %29 : vector<4x8x128xf32>
    %c0_27 = arith.constant 0 : index
    %c0_28 = arith.constant 0 : index
    %c0_29 = arith.constant 0 : index
    %31 = vector.load %arg9[%c0_27, %c0_28, %c0_29] : memref<4x8x128xf32, #tpu.memory_space<vmem>>, vector<4x8x128xf32>
    tpu.vector_store %arg9[%c0_27, %c0_28, %c0_29], %30 {strides = array<i32>} : memref<4x8x128xf32, #tpu.memory_space<vmem>>, vector<4x8x128xf32>,
    %c0_30 = arith.constant 0 : index
    %c0_31 = arith.constant 0 : index
    %c0_32 = arith.constant 0 : index
    %32 = vector.load %arg10[%c0_30, %c0_31, %c0_32] : memref<4x8x1xf32, #tpu.memory_space<vmem>>, vector<4x8x1xf32>
    tpu.vector_store %arg10[%c0_30, %c0_31, %c0_32], %11 {strides = array<i32>} : memref<4x8x1xf32, #tpu.memory_space<vmem>>, vector<4x8x1xf32>,
    %c0_i32_33 = arith.constant 0 : i32
    %33 = arith.cmpi eq, %arg2, %c0_i32_33 : i32
    %34 = arith.extui %33 : i1 to i32
    %c0_i32_34 = arith.constant 0 : i32
    %35 = arith.cmpi ne, %34, %c0_i32_34 : i32
    scf.if %35 {
      %c0_35 = arith.constant 0 : index
      %c0_36 = arith.constant 0 : index
      %36 = vector.load %arg7[%c0_35, %c0_36] : memref<1x128xf32, #tpu.memory_space<vmem>>, vector<1x128xf32>
      %c0_37 = arith.constant 0 : index
      %c0_38 = arith.constant 0 : index
      %c0_39 = arith.constant 0 : index
      %37 = vector.load %arg9[%c0_37, %c0_38, %c0_39] : memref<4x8x128xf32, #tpu.memory_space<vmem>>, vector<1x8x128xf32>
      %38 = vector.shape_cast %37 : vector<1x8x128xf32> to vector<8x128xf32>
      %c0_40 = arith.constant 0 : index
      %c0_41 = arith.constant 0 : index
      %c0_42 = arith.constant 0 : index
      %39 = vector.load %arg11[%c0_40, %c0_41, %c0_42] : memref<4x8x1xf32, #tpu.memory_space<vmem>>, vector<1x8x1xf32>
      %40 = vector.shape_cast %39 : vector<1x8x1xf32> to vector<8x1xf32>
      %41 = vector.broadcast %40 : vector<8x1xf32> to vector<8x128xf32>
      %42 = arith.divf %38, %41 : vector<8x128xf32>
      %43 = arith.truncf %42 : vector<8x128xf32> to vector<8x128xbf16>
      %c0_43 = arith.constant 0 : index
      %c0_44 = arith.constant 0 : index
      %c0_45 = arith.constant 0 : index
      %44 = vector.load %arg6[%c0_43, %c0_44, %c0_45] : memref<4x128x128xbf16, #tpu.memory_space<vmem>>, vector<1x128x128xbf16>
      %45 = vector.shape_cast %44 : vector<1x128x128xbf16> to vector<128x128xbf16>
      %cst_46 = arith.constant dense<0.000000e+00> : vector<8x128xf32>
      %46 = tpu.matmul %43, %45, %cst_46 {dimension_numbers = #tpu.dot_dimension_numbers<[1], [0], [0], [1], [0, 0, 1, 1], [], []>} : vector<8x128xbf16>, vector<128x128xbf16>, vector<8x128xf32> -> vector<8x128xf32>
      %47 = vector.broadcast %36 : vector<1x128xf32> to vector<8x128xf32>
      %48 = arith.addf %47, %46 : vector<8x128xf32>
      %c1 = arith.constant 1 : index
      %c0_47 = arith.constant 0 : index
      %c0_48 = arith.constant 0 : index
      %49 = vector.load %arg9[%c1, %c0_47, %c0_48] : memref<4x8x128xf32, #tpu.memory_space<vmem>>, vector<1x8x128xf32>
      %50 = vector.shape_cast %49 : vector<1x8x128xf32> to vector<8x128xf32>
      %c1_49 = arith.constant 1 : index
      %c0_50 = arith.constant 0 : index
      %c0_51 = arith.constant 0 : index
      %51 = vector.load %arg11[%c1_49, %c0_50, %c0_51] : memref<4x8x1xf32, #tpu.memory_space<vmem>>, vector<1x8x1xf32>
      %52 = vector.shape_cast %51 : vector<1x8x1xf32> to vector<8x1xf32>
      %53 = vector.broadcast %52 : vector<8x1xf32> to vector<8x128xf32>
      %54 = arith.divf %50, %53 : vector<8x128xf32>
      %55 = arith.truncf %54 : vector<8x128xf32> to vector<8x128xbf16>
      %c1_52 = arith.constant 1 : index
      %c0_53 = arith.constant 0 : index
      %c0_54 = arith.constant 0 : index
      %56 = vector.load %arg6[%c1_52, %c0_53, %c0_54] : memref<4x128x128xbf16, #tpu.memory_space<vmem>>, vector<1x128x128xbf16>
      %57 = vector.shape_cast %56 : vector<1x128x128xbf16> to vector<128x128xbf16>
      %cst_55 = arith.constant dense<0.000000e+00> : vector<8x128xf32>
      %58 = tpu.matmul %55, %57, %cst_55 {dimension_numbers = #tpu.dot_dimension_numbers<[1], [0], [0], [1], [0, 0, 1, 1], [], []>} : vector<8x128xbf16>, vector<128x128xbf16>, vector<8x128xf32> -> vector<8x128xf32>
      %59 = arith.addf %48, %58 : vector<8x128xf32>
      %c2 = arith.constant 2 : index
      %c0_56 = arith.constant 0 : index
      %c0_57 = arith.constant 0 : index
      %60 = vector.load %arg9[%c2, %c0_56, %c0_57] : memref<4x8x128xf32, #tpu.memory_space<vmem>>, vector<1x8x128xf32>
      %61 = vector.shape_cast %60 : vector<1x8x128xf32> to vector<8x128xf32>
      %c2_58 = arith.constant 2 : index
      %c0_59 = arith.constant 0 : index
      %c0_60 = arith.constant 0 : index
      %62 = vector.load %arg11[%c2_58, %c0_59, %c0_60] : memref<4x8x1xf32, #tpu.memory_space<vmem>>, vector<1x8x1xf32>
      %63 = vector.shape_cast %62 : vector<1x8x1xf32> to vector<8x1xf32>
      %64 = vector.broadcast %63 : vector<8x1xf32> to vector<8x128xf32>
      %65 = arith.divf %61, %64 : vector<8x128xf32>
      %66 = arith.truncf %65 : vector<8x128xf32> to vector<8x128xbf16>
      %c2_61 = arith.constant 2 : index
      %c0_62 = arith.constant 0 : index
      %c0_63 = arith.constant 0 : index
      %67 = vector.load %arg6[%c2_61, %c0_62, %c0_63] : memref<4x128x128xbf16, #tpu.memory_space<vmem>>, vector<1x128x128xbf16>
      %68 = vector.shape_cast %67 : vector<1x128x128xbf16> to vector<128x128xbf16>
      %cst_64 = arith.constant dense<0.000000e+00> : vector<8x128xf32>
      %69 = tpu.matmul %66, %68, %cst_64 {dimension_numbers = #tpu.dot_dimension_numbers<[1], [0], [0], [1], [0, 0, 1, 1], [], []>} : vector<8x128xbf16>, vector<128x128xbf16>, vector<8x128xf32> -> vector<8x128xf32>
      %70 = arith.addf %59, %69 : vector<8x128xf32>
      %c3 = arith.constant 3 : index
      %c0_65 = arith.constant 0 : index
      %c0_66 = arith.constant 0 : index
      %71 = vector.load %arg9[%c3, %c0_65, %c0_66] : memref<4x8x128xf32, #tpu.memory_space<vmem>>, vector<1x8x128xf32>
      %72 = vector.shape_cast %71 : vector<1x8x128xf32> to vector<8x128xf32>
      %c3_67 = arith.constant 3 : index
      %c0_68 = arith.constant 0 : index
      %c0_69 = arith.constant 0 : index
      %73 = vector.load %arg11[%c3_67, %c0_68, %c0_69] : memref<4x8x1xf32, #tpu.memory_space<vmem>>, vector<1x8x1xf32>
      %74 = vector.shape_cast %73 : vector<1x8x1xf32> to vector<8x1xf32>
      %75 = vector.broadcast %74 : vector<8x1xf32> to vector<8x128xf32>
      %76 = arith.divf %72, %75 : vector<8x128xf32>
      %77 = arith.truncf %76 : vector<8x128xf32> to vector<8x128xbf16>
      %c3_70 = arith.constant 3 : index
      %c0_71 = arith.constant 0 : index
      %c0_72 = arith.constant 0 : index
      %78 = vector.load %arg6[%c3_70, %c0_71, %c0_72] : memref<4x128x128xbf16, #tpu.memory_space<vmem>>, vector<1x128x128xbf16>
      %79 = vector.shape_cast %78 : vector<1x128x128xbf16> to vector<128x128xbf16>
      %cst_73 = arith.constant dense<0.000000e+00> : vector<8x128xf32>
      %80 = tpu.matmul %77, %79, %cst_73 {dimension_numbers = #tpu.dot_dimension_numbers<[1], [0], [0], [1], [0, 0, 1, 1], [], []>} : vector<8x128xbf16>, vector<128x128xbf16>, vector<8x128xf32> -> vector<8x128xf32>
      %81 = arith.addf %70, %80 : vector<8x128xf32>
      %c0_74 = arith.constant 0 : index
      %c0_75 = arith.constant 0 : index
      %c0_76 = arith.constant 0 : index
      %82 = vector.load %arg8[%c0_74, %c0_75, %c0_76] : memref<1x8x128xf32, #tpu.memory_space<vmem>>, vector<1x8x128xf32>
      %83 = vector.shape_cast %82 : vector<1x8x128xf32> to vector<8x128xf32>
      %84 = vector.shape_cast %81 : vector<8x128xf32> to vector<1x8x128xf32>
      tpu.vector_store %arg8[%c0_74, %c0_75, %c0_76], %84 {strides = array<i32>} : memref<1x8x128xf32, #tpu.memory_space<vmem>>, vector<1x8x128xf32>,
    } else {
    }
    return
  }
  func.func @transform_0(%arg0: i32, %arg1: i32, %arg2: i32) -> (i32, i32, i32, i32) {
    %c0_i32 = arith.constant 0 : i32
    %c0_i32_0 = arith.constant 0 : i32
    %c0_i32_1 = arith.constant 0 : i32
    return %arg0, %c0_i32, %arg1, %c0_i32_0 : i32, i32, i32, i32
  }
  func.func @transform_1(%arg0: i32, %arg1: i32, %arg2: i32) -> (i32, i32, i32, i32) {
    %c0_i32 = arith.constant 0 : i32
    %c0_i32_0 = arith.constant 0 : i32
    %c0_i32_1 = arith.constant 0 : i32
    return %arg0, %c0_i32, %arg2, %c0_i32_0 : i32, i32, i32, i32
  }
  func.func @transform_2(%arg0: i32, %arg1: i32, %arg2: i32) -> (i32, i32, i32, i32) {
    %c0_i32 = arith.constant 0 : i32
    %c0_i32_0 = arith.constant 0 : i32
    %c0_i32_1 = arith.constant 0 : i32
    return %arg0, %c0_i32, %arg2, %c0_i32_0 : i32, i32, i32, i32
  }
  func.func @transform_3(%arg0: i32, %arg1: i32, %arg2: i32) -> (i32, i32, i32) {
    %c0_i32 = arith.constant 0 : i32
    %c0_i32_0 = arith.constant 0 : i32
    %c0_i32_1 = arith.constant 0 : i32
    %c0_i32_2 = arith.constant 0 : i32
    return %c0_i32, %c0_i32_0, %c0_i32_1 : i32, i32, i32
  }
  func.func @transform_4(%arg0: i32, %arg1: i32, %arg2: i32) -> (i32, i32) {
    %c0_i32 = arith.constant 0 : i32
    %c0_i32_0 = arith.constant 0 : i32
    %c0_i32_1 = arith.constant 0 : i32
    return %c0_i32, %c0_i32_0 : i32, i32
  }
  func.func @transform_5(%arg0: i32, %arg1: i32, %arg2: i32) -> (i32, i32, i32) {
    %c0_i32 = arith.constant 0 : i32
    %c0_i32_0 = arith.constant 0 : i32
    return %arg0, %arg1, %c0_i32 : i32, i32, i32
  }
}

</mosaic_0001>

<bundles_post_ra>
// kernel: multi_head_attention.3
= control target key start
LH: loop header
LB: loop body
LE: loop exit
PB: predicated region body
PF: predicated region fallthrough
CT: control target
= control target key end

     0   :  { %10 = vsyncpa [#allocation6], 0  ;;  %s2348_s0 = inlined_call_operand.vmem [shape: bf16[2,4,8,128], index: 0, kind: input, shape index: {}]   ;;  %s2349_s1 = inlined_call_operand.vmem [shape: bf16[2,4,8,128], index: 1, kind: input, shape index: {}]   ;;  %s2350_s2 = inlined_call_operand.vmem [shape: bf16[2,4,8,128], index: 2, kind: input, shape index: {}]   ;;  %s2351_s3 = inlined_call_operand.vmem [shape: bf16[4,128,128], index: 3, kind: input, shape index: {}]   ;;  %s2352_s4 = inlined_call_operand.vmem [shape: f32[1,128], index: 4, kind: input, shape index: {}]   ;;  %s2353_s5 = inlined_call_operand.hbm [shape: f32[2,8,128], index: 5, kind: output, shape index: {}]  }
   0x1   :  { %12 = vsyncpa [#allocation6 + $0x1], 0  ;;  %s1964_s18 = smov 0   ;;  %s1966_s19 = smov 0  }
   0x2   :  { %s1968_s20 = smov 0   ;;  %s1970_s21 = smov 0  }
   0x3   :  { %s1972_s22 = smov 0   ;;  %s1974_s23 = smov 0  }
   0x4 LB: > { %s1438_s24 = sadd.s32 4294967295, %s1927_s23   ;;  %s1439_s25 = sadd.s32 4294967294, %s1927_s23   ;;  %s1927_s23 = sphi %s1974_s23, %s18_s23   ;;  %s1923_s22 = sphi %s1972_s22, %s2360_s22   ;;  %s1919_s21 = sphi %s1970_s21, %s2359_s21   ;;  %s1915_s20 = sphi %s1968_s20, %s2358_s20   ;;  %s1911_s19 = sphi %s1966_s19, %s2357_s19   ;;  %s1907_s18 = sphi %s1964_s18, %s2356_s18  }
   0x5   : > { %s37_s26 = sadd.s32 1, %s1923_s22  ;;  %s172_s27 = sadd.s32 1, %s1915_s20 }
   0x6   : > { %p39_p0 = scmp.ge.s32.totalorder %s37_s26, 2  ;;  %p182_p1 = scmp.ne.s32.totalorder %s1915_s20, %s1911_s19 }
   0x7   : > { %p183_p2 = scmp.eq.s32.totalorder %s1438_s24, 1  ;;  %p188_p3 = scmp.ne.s32.totalorder %s1911_s19, %s1907_s18 }
   0x8   : > { %s2362_s26 = smov (%p39_p0, %s37_s26), 0  ;;  %p189_p5 = scmp.eq.s32.totalorder %s1439_s25, 1 }
   0x9   : > { %p2004_p4 = por %p183_p2, %p182_p1  ;;  %s167_s29 = ssub.s32 %s1923_s22, %s2362_s26 }
   0xa   : > { %p1442_p6 = scmp.ge.s32.totalorder %s1927_s23, 1  ;;  %p170_p7 = scmp.eq.s32.totalorder %s167_s29, 0 }
   0xb   : > { %p2011_p8 = por %p189_p5, %p188_p3  ;;  %p246_p9 = scmp.lt.s32.totalorder %s1927_s23, 3 }
   0xc   : > { %s2017_s6 = scalar_select %p170_p7, %s1915_s20, %s172_s27  }
   0xd   : > { %p247_p10 = pnand %p1442_p6, %p246_p9 }
   0xe   : > { %p293_p11 = scmp.lt.s32.totalorder (!%p247_p10), %s1919_s21, 1  ;;  %v1929_v0 = vmov (!%p247_p10), 0.0   ;;  %vm1930_vm0 = vmmov (!%p247_p10), 0   ;;  %vm322_vm1 = vcmask (!%p247_p10), 7168   ;;  %v1931_v9 = vmov (!%p247_p10), -inf   ;;  %s1933_s24 = smov (!%p247_p10), [#allocation5]  }
   0xf   : > { %250 = sbr.rel (%p247_p10) target bundleno = 1098 (0x44a), region = 40  ;;  %1594 = vmatprep.subr.bf16.mxu0 (!%p247_p10), %v1929_v0  ;;  %1596 = vmatprep.mubr.msk.bf16.mxu0 (!%p247_p10), %vm1930_vm0, %v1929_v0  ;;  %323 = vst.msk [vmem:[#allocation3] sm:$0xff] (!%p247_p10), %vm322_vm1, %v1931_v9  ;;  %324 = vst.msk [vmem:[#allocation3 + $0x8] sm:$0xff] (!%p247_p10), %vm322_vm1, %v1931_v9  ;;  %vm507_vm2 = vcmask (!%p247_p10), 64512   ;;  %v1932_v30 = vmov (!%p247_p10), 0   ;;  %vm636_vm3 = vcmask (!%p247_p10), 1043456  }
  0x10   : > { %1600 = vmatprep.subr.bf16.mxu1 (!%p247_p10), %v1929_v0  ;;  %1602 = vmatprep.mubr.msk.bf16.mxu1 (!%p247_p10), %vm1930_vm0, %v1929_v0  ;;  %325 = vst.msk [vmem:[#allocation3 + $0x10] sm:$0xff] (!%p247_p10), %vm322_vm1, %v1931_v9  ;;  %326 = vst.msk [vmem:[#allocation3 + $0x18] sm:$0xff] (!%p247_p10), %vm322_vm1, %v1931_v9  ;;  %s1853_s25 = sshll.u32 (!%p247_p10), %s1933_s24, 4  ;;  %s1854_s25 = int_to_ptr.vmem [resolvable:$false] %s1853_s25 }
  0x11   : > { %327 = vst.msk [vmem:[#allocation4] sm:$0xff] (!%p247_p10), %vm322_vm1, %v1929_v0  ;;  %328 = vst.msk [vmem:[#allocation4 + $0x8] sm:$0xff] (!%p247_p10), %vm322_vm1, %v1929_v0  ;;  %1791 = vset.pattern.permute.xlu0 (!%p247_p10), %v1932_v30  ;;  %1792 = vset.pattern.permute.xlu1 (!%p247_p10), %v1932_v30  ;;  %s1855_s27 = scalar_lea.vmem (!%p247_p10), %s1854_s25, 256 }
  0x12   : > { %329 = vst.msk [vmem:[#allocation4 + $0x10] sm:$0xff] (!%p247_p10), %vm322_vm1, %v1929_v0  ;;  %330 = vst.msk [vmem:[#allocation4 + $0x18] sm:$0xff] (!%p247_p10), %vm322_vm1, %v1929_v0 }
  0x16   : > { %s294_s7 = scalar_select %p293_p11, %s1919_s21, 1  ;;  %v2074_v31 = vld [vmem:[#allocation3] sm:$0xff]  ;;  %v2076_v32 = vld [vmem:[#allocation3 + $0x8] sm:$0xff] }
  0x17   : > { %v2093_v39 = vld [vmem:[#allocation3 + $0x10] sm:$0xff]  ;;  %v2095_v40 = vld [vmem:[#allocation3 + $0x18] sm:$0xff] }
  0x18   : > { %s2027_s8 = sshll.u32 %s294_s7, 4  ;;  %s290_s7 = sand.u32 1, %s1911_s19  }
  0x19   : > { %s308_s11 = scalar_lea.vmem %s2349_s1, %s2027_s8  ;;  %s300_s14 = scalar_lea.vmem %s2348_s0, %s2027_s8 }
  0x1a   : > { %v339_v1 = vld [vmem:[%s308_s11] sm:$0xf]  ;;  %v340_v2 = vld [vmem:[%s308_s11 + $0x4] sm:$0xf]  ;;  %v341_v5 = vld [vmem:[%s308_s11 + $0x8] sm:$0xf]  ;;  %s316_s17 = scalar_lea.vmem %s2350_s2, %s2027_s8 }
  0x1b   : > { %1595 = vmatpush3.bf16.xpose.msra.mxu0 %v339_v1  ;;  %1601 = vmatpush3.bf16.xpose.msra.mxu1 %v340_v2  ;;  %v335_v3 = vld [vmem:[%s300_s14] sm:$0xf]  ;;  %v336_v4 = vld [vmem:[%s300_s14 + $0x4] sm:$0xf]  ;;  %v342_v6 = vld [vmem:[%s308_s11 + $0xc] sm:$0xf] }
  0x1c   : > { %1606 = vmatprep.subr.bf16.mxu0 %v1929_v0  ;;  %1612 = vmatprep.subr.bf16.mxu1 %v1929_v0  ;;  %v337_v7 = vld [vmem:[%s300_s14 + $0x8] sm:$0xf]  ;;  %v338_v8 = vld [vmem:[%s300_s14 + $0xc] sm:$0xf]  ;;  %v629_v47 = vld [vmem:[%s316_s17] sm:$0xf] }
  0x1d   : > { %v638_v48 = vsel %vm636_vm3, %v629_v47, 0  ;;  %v631_v49 = vld [vmem:[%s316_s17 + $0x8] sm:$0xf]  ;;  %v630_v51 = vld [vmem:[%s316_s17 + $0x4] sm:$0xf]  ;;  %s1443_s8 = sshll.u32 %s290_s7, 3 }
  0x1e   : > { %v730_v50 = vsel %vm636_vm3, %v631_v49, 0  ;;  %v684_v52 = vsel %vm636_vm3, %v630_v51, 0  ;;  %v632_v53 = vld [vmem:[%s316_s17 + $0xc] sm:$0xf]  ;;  %v1804_v51 = vld [vmem:[%s2351_s3 + $0xa0] sm:$0xff]   ;;  %s1536_s11 = sshll.u32 %s1919_s21, 7 }
  0x1f   : > { %v776_v54 = vsel %vm636_vm3, %v632_v53, 0  ;;  %s292_s12 = scalar_lea.vmem [#allocation5], %s1443_s8  ;;  %s2301_s16 = scalar_lea.hbm %s2353_s5, %s1536_s11 }
  0x20   : > { %s1325_s13 = sshll.u32 %s292_s12, 4  ;;  %s1311_s21 = scalar_lea.sflag [#allocation6], %s290_s7  ;;  %s2303_s13 = int_to_ptr.vmem [resolvable:$true] %s1325_s13 }
  0x21   : > { %s1849_s17 = scalar_lea.vmem %s2303_s13, 128  ;;  %p1856_p1 = scmp.lt.s32.totalorder %s2303_s13, %s1854_s25 }
  0x22   : > { %1597 = vmatmul.mubr.bf16.vlgmr.msra.gmra.mrb[0].mxu0 %v335_v3  ;;  %1603 = vmatmul.mubr.bf16.vlgmr.msra.gmra.mrb[0].mxu1 %v336_v4  ;;  %p1850_p12 = scmp.ne.s32.totalorder %s2303_s13, %s1849_s17  ;;  %p1857_p2 = scmp.lt.s32.totalorder %s1855_s27, %s1849_s17 }
  0x23   : > { %1607 = vmatpush3.bf16.xpose.msra.mxu0 %v341_v5  ;;  %1608 = vmatprep.mubr.msk.bf16.mxu0 %vm1930_vm0, %v1929_v0 }
  0x24   : > { %1613 = vmatpush3.bf16.xpose.msra.mxu1 %v342_v6  ;;  %1614 = vmatprep.mubr.msk.bf16.mxu1 %vm1930_vm0, %v1929_v0  ;;  %p1851_p13 = pnand %p1850_p12, %p2004_p4  ;;  %p1858_p3 = por %p1857_p2, %p1856_p1 }
  0x25   : > { %1618 = vmatprep.subr.bf16.mxu0 %v1929_v0  ;;  %1624 = vmatprep.subr.bf16.mxu1 %v1929_v0 }
  0x26   : > { %p1852_p0 = pneg %p1851_p13 }
  0x28   : > { %p1859_p5 = pnand %p1858_p3, %p1852_p0 }
  0x2a   : > { %1609 = vmatmul.mubr.bf16.vlgmr.msra.gmra.mrb[4].mxu0 %v337_v7 }
  0x2b   : > { %1615 = vmatmul.mubr.bf16.vlgmr.msra.gmra.mrb[4].mxu1 %v338_v8  ;;  %1620 = vmatprep.mubr.msk.bf16.mxu0 %vm1930_vm0, %v1929_v0 }
  0x2c   : > { %1626 = vmatprep.mubr.msk.bf16.mxu1 %vm1930_vm0, %v1929_v0  ;;  %1619 = vmatpush3.bf16.msra.mxu0 %v638_v48 }
  0x2d   : > { %1630 = vmatprep.subr.bf16.mxu0 %v1929_v0  ;;  %1625 = vmatpush3.bf16.msra.mxu1 %v684_v52 }
  0x2e   : > { %1636 = vmatprep.subr.bf16.mxu1 %v1929_v0 }
  0xf5   : > { %v2061_v10 = vpop.f32.mrb[0].mxu0  ;;  %v2063_v11 = vpop.f32.mrb[0].mxu1 }
  0xf6   : > { %v1598_v12 = vpop.f32.mrb[1].mxu0  ;;  %v508_v13 = vsel %vm507_vm2, %v2061_v10, -inf  ;;  %v1604_v14 = vpop.f32.mrb[1].mxu1  ;;  %v511_v15 = vsel %vm507_vm2, %v2063_v11, -inf }
  0xf7   : > { %509 = vmax.xlane.f32.xlu0 %v508_v13  ;;  %v380_v16 = vpop.f32.mrb[2].mxu0  ;;  %512 = vmax.xlane.f32.xlu1 %v511_v15  ;;  %v420_v17 = vpop.f32.mrb[2].mxu1 }
  0xf8   : > { %v1599_v18 = vpop.f32.mrb[3].mxu0  ;;  %v1605_v19 = vpop.f32.mrb[3].mxu1  ;;  %v1793_v16 = vld [vmem:[%s2351_s3] sm:$0xff]  }
  0xf9   : > { %v1796_v17 = vld [vmem:[%s2351_s3 + $0x80] sm:$0xff]   ;;  %v1794_v18 = vld [vmem:[%s2351_s3 + $0x8] sm:$0xff]  }
  0xfa   : > { %v1798_v19 = vld [vmem:[%s2351_s3 + $0x88] sm:$0xff]  }
  0xfd   : > { %v457_v20 = vpop.f32.mrb[4].mxu0 }
  0xfe   : > { %v1610_v21 = vpop.f32.mrb[5].mxu0  ;;  %v514_v22 = vsel %vm507_vm2, %v457_v20, -inf  ;;  %v2070_v23 = vpop.f32.mrb[4].mxu1 }
  0xff   : > { %515 = vmax.xlane.f32.xlu0 %v514_v22  ;;  %v460_v24 = vpop.f32.mrb[6].mxu0  ;;  %v517_v25 = vsel %vm507_vm2, %v2070_v23, -inf  ;;  %v1616_v26 = vpop.f32.mrb[5].mxu1  ;;  %v1800_v21 = vld [vmem:[%s2351_s3 + $0x90] sm:$0xff]   ;;  %v1797_v22 = vld [vmem:[%s2351_s3 + $0x18] sm:$0xff]  }
 0x100   : > { %v1611_v27 = vpop.f32.mrb[7].mxu0  ;;  %518 = vmax.xlane.f32.xlu1 %v517_v25  ;;  %v500_v28 = vpop.f32.mrb[6].mxu1 }
 0x101   : > { %v1617_v29 = vpop.f32.mrb[7].mxu1  ;;  %v568_v28 = vld [vmem:[#allocation4] sm:$0xff] }
 0x184   : > { %v510_v33 = vpop.xlane.xlu0 %509  ;;  %v513_v34 = vpop.xlane.xlu1 %512 }
 0x185   : > { %v2079_v35 = vmax.f32 %v2074_v31, %v510_v33  ;;  %v2082_v36 = vmax.f32 %v2076_v32, %v513_v34 }
 0x187   : > { %v524_v37 = vsub.f32 %v2074_v31, %v2079_v35  ;;  %826 = vst.msk [vmem:[#allocation3] sm:$0xff] %vm322_vm1, %v2079_v35  ;;  %538 = vperm.xlu0 %1791, %v2079_v35   ;;  %v525_v38 = vsub.f32 %v2076_v32, %v2082_v36  ;;  %827 = vst.msk [vmem:[#allocation3 + $0x8] sm:$0xff] %vm322_vm1, %v2082_v36  ;;  %v570_v35 = vld [vmem:[#allocation4 + $0x10] sm:$0xff]  ;;  %v569_v32 = vld [vmem:[#allocation4 + $0x8] sm:$0xff] }
 0x189   : > { %v528_v24 = vmul.f32 1.442695, %v524_v37  ;;  %v530_v26 = vmul.f32 1.442695, %v525_v38 }
 0x18c   : > { %v516_v41 = vpop.xlane.xlu0 %515 }
 0x18d   : > { %v2098_v42 = vmax.f32 %v2093_v39, %v516_v41  ;;  %v519_v43 = vpop.xlane.xlu1 %518 }
 0x18e   : > { %v2101_v44 = vmax.f32 %v2095_v40, %v519_v43  ;;  %v1802_v43 = vld [vmem:[%s2351_s3 + $0x98] sm:$0xff]  }
 0x18f   : > { %v526_v45 = vsub.f32 %v2093_v39, %v2098_v42  ;;  %828 = vst.msk [vmem:[#allocation3 + $0x10] sm:$0xff] %vm322_vm1, %v2098_v42  ;;  %548 = vperm.xlu1 %1792, %v2098_v42  }
 0x190   : > { %v527_v46 = vsub.f32 %v2095_v40, %v2101_v44  ;;  %829 = vst.msk [vmem:[#allocation3 + $0x18] sm:$0xff] %vm322_vm1, %v2101_v44  ;;  %v1801_v40 = vld [vmem:[%s2351_s3 + $0x28] sm:$0xff]  }
 0x191   : > { %v532_v25 = vmul.f32 1.442695, %v526_v45 }
 0x192   : > { %v534_v29 = vmul.f32 1.442695, %v527_v46  ;;  %v571_v46 = vld [vmem:[#allocation4 + $0x18] sm:$0xff] }
 0x193   : > { %543 = vperm.xlu1 %1792, %v2082_v36  }
 0x197   : > { %553 = vperm.xlu1 %1792, %v2101_v44  }
 0x206   : > { %v539_v55 = vpop.permute.xlu0 %538 }
 0x207   : > { %v556_v56 = vsub.f32 %v2061_v10, %v539_v55  ;;  %v1806_v55 = vld [vmem:[%s2351_s3 + $0xa8] sm:$0xff]  }
 0x209   : > { %v560_v57 = vmul.f32 1.442695, %v556_v56 }
 0x20b   : > { %1825 = vpow2.f32 %v560_v57  ;;  %v1807_v57 = vld [vmem:[%s2351_s3 + $0xb0] sm:$0xff]  }
 0x20e   : > { %v549_v58 = vpop.permute.xlu1 %548 }
 0x20f   : > { %v558_v59 = vsub.f32 %v457_v20, %v549_v58  ;;  %v1795_v20 = vld [vmem:[%s2351_s3 + $0x10] sm:$0xff]  }
 0x211   : > { %v564_v60 = vmul.f32 1.442695, %v558_v59  ;;  %v1809_v59 = vld [vmem:[%s2351_s3 + $0xb8] sm:$0xff]  }
 0x212   : > { %v544_v61 = vpop.permute.xlu1 %543 }
 0x213   : > { %1827 = vpow2.f32 %v564_v60  ;;  %v557_v62 = vsub.f32 %v2063_v11, %v544_v61 }
 0x215   : > { %v1826_v63 = vpop.eup %1825  ;;  %v562_v1 = vmul.f32 1.442695, %v557_v62 }
 0x216   : > { %v554_v2 = vpop.permute.xlu1 %553  ;;  %v576_v3 = vsel %vm507_vm2, %v1826_v63, 0.0  ;;  %v625_v4 = vpack.c.bf16 %v1826_v63, %v1826_v63 }
 0x217   : > { %1829 = vpow2.f32 %v562_v1  ;;  %v559_v5 = vsub.f32 %v2070_v23, %v554_v2  ;;  %577 = vadd.xlane.f32.xlu1 %v576_v3  ;;  %v1799_v23 = vld [vmem:[%s2351_s3 + $0x20] sm:$0xff]  }
 0x218   : > { %1621 = vmatmul.mubr.msk.bf16.vlgmr.msra.gmra.mrb[8].mxu0 %vm507_vm2, %v625_v4 }
 0x219   : > { %v566_v6 = vmul.f32 1.442695, %v559_v5  ;;  %1631 = vmatpush3.bf16.msra.mxu0 %v730_v50  ;;  %1632 = vmatprep.mubr.msk.bf16.mxu0 %vm1930_vm0, %v1929_v0  ;;  %v1803_v50 = vld [vmem:[%s2351_s3 + $0x30] sm:$0xff]  }
 0x21a   : > { %1682 = vmatprep.subr.bf16.mxu0 %v1929_v0 }
 0x21b   : > { %1831 = vpow2.f32 %v566_v6 }
 0x21c   : > { %1833 = vpow2.f32 %v528_v24  ;;  %v1810_v24 = vld [vmem:[%s2351_s3 + $0x48] sm:$0xff]  }
 0x21d   : > { %v1828_v7 = vpop.eup %1827  ;;  %1835 = vpow2.f32 %v532_v25 }
 0x21e   : > { %v582_v8 = vsel %vm507_vm2, %v1828_v7, 0.0  ;;  %v627_v9 = vpack.c.bf16 %v1828_v7, %v1828_v7  ;;  %1837 = vpow2.f32 %v530_v26 }
 0x21f   : > { %583 = vadd.xlane.f32.xlu0 %v582_v8  ;;  %1839 = vpow2.f32 %v534_v29  ;;  %v1812_v29 = vld [vmem:[%s2351_s3 + $0xc0] sm:$0xff]  }
 0x220   : > { %1633 = vmatmul.mubr.msk.bf16.vlgmr.msra.gmra.mrb[12].mxu0 %vm507_vm2, %v627_v9 }
 0x221   : > { %v1830_v10 = vpop.eup %1829  ;;  %1698 = vmatprep.mubr.msk.bf16.mxu0 %vm1930_vm0, %v1929_v0  ;;  %1683 = vmatpush3.bf16.msra.mxu0 %v1796_v17 }
 0x222   : > { %v579_v11 = vsel %vm507_vm2, %v1830_v10, 0.0  ;;  %v626_v12 = vpack.c.bf16 %v1830_v10, %v1830_v10  ;;  %1684 = vmatprep.subr.bf16.mxu0 %v1929_v0 }
 0x223   : > { %580 = vadd.xlane.f32.xlu1 %v579_v11 }
 0x224   : > { %1627 = vmatmul.mubr.msk.bf16.vlgmr.msra.gmra.mrb[8].mxu1 %vm507_vm2, %v626_v12 }
 0x225   : > { %v1832_v13 = vpop.eup %1831  ;;  %1637 = vmatpush3.bf16.msra.mxu1 %v776_v54  ;;  %1638 = vmatprep.mubr.msk.bf16.mxu1 %vm1930_vm0, %v1929_v0  ;;  %v1805_v54 = vld [vmem:[%s2351_s3 + $0x38] sm:$0xff]  }
 0x226   : > { %v585_v14 = vsel %vm507_vm2, %v1832_v13, 0.0  ;;  %1642 = vmatprep.subr.bf16.mxu1 %v1929_v0  ;;  %v628_v15 = vpack.c.bf16 %v1832_v13, %v1832_v13  ;;  %1685 = vmatpush3.bf16.msra.mxu0 %v1798_v19  ;;  %v1834_v27 = vpop.eup %1833 }
 0x227   : > { %586 = vadd.xlane.f32.xlu1 %v585_v14  ;;  %1686 = vmatprep.subr.bf16.mxu0 %v1929_v0  ;;  %v572_v30 = vmul.f32 %v1834_v27, %v568_v28  ;;  %v1836_v34 = vpop.eup %1835  ;;  %v1811_v28 = vld [vmem:[%s2351_s3 + $0x50] sm:$0xff]  }
 0x228   : > { %v574_v37 = vmul.f32 %v1836_v34, %v570_v35  ;;  %v1838_v39 = vpop.eup %1837  ;;  %v1815_v35 = vld [vmem:[%s2351_s3 + $0x60] sm:$0xff]  }
 0x229   : > { %v573_v42 = vmul.f32 %v1838_v39, %v569_v32  ;;  %v1840_v44 = vpop.eup %1839  ;;  %v1818_v32 = vld [vmem:[%s2351_s3 + $0xd8] sm:$0xff]  }
 0x22a   : > { %1687 = vmatpush3.bf16.msra.mxu0 %v1800_v21  ;;  %v575_v48 = vmul.f32 %v1840_v44, %v571_v46  ;;  %v1808_v21 = vld [vmem:[%s2351_s3 + $0x40] sm:$0xff]   ;;  %v1821_v46 = vld [vmem:[%s2351_s3 + $0x78] sm:$0xff]  }
 0x22b   : > { %1688 = vmatprep.subr.bf16.mxu0 %v1929_v0 }
 0x22c   : > { %1639 = vmatmul.mubr.msk.bf16.vlgmr.msra.gmra.mrb[12].mxu1 %vm507_vm2, %v628_v15 }
 0x22d   : > { %1658 = vmatprep.mubr.msk.bf16.mxu1 %vm1930_vm0, %v1929_v0  ;;  %1643 = vmatpush3.bf16.msra.mxu1 %v1793_v16 }
 0x22e   : > { %1644 = vmatprep.subr.bf16.mxu1 %v1929_v0  ;;  %1689 = vmatpush3.bf16.msra.mxu0 %v1802_v43 }
 0x22f   : > { %1690 = vmatprep.subr.bf16.mxu0 %v1929_v0 }
 0x231   : > { %1645 = vmatpush3.bf16.msra.mxu1 %v1794_v18 }
 0x232   : > { %1646 = vmatprep.subr.bf16.mxu1 %v1929_v0  ;;  %1691 = vmatpush3.bf16.msra.mxu0 %v1804_v51 }
 0x233   : > { %1692 = vmatprep.subr.bf16.mxu0 %v1929_v0 }
 0x235   : > { %1647 = vmatpush3.bf16.msra.mxu1 %v1795_v20 }
 0x236   : > { %1648 = vmatprep.subr.bf16.mxu1 %v1929_v0  ;;  %1693 = vmatpush3.bf16.msra.mxu0 %v1806_v55 }
 0x237   : > { %1694 = vmatprep.subr.bf16.mxu0 %v1929_v0 }
 0x239   : > { %1649 = vmatpush3.bf16.msra.mxu1 %v1797_v22 }
 0x23a   : > { %1650 = vmatprep.subr.bf16.mxu1 %v1929_v0  ;;  %1695 = vmatpush3.bf16.msra.mxu0 %v1807_v57 }
 0x23b   : > { %1696 = vmatprep.subr.bf16.mxu0 %v1929_v0 }
 0x23d   : > { %1651 = vmatpush3.bf16.msra.mxu1 %v1799_v23 }
 0x23e   : > { %1652 = vmatprep.subr.bf16.mxu1 %v1929_v0  ;;  %1697 = vmatpush3.bf16.msra.mxu0 %v1809_v59 }
 0x23f   : > { %1702 = vmatprep.subr.bf16.mxu0 %v1929_v0 }
 0x241   : > { %1653 = vmatpush3.bf16.msra.mxu1 %v1801_v40  ;;  %v1820_v40 = vld [vmem:[%s2351_s3 + $0xe0] sm:$0xff]  }
 0x242   : > { %1654 = vmatprep.subr.bf16.mxu1 %v1929_v0 }
 0x245   : > { %1655 = vmatpush3.bf16.msra.mxu1 %v1803_v50  ;;  %v1823_v50 = vld [vmem:[%s2351_s3 + $0xf0] sm:$0xff]  }
 0x246   : > { %1656 = vmatprep.subr.bf16.mxu1 %v1929_v0 }
 0x249   : > { %1657 = vmatpush3.bf16.msra.mxu1 %v1805_v54  ;;  %v1824_v54 = vld [vmem:[%s2351_s3 + $0xf8] sm:$0xff]  }
 0x24a   : > { %1662 = vmatprep.subr.bf16.mxu1 %v1929_v0 }
 0x2a4   : > { %v578_v31 = vpop.xlane.xlu1 %577 }
 0x2a5   : > { %v588_v33 = vadd.f32 %v578_v31, %v572_v30  ;;  %v1813_v31 = vld [vmem:[%s2351_s3 + $0x58] sm:$0xff]  }
 0x2a7   : > { %593 = vst.msk [vmem:[#allocation4] sm:$0xff] %vm322_vm1, %v588_v33  ;;  %v1814_v33 = vld [vmem:[%s2351_s3 + $0xc8] sm:$0xff]  }
 0x2ac   : > { %v584_v41 = vpop.xlane.xlu0 %583 }
 0x2ad   : > { %v590_v36 = vadd.f32 %v584_v41, %v574_v37  ;;  %v1816_v37 = vld [vmem:[%s2351_s3 + $0xd0] sm:$0xff]   ;;  %v1817_v41 = vld [vmem:[%s2351_s3 + $0x68] sm:$0xff]  }
 0x2ae   : > { %v835_v38 = vld [vmem:[#allocation4] sm:$0xff] }
 0x2af   : > { %595 = vst.msk [vmem:[#allocation4 + $0x10] sm:$0xff] %vm322_vm1, %v590_v36  ;;  %838 = vperm.xlu1 %1792, %v835_v38  }
 0x2b0   : > { %v581_v45 = vpop.xlane.xlu1 %580 }
 0x2b1   : > { %v589_v47 = vadd.f32 %v581_v45, %v573_v42  ;;  %v1819_v42 = vld [vmem:[%s2351_s3 + $0x70] sm:$0xff]  }
 0x2b3   : > { %594 = vst.msk [vmem:[#allocation4 + $0x8] sm:$0xff] %vm322_vm1, %v589_v47  ;;  %603 = vperm.xlu1 %1792, %v1834_v27   ;;  %v1822_v47 = vld [vmem:[%s2351_s3 + $0xe8] sm:$0xff]  }
 0x2b4   : > { %v587_v49 = vpop.xlane.xlu1 %586 }
 0x2b5   : > { %v591_v52 = vadd.f32 %v587_v49, %v575_v48 }
 0x2b6   : > { %v1076_v53 = vld [vmem:[#allocation4 + $0x10] sm:$0xff] }
 0x2b7   : > { %596 = vst.msk [vmem:[#allocation4 + $0x18] sm:$0xff] %vm322_vm1, %v591_v52  ;;  %613 = vperm.xlu1 %1792, %v1836_v34   ;;  %1079 = vperm.xlu0 %1791, %v1076_v53  }
 0x2ba   : > { %v958_v56 = vld [vmem:[#allocation4 + $0x8] sm:$0xff] }
 0x2bb   : > { %961 = vperm.xlu1 %1792, %v958_v56  }
 0x2be   : > { %v1194_v58 = vld [vmem:[#allocation4 + $0x18] sm:$0xff] }
 0x2bf   : > { %608 = vperm.xlu1 %1792, %v1838_v39   ;;  %1197 = vperm.xlu0 %1791, %v1194_v58  }
 0x2c3   : > { %618 = vperm.xlu0 %1791, %v1840_v44  }
 0x2eb   : > { %v674_v60 = vpop.f32.mrb[8].mxu0 }
 0x2ec   : > { %v1622_v61 = vpop.f32.mrb[9].mxu0 }
 0x2ed   : > { %v677_v62 = vpop.f32.mrb[10].mxu0  ;;  %v1462_v61 = vld [vmem:[%s2352_s4] ss:$0 sm:$0xff] }
 0x2ee   : > { %v1623_v63 = vpop.f32.mrb[11].mxu0 }
 0x2f3   : > { %v766_v1 = vpop.f32.mrb[12].mxu0 }
 0x2f4   : > { %v1634_v2 = vpop.f32.mrb[13].mxu0 }
 0x2f5   : > { %v769_v3 = vpop.f32.mrb[14].mxu0 }
 0x2f6   : > { %v1635_v4 = vpop.f32.mrb[15].mxu0 }
 0x2f7   : > { %v2221_v5 = vpop.f32.mrb[8].mxu1 }
 0x2f8   : > { %v1628_v6 = vpop.f32.mrb[9].mxu1 }
 0x2f9   : > { %v723_v7 = vpop.f32.mrb[10].mxu1 }
 0x2fa   : > { %v1629_v8 = vpop.f32.mrb[11].mxu1 }
 0x2ff   : > { %v2223_v9 = vpop.f32.mrb[12].mxu1 }
 0x300   : > { %v1640_v10 = vpop.f32.mrb[13].mxu1 }
 0x301   : > { %v815_v11 = vpop.f32.mrb[14].mxu1 }
 0x302   : > { %v1641_v12 = vpop.f32.mrb[15].mxu1 }
 0x32e   : > { %v839_v13 = vpop.permute.xlu1 %838 }
 0x32f   : > { %1841 = vrcp.f32 %v839_v13 }
 0x332   : > { %v604_v14 = vpop.permute.xlu1 %603 }
 0x333   : > { %v621_v15 = vmul.f32 0.0, %v604_v14 }
 0x335   : > { %v818_v17 = vadd.f32 %v674_v60, %v621_v15 }
 0x336   : > { %v1080_v16 = vpop.permute.xlu0 %1079  ;;  %v614_v19 = vpop.permute.xlu1 %613 }
 0x337   : > { %1843 = vrcp.f32 %v1080_v16  ;;  %v623_v23 = vmul.f32 0.0, %v614_v19 }
 0x339   : > { %v1842_v18 = vpop.eup %1841  ;;  %v820_v25 = vadd.f32 %v766_v1, %v623_v23 }
 0x33a   : > { %v842_v20 = vmul.f32 %v1842_v18, %v818_v17  ;;  %v962_v34 = vpop.permute.xlu1 %961 }
 0x33b   : > { %1845 = vrcp.f32 %v962_v34 }
 0x33c   : > { %v843_v22 = vpack.c.bf16 %v842_v20, %v842_v20 }
 0x33e   : > { %1659 = vmatmul.mubr.bf16.vlgmr.msra.gmra.mrb[16].mxu1 %v843_v22  ;;  %v609_v39 = vpop.permute.xlu1 %608  ;;  %v1198_v36 = vpop.permute.xlu0 %1197 }
 0x33f   : > { %1663 = vmatpush3.bf16.msra.mxu1 %v1808_v21  ;;  %1678 = vmatprep.mubr.msk.bf16.mxu1 %vm1930_vm0, %v1929_v0  ;;  %v622_v38 = vmul.f32 0.0, %v609_v39  ;;  %1847 = vrcp.f32 %v1198_v36 }
 0x340   : > { %1664 = vmatprep.subr.bf16.mxu1 %v1929_v0 }
 0x341   : > { %v1844_v26 = vpop.eup %1843  ;;  %v819_v44 = vadd.f32 %v2221_v5, %v622_v38 }
 0x342   : > { %v1083_v27 = vmul.f32 %v1844_v26, %v820_v25  ;;  %v619_v45 = vpop.permute.xlu0 %618 }
 0x343   : > { %1665 = vmatpush3.bf16.msra.mxu1 %v1810_v24  ;;  %v624_v49 = vmul.f32 0.0, %v619_v45 }
 0x344   : > { %1666 = vmatprep.subr.bf16.mxu1 %v1929_v0  ;;  %v1084_v30 = vpack.c.bf16 %v1083_v27, %v1083_v27 }
 0x345   : > { %v1846_v43 = vpop.eup %1845  ;;  %v821_v53 = vadd.f32 %v2223_v9, %v624_v49 }
 0x346   : > { %1699 = vmatmul.mubr.bf16.vlgmr.msra.gmra.mrb[16].mxu0 %v1084_v30  ;;  %v965_v48 = vmul.f32 %v1846_v43, %v819_v44 }
 0x347   : > { %1667 = vmatpush3.bf16.msra.mxu1 %v1811_v28  ;;  %1703 = vmatpush3.bf16.msra.mxu0 %v1812_v29 }
 0x348   : > { %1668 = vmatprep.subr.bf16.mxu1 %v1929_v0  ;;  %1704 = vmatprep.subr.bf16.mxu0 %v1929_v0  ;;  %v966_v51 = vpack.c.bf16 %v965_v48, %v965_v48 }
 0x349   : > { %1718 = vmatprep.mubr.msk.bf16.mxu0 %vm1930_vm0, %v1929_v0  ;;  %v1848_v52 = vpop.eup %1847 }
 0x34a   : > { %v1201_v55 = vmul.f32 %v1848_v52, %v821_v53 }
 0x34b   : > { %1669 = vmatpush3.bf16.msra.mxu1 %v1813_v31  ;;  %1705 = vmatpush3.bf16.msra.mxu0 %v1814_v33 }
 0x34c   : > { %1670 = vmatprep.subr.bf16.mxu1 %v1929_v0  ;;  %1706 = vmatprep.subr.bf16.mxu0 %v1929_v0  ;;  %v1202_v56 = vpack.c.bf16 %v1201_v55, %v1201_v55 }
 0x34f   : > { %1671 = vmatpush3.bf16.msra.mxu1 %v1815_v35  ;;  %1707 = vmatpush3.bf16.msra.mxu0 %v1816_v37 }
 0x350   : > { %1672 = vmatprep.subr.bf16.mxu1 %v1929_v0  ;;  %1708 = vmatprep.subr.bf16.mxu0 %v1929_v0 }
 0x353   : > { %1673 = vmatpush3.bf16.msra.mxu1 %v1817_v41  ;;  %1709 = vmatpush3.bf16.msra.mxu0 %v1818_v32 }
 0x354   : > { %1674 = vmatprep.subr.bf16.mxu1 %v1929_v0  ;;  %1710 = vmatprep.subr.bf16.mxu0 %v1929_v0 }
 0x357   : > { %1675 = vmatpush3.bf16.msra.mxu1 %v1819_v42  ;;  %1711 = vmatpush3.bf16.msra.mxu0 %v1820_v40 }
 0x358   : > { %1676 = vmatprep.subr.bf16.mxu1 %v1929_v0  ;;  %1712 = vmatprep.subr.bf16.mxu0 %v1929_v0 }
 0x35b   : > { %1677 = vmatpush3.bf16.msra.mxu1 %v1821_v46  ;;  %1713 = vmatpush3.bf16.msra.mxu0 %v1822_v47 }
 0x35c   : > { %1714 = vmatprep.subr.bf16.mxu0 %v1929_v0 }
 0x35e   : > { %1679 = vmatmul.mubr.bf16.vlgmr.msra.gmra.mrb[16].mxu1 %v966_v51 }
 0x35f   : > { %1715 = vmatpush3.bf16.msra.mxu0 %v1823_v50 }
 0x360   : > { %1716 = vmatprep.subr.bf16.mxu0 %v1929_v0 }
 0x363   : > { %1717 = vmatpush3.bf16.msra.mxu0 %v1824_v54 }
 0x366   : > { %1719 = vmatmul.mubr.bf16.vlgmr.msra.gmra.mrb[16].mxu0 %v1202_v56 }
 0x431   : > { %v1066_v57 = vpop.f32.mrb[16].mxu1 }
 0x432   : > { %v1680_v58 = vpop.f32.mrb[17].mxu1  ;;  %v1722_v62 = vadd.f32 %v1462_v61, %v1066_v57 }
 0x433   : > { %v1069_v59 = vpop.f32.mrb[18].mxu1 }
 0x434   : > { %v1681_v60 = vpop.f32.mrb[19].mxu1 }
 0x439   : > { %v1302_v63 = vpop.f32.mrb[16].mxu0 }
 0x43a   : > { %v1723_v0 = vadd.f32 %v1722_v62, %v1302_v63  ;;  %v1720_v1 = vpop.f32.mrb[17].mxu0 }
 0x43b   : > { %v1305_v2 = vpop.f32.mrb[18].mxu0 }
 0x43c   : > { %1309 = vst [vmem:[%s292_s12] sm:$0xff] %v1723_v0  ;;  %v1721_v3 = vpop.f32.mrb[19].mxu0 }
 0x43d   : > { %1862 = shalt.err (!%p1859_p5)
}
 0x43e   : > { %s1863_s29 = scalar_lea.hbm %s2301_s16, 128  ;;  %s1867_s9 = scalar_lea.hbm %s2353_s5, 256 }
 0x43f   : > { %p1864_p6 = scmp.ne.s32.totalorder %s2301_s16, %s1863_s29  ;;  %p1868_p10 = scmp.lt.u32.totalorder %s2301_s16, %s2353_s5 }
 0x440   : > { %p1869_p11 = scmp.lt.u32.totalorder %s1867_s9, %s1863_s29  ;;  %p1871_p13 = scmp.lt.u32.totalorder %s1863_s29, %s2301_s16 }
 0x441   : > { %p1865_p7 = pnand %p1864_p6, %p2004_p4 }
 0x442   : > { %p1870_p12 = por %p1869_p11, %p1868_p10 }
 0x443   : > { %p1866_p9 = pneg %p1865_p7 }
 0x444   : > { %p1872_p0 = por %p1871_p13, %p1870_p12 }
 0x446   : > { %p1873_p1 = pnand %p1872_p0, %p1866_p9 }
 0x448   : > { %1876 = shalt.err (!%p1873_p1)
}
 0x449   : > { %1732 = dma.vmem_to_hbm [thread:$0]  (%p2004_p4), %s2303_s13, 128, %s2301_s16, %s1311_s21  }
 0x44a PF: > { %p1738_p2 = scmp.ge.s32.totalorder %s1927_s23, 2  ;;  %s1337_s12 = sand.u32 1, %s1907_s18  }
 0x44b   : > { %s1338_s14 = scalar_lea.sflag [#allocation6], %s1337_s12 }
 0x44c   : > { %p1735_p3 = pnand %p1738_p2, %p2011_p8 }
 0x44e   : > { %1902 = dma.done.wait (!%p1735_p3), %s1338_s14, 128  }
 0x44f   : > { %1904 = vsyncadd (!%p1735_p3), %s1338_s14, 4294967168  ;;  %s18_s23 = sadd.s32 1, %s1927_s23   ;;  %s2356_s18 = smov %s1911_s19 }
 0x450   : > { %p15_p5 = scmp.ge.s32.totalorder %s18_s23, 4   ;;  %s2357_s19 = smov %s1915_s20 }
 0x451   : > { %s2358_s20 = smov %s2017_s6  ;;  %s2359_s21 = smov %s1923_s22 }
 0x452   : > { %s2360_s22 = smov %s2362_s26  ;;  %17 = sbr.rel (!%p15_p5) target bundleno = 4 (0x4), region = 98 }
 0x459   :  { %1343 = vsyncpa [#allocation6], 1 }
 0x45a   :  { %1345 = vsyncpa [#allocation6 + $0x1], 1 }

// kernel: multi_head_attention.2
= control target key start
LH: loop header
LB: loop body
LE: loop exit
PB: predicated region body
PF: predicated region fallthrough
CT: control target
= control target key end

     0   :  { %s2716_s24 = smov 0   ;;  %s2718_s25 = smov 0   ;;  %s3218_s0 = inlined_call_operand.vmem [shape: bf16[2,8,128], index: 0, kind: input, shape index: {}]   ;;  %s3219_s1 = inlined_call_operand.vmem [shape: bf16[2,8,128], index: 1, kind: input, shape index: {}]   ;;  %s3220_s2 = inlined_call_operand.vmem [shape: bf16[2,8,128], index: 2, kind: input, shape index: {}]   ;;  %s3221_s3 = inlined_call_operand.vmem [shape: bf16[4,128,128], index: 3, kind: input, shape index: {}]   ;;  %s3222_s4 = inlined_call_operand.vmem [shape: bf16[4,128,128], index: 4, kind: input, shape index: {}]   ;;  %s3223_s5 = inlined_call_operand.vmem [shape: bf16[2,4,8,128], index: 5, kind: output, shape index: {0}]   ;;  %s3224_s6 = inlined_call_operand.vmem [shape: bf16[2,4,8,128], index: 6, kind: output, shape index: {1}]   ;;  %s3225_s7 = inlined_call_operand.vmem [shape: bf16[2,4,8,128], index: 7, kind: output, shape index: {2}]  }
   0x1   :  { %s2720_s26 = smov 0  }
   0x2 LB: > { %s30_s27 = sadd.s32 1, %s2668_s25  ;;  %p1916_p0 = scmp.ge.s32.totalorder %s2672_s26, 1  ;;  %s2672_s26 = sphi %s2720_s26, %s18_s26   ;;  %s2668_s25 = sphi %s2718_s25, %s3227_s25   ;;  %s2664_s24 = sphi %s2716_s24, %s3226_s24  }
   0x3   : > { %p32_p1 = scmp.ge.s32.totalorder %s30_s27, 2  ;;  %p292_p2 = scmp.lt.s32.totalorder %s2672_s26, 3 }
   0x5   : > { %s3229_s27 = smov (%p32_p1, %s30_s27), 0  ;;  %p293_p3 = pnand %p1916_p0, %p292_p2 }
   0x6   : > { %v2554_v0 = vld [vmem:[%s3221_s3] sm:$0xff] (!%p293_p3)   ;;  %v2674_v1 = vmov (!%p293_p3), 0.0   ;;  %v2556_v3 = vld [vmem:[%s3221_s3 + $0x8] sm:$0xff] (!%p293_p3)   ;;  %vm2675_vm0 = vmmov (!%p293_p3), 0   ;;  %v2558_v5 = vld [vmem:[%s3221_s3 + $0x10] sm:$0xff] (!%p293_p3)   ;;  %p359_p4 = scmp.lt.s32.totalorder (!%p293_p3), %s2664_s24, 1 }
   0x7   : > { %296 = sbr.rel (%p293_p3) target bundleno = 415 (0x19f), region = 40  ;;  %2288 = vmatprep.subr.bf16.mxu0 (!%p293_p3), %v2674_v1  ;;  %2308 = vmatprep.subr.bf16.mxu1 (!%p293_p3), %v2674_v1  ;;  %v2555_v2 = vld [vmem:[%s3221_s3] sm:$0xff] (!%p293_p3)   ;;  %v2557_v4 = vld [vmem:[%s3221_s3 + $0x8] sm:$0xff] (!%p293_p3)   ;;  %v2559_v6 = vld [vmem:[%s3221_s3 + $0x10] sm:$0xff] (!%p293_p3)  }
   0x8   : > { %2289 = vmatpush3.bf16.msra.mxu0 (!%p293_p3), %v2554_v0  ;;  %2304 = vmatprep.mubr.msk.bf16.mxu0 (!%p293_p3), %vm2675_vm0, %v2674_v1  ;;  %v2560_v7 = vld [vmem:[%s3221_s3 + $0x18] sm:$0xff] (!%p293_p3)   ;;  %v2562_v9 = vld [vmem:[%s3221_s3 + $0x20] sm:$0xff] (!%p293_p3)   ;;  %v2564_v11 = vld [vmem:[%s3221_s3 + $0x28] sm:$0xff] (!%p293_p3)  }
   0x9   : > { %2309 = vmatpush3.bf16.msra.mxu1 (!%p293_p3), %v2555_v2  ;;  %2290 = vmatprep.subr.bf16.mxu0 (!%p293_p3), %v2674_v1  ;;  %v2561_v8 = vld [vmem:[%s3221_s3 + $0x18] sm:$0xff] (!%p293_p3)   ;;  %v2563_v10 = vld [vmem:[%s3221_s3 + $0x20] sm:$0xff] (!%p293_p3)   ;;  %v2565_v12 = vld [vmem:[%s3221_s3 + $0x28] sm:$0xff] (!%p293_p3)  }
   0xa   : > { %2310 = vmatprep.subr.bf16.mxu1 (!%p293_p3), %v2674_v1  ;;  %2324 = vmatprep.mubr.msk.bf16.mxu1 (!%p293_p3), %vm2675_vm0, %v2674_v1  ;;  %v2566_v13 = vld [vmem:[%s3221_s3 + $0x30] sm:$0xff] (!%p293_p3)   ;;  %v2568_v15 = vld [vmem:[%s3221_s3 + $0x38] sm:$0xff] (!%p293_p3)   ;;  %v2570_v19 = vld [vmem:[%s3222_s4] sm:$0xff] (!%p293_p3)  }
   0xb   : > { %v2567_v14 = vld [vmem:[%s3221_s3 + $0x30] sm:$0xff] (!%p293_p3)   ;;  %v2569_v16 = vld [vmem:[%s3221_s3 + $0x38] sm:$0xff] (!%p293_p3)   ;;  %v2571_v20 = vld [vmem:[%s3221_s3 + $0x40] sm:$0xff] (!%p293_p3)  }
   0xc   : > { %2291 = vmatpush3.bf16.msra.mxu0 (!%p293_p3), %v2556_v3  ;;  %v2572_v21 = vld [vmem:[%s3222_s4 + $0x8] sm:$0xff] (!%p293_p3)   ;;  %v2574_v23 = vld [vmem:[%s3222_s4 + $0x10] sm:$0xff] (!%p293_p3)   ;;  %v2576_v25 = vld [vmem:[%s3222_s4 + $0x18] sm:$0xff] (!%p293_p3)  }
   0xd   : > { %2311 = vmatpush3.bf16.msra.mxu1 (!%p293_p3), %v2557_v4  ;;  %2292 = vmatprep.subr.bf16.mxu0 (!%p293_p3), %v2674_v1  ;;  %v2573_v22 = vld [vmem:[%s3221_s3 + $0x48] sm:$0xff] (!%p293_p3)   ;;  %v2575_v24 = vld [vmem:[%s3221_s3 + $0x50] sm:$0xff] (!%p293_p3)   ;;  %v2577_v26 = vld [vmem:[%s3221_s3 + $0x58] sm:$0xff] (!%p293_p3)  }
   0xe   : > { %2312 = vmatprep.subr.bf16.mxu1 %v2674_v1  ;;  %s3231_s24 = smov (!%p359_p4, %s2664_s24), 1  ;;  %v2578_v27 = vld [vmem:[%s3222_s4 + $0x20] sm:$0xff]   ;;  %v2580_v29 = vld [vmem:[%s3222_s4 + $0x28] sm:$0xff]   ;;  %v2582_v31 = vld [vmem:[%s3222_s4 + $0x30] sm:$0xff]  }
   0xf   : > { %s2796_s12 = sshll.u32 %s3231_s24, 2  ;;  %v2579_v28 = vld [vmem:[%s3221_s3 + $0x60] sm:$0xff]   ;;  %v2581_v30 = vld [vmem:[%s3221_s3 + $0x68] sm:$0xff]   ;;  %v2583_v32 = vld [vmem:[%s3221_s3 + $0x70] sm:$0xff]   ;;  %s2177_s30 = sshll.u32 %s3231_s24, 4 }
  0x10   : > { %2293 = vmatpush3.bf16.msra.mxu0 %v2558_v5  ;;  %s2807_s17 = scalar_lea.vmem %s3218_s0, %s2796_s12  ;;  %s2816_s22 = scalar_lea.vmem %s3219_s1, %s2796_s12  ;;  %v2584_v33 = vld [vmem:[%s3222_s4 + $0x38] sm:$0xff]   ;;  %v2586_v37 = vld [vmem:[%s3221_s3 + $0x40] sm:$0xff]   ;;  %v2588_v39 = vld [vmem:[%s3221_s3 + $0x48] sm:$0xff]  }
  0x11   : > { %2313 = vmatpush3.bf16.msra.mxu1 %v2559_v6  ;;  %2294 = vmatprep.subr.bf16.mxu0 %v2674_v1  ;;  %v405_v17 = vld [vmem:[%s2807_s17] sm:$0xf]  ;;  %s2889_s23 = scalar_lea.vmem %s3220_s2, %s2796_s12  ;;  %v2585_v34 = vld [vmem:[%s3221_s3 + $0x78] sm:$0xff]   ;;  %v2589_v40 = vld [vmem:[%s3222_s4 + $0x48] sm:$0xff]   ;;  %s3185_s9 = scalar_lea.vmem %s3224_s6, %s2177_s30 }
  0x12   : > { %2314 = vmatprep.subr.bf16.mxu1 %v2674_v1  ;;  %v513_v18 = vld [vmem:[%s2816_s22] sm:$0xf]  ;;  %v2590_v41 = vld [vmem:[%s3221_s3 + $0x50] sm:$0xff]   ;;  %v2592_v43 = vld [vmem:[%s3221_s3 + $0x58] sm:$0xff]   ;;  %s3190_s13 = scalar_lea.vmem %s3223_s5, %s2177_s30 }
  0x13   : > { %v620_v35 = vld [vmem:[%s2889_s23] sm:$0xf]  ;;  %v2591_v42 = vld [vmem:[%s3222_s4 + $0x50] sm:$0xff]   ;;  %v2593_v44 = vld [vmem:[%s3222_s4 + $0x58] sm:$0xff]  }
  0x14   : > { %2295 = vmatpush3.bf16.msra.mxu0 %v2560_v7  ;;  %v727_v36 = vld [vmem:[%s2807_s17] sm:$0xf]  ;;  %v2596_v47 = vld [vmem:[%s3221_s3 + $0x68] sm:$0xff]   ;;  %v2598_v49 = vld [vmem:[%s3221_s3 + $0x70] sm:$0xff]  }
  0x15   : > { %2315 = vmatpush3.bf16.msra.mxu1 %v2561_v8  ;;  %2296 = vmatprep.subr.bf16.mxu0 %v2674_v1  ;;  %v2587_v38 = vld [vmem:[%s3222_s4 + $0x40] sm:$0xff]   ;;  %v2597_v48 = vld [vmem:[%s3222_s4 + $0x68] sm:$0xff]   ;;  %v2599_v50 = vld [vmem:[%s3222_s4 + $0x70] sm:$0xff]  }
  0x16   : > { %2316 = vmatprep.subr.bf16.mxu1 %v2674_v1  ;;  %v2594_v45 = vld [vmem:[%s3221_s3 + $0x60] sm:$0xff]   ;;  %v2600_v51 = vld [vmem:[%s3221_s3 + $0x78] sm:$0xff]   ;;  %v2604_v57 = vld [vmem:[%s3221_s3 + $0x88] sm:$0xff]  }
  0x17   : > { %v2595_v46 = vld [vmem:[%s3222_s4 + $0x60] sm:$0xff]   ;;  %v2601_v52 = vld [vmem:[%s3222_s4 + $0x78] sm:$0xff]   ;;  %v2605_v58 = vld [vmem:[%s3221_s3 + $0x88] sm:$0xff]  }
  0x18   : > { %2297 = vmatpush3.bf16.msra.mxu0 %v2562_v9  ;;  %v837_v53 = vld [vmem:[%s2816_s22] sm:$0xf]  ;;  %v2606_v59 = vld [vmem:[%s3221_s3 + $0x90] sm:$0xff]   ;;  %v2608_v61 = vld [vmem:[%s3221_s3 + $0x98] sm:$0xff]  }
  0x19   : > { %2317 = vmatpush3.bf16.msra.mxu1 %v2563_v10  ;;  %2298 = vmatprep.subr.bf16.mxu0 %v2674_v1  ;;  %v945_v54 = vld [vmem:[%s2889_s23] sm:$0xf]  ;;  %v2607_v60 = vld [vmem:[%s3221_s3 + $0x90] sm:$0xff]   ;;  %v2609_v62 = vld [vmem:[%s3221_s3 + $0x98] sm:$0xff]  }
  0x1a   : > { %2318 = vmatprep.subr.bf16.mxu1 %v2674_v1  ;;  %v2602_v55 = vld [vmem:[%s3221_s3 + $0x80] sm:$0xff]   ;;  %v2612_v2 = vld [vmem:[%s3221_s3 + $0xa8] sm:$0xff]   ;;  %v2614_v4 = vld [vmem:[%s3221_s3 + $0xb0] sm:$0xff]  }
  0x1b   : > { %v2603_v56 = vld [vmem:[%s3221_s3 + $0x80] sm:$0xff]   ;;  %v2613_v3 = vld [vmem:[%s3221_s3 + $0xa8] sm:$0xff]   ;;  %v2615_v5 = vld [vmem:[%s3221_s3 + $0xb0] sm:$0xff]  }
  0x1c   : > { %2299 = vmatpush3.bf16.msra.mxu0 %v2564_v11  ;;  %v2610_v63 = vld [vmem:[%s3221_s3 + $0xa0] sm:$0xff]   ;;  %v2616_v6 = vld [vmem:[%s3221_s3 + $0xb8] sm:$0xff]  }
  0x1d   : > { %2319 = vmatpush3.bf16.msra.mxu1 %v2565_v12  ;;  %2300 = vmatprep.subr.bf16.mxu0 %v2674_v1  ;;  %v2611_v0 = vld [vmem:[%s3221_s3 + $0xa0] sm:$0xff]   ;;  %v2617_v7 = vld [vmem:[%s3221_s3 + $0xb8] sm:$0xff]   ;;  %v2620_v12 = vld [vmem:[%s3222_s4 + $0x88] sm:$0xff]  }
  0x1e   : > { %2320 = vmatprep.subr.bf16.mxu1 %v2674_v1  ;;  %v1054_v8 = vld [vmem:[%s2807_s17] sm:$0xf] }
  0x1f   : > { %v2618_v9 = vld [vmem:[%s3222_s4 + $0x80] sm:$0xff]  }
  0x20   : > { %2301 = vmatpush3.bf16.msra.mxu0 %v2566_v13  ;;  %v1164_v10 = vld [vmem:[%s2816_s22] sm:$0xf]  ;;  %v2621_v13 = vld [vmem:[%s3221_s3 + $0xc8] sm:$0xff]  }
  0x21   : > { %2321 = vmatpush3.bf16.msra.mxu1 %v2567_v14  ;;  %2302 = vmatprep.subr.bf16.mxu0 %v2674_v1  ;;  %v2619_v11 = vld [vmem:[%s3221_s3 + $0xc0] sm:$0xff]   ;;  %v2622_v14 = vld [vmem:[%s3222_s4 + $0x90] sm:$0xff]  }
  0x22   : > { %2322 = vmatprep.subr.bf16.mxu1 %v2674_v1 }
  0x24   : > { %2303 = vmatpush3.bf16.msra.mxu0 %v2568_v15  ;;  %v2623_v15 = vld [vmem:[%s3221_s3 + $0xd0] sm:$0xff]  }
  0x25   : > { %2323 = vmatpush3.bf16.msra.mxu1 %v2569_v16  ;;  %2328 = vmatprep.subr.bf16.mxu0 %v2674_v1  ;;  %v2624_v16 = vld [vmem:[%s3222_s4 + $0x98] sm:$0xff]  }
  0x26   : > { %2348 = vmatprep.subr.bf16.mxu1 %v2674_v1 }
  0x27   : > { %2305 = vmatmul.mubr.bf16.vlgmr.msra.gmra.mrb[0].mxu0 %v405_v17  ;;  %v2625_v17 = vld [vmem:[%s3221_s3 + $0xd8] sm:$0xff]  }
  0x28   : > { %2325 = vmatmul.mubr.bf16.vlgmr.msra.gmra.mrb[0].mxu1 %v513_v18  ;;  %2329 = vmatpush3.bf16.msra.mxu0 %v2570_v19  ;;  %v2626_v18 = vld [vmem:[%s3222_s4 + $0xa0] sm:$0xff]  }
  0x29   : > { %2349 = vmatpush3.bf16.msra.mxu1 %v2571_v20  ;;  %2330 = vmatprep.subr.bf16.mxu0 %v2674_v1  ;;  %v2627_v19 = vld [vmem:[%s3221_s3 + $0xe0] sm:$0xff]   ;;  %v2628_v20 = vld [vmem:[%s3222_s4 + $0xa8] sm:$0xff]  }
  0x2a   : > { %2350 = vmatprep.subr.bf16.mxu1 %v2674_v1  ;;  %2344 = vmatprep.mubr.msk.bf16.mxu0 %vm2675_vm0, %v2674_v1 }
  0x2b   : > { %2364 = vmatprep.mubr.msk.bf16.mxu1 %vm2675_vm0, %v2674_v1 }
  0x2c   : > { %2331 = vmatpush3.bf16.msra.mxu0 %v2572_v21  ;;  %v2629_v21 = vld [vmem:[%s3221_s3 + $0xe8] sm:$0xff]  }
  0x2d   : > { %2351 = vmatpush3.bf16.msra.mxu1 %v2573_v22  ;;  %2332 = vmatprep.subr.bf16.mxu0 %v2674_v1  ;;  %v2630_v22 = vld [vmem:[%s3222_s4 + $0xb0] sm:$0xff]  }
  0x2e   : > { %2352 = vmatprep.subr.bf16.mxu1 %v2674_v1 }
  0x30   : > { %2333 = vmatpush3.bf16.msra.mxu0 %v2574_v23  ;;  %v2631_v23 = vld [vmem:[%s3221_s3 + $0xf0] sm:$0xff]  }
  0x31   : > { %2353 = vmatpush3.bf16.msra.mxu1 %v2575_v24  ;;  %2334 = vmatprep.subr.bf16.mxu0 %v2674_v1  ;;  %v2632_v24 = vld [vmem:[%s3222_s4 + $0xb8] sm:$0xff]  }
  0x32   : > { %2354 = vmatprep.subr.bf16.mxu1 %v2674_v1 }
  0x34   : > { %2335 = vmatpush3.bf16.msra.mxu0 %v2576_v25  ;;  %v2633_v25 = vld [vmem:[%s3221_s3 + $0xf8] sm:$0xff]  }
  0x35   : > { %2355 = vmatpush3.bf16.msra.mxu1 %v2577_v26  ;;  %2336 = vmatprep.subr.bf16.mxu0 %v2674_v1  ;;  %v1272_v26 = vld [vmem:[%s2889_s23] sm:$0xf] }
  0x36   : > { %2356 = vmatprep.subr.bf16.mxu1 %v2674_v1 }
  0x38   : > { %2337 = vmatpush3.bf16.msra.mxu0 %v2578_v27  ;;  %v2634_v27 = vld [vmem:[%s3221_s3 + $0xc0] sm:$0xff]  }
  0x39   : > { %2357 = vmatpush3.bf16.msra.mxu1 %v2579_v28  ;;  %2338 = vmatprep.subr.bf16.mxu0 %v2674_v1  ;;  %v1381_v28 = vld [vmem:[%s2807_s17] sm:$0xf] }
  0x3a   : > { %2358 = vmatprep.subr.bf16.mxu1 %v2674_v1 }
  0x3c   : > { %2339 = vmatpush3.bf16.msra.mxu0 %v2580_v29  ;;  %v2635_v29 = vld [vmem:[%s3222_s4 + $0xc0] sm:$0xff]  }
  0x3d   : > { %2359 = vmatpush3.bf16.msra.mxu1 %v2581_v30  ;;  %2340 = vmatprep.subr.bf16.mxu0 %v2674_v1  ;;  %v2636_v30 = vld [vmem:[%s3221_s3 + $0xc8] sm:$0xff]  }
  0x3e   : > { %2360 = vmatprep.subr.bf16.mxu1 %v2674_v1 }
  0x40   : > { %2341 = vmatpush3.bf16.msra.mxu0 %v2582_v31  ;;  %v2637_v31 = vld [vmem:[%s3222_s4 + $0xc8] sm:$0xff]  }
  0x41   : > { %2361 = vmatpush3.bf16.msra.mxu1 %v2583_v32  ;;  %2342 = vmatprep.subr.bf16.mxu0 %v2674_v1  ;;  %v2638_v32 = vld [vmem:[%s3221_s3 + $0xd0] sm:$0xff]  }
  0x42   : > { %2362 = vmatprep.subr.bf16.mxu1 %v2674_v1 }
  0x44   : > { %2343 = vmatpush3.bf16.msra.mxu0 %v2584_v33  ;;  %v2639_v33 = vld [vmem:[%s3222_s4 + $0xd0] sm:$0xff]  }
  0x45   : > { %2363 = vmatpush3.bf16.msra.mxu1 %v2585_v34  ;;  %2368 = vmatprep.subr.bf16.mxu0 %v2674_v1  ;;  %v2640_v34 = vld [vmem:[%s3221_s3 + $0xd8] sm:$0xff]  }
  0x46   : > { %2388 = vmatprep.subr.bf16.mxu1 %v2674_v1 }
  0x47   : > { %2345 = vmatmul.mubr.bf16.vlgmr.msra.gmra.mrb[4].mxu0 %v620_v35  ;;  %v2641_v35 = vld [vmem:[%s3222_s4 + $0xd8] sm:$0xff]  }
  0x48   : > { %2365 = vmatmul.mubr.bf16.vlgmr.msra.gmra.mrb[4].mxu1 %v727_v36  ;;  %2369 = vmatpush3.bf16.msra.mxu0 %v2586_v37  ;;  %v2642_v36 = vld [vmem:[%s3221_s3 + $0xe0] sm:$0xff]  }
  0x49   : > { %2389 = vmatpush3.bf16.msra.mxu1 %v2587_v38  ;;  %2370 = vmatprep.subr.bf16.mxu0 %v2674_v1  ;;  %v2643_v37 = vld [vmem:[%s3222_s4 + $0xe0] sm:$0xff]   ;;  %v2644_v38 = vld [vmem:[%s3221_s3 + $0xe8] sm:$0xff]  }
  0x4a   : > { %2390 = vmatprep.subr.bf16.mxu1 %v2674_v1  ;;  %2384 = vmatprep.mubr.msk.bf16.mxu0 %vm2675_vm0, %v2674_v1 }
  0x4b   : > { %2404 = vmatprep.mubr.msk.bf16.mxu1 %vm2675_vm0, %v2674_v1 }
  0x4c   : > { %2371 = vmatpush3.bf16.msra.mxu0 %v2588_v39  ;;  %v2645_v39 = vld [vmem:[%s3222_s4 + $0xe8] sm:$0xff]  }
  0x4d   : > { %2391 = vmatpush3.bf16.msra.mxu1 %v2589_v40  ;;  %2372 = vmatprep.subr.bf16.mxu0 %v2674_v1  ;;  %v2646_v40 = vld [vmem:[%s3221_s3 + $0xf0] sm:$0xff]  }
  0x4e   : > { %2392 = vmatprep.subr.bf16.mxu1 %v2674_v1 }
  0x50   : > { %2373 = vmatpush3.bf16.msra.mxu0 %v2590_v41  ;;  %v2647_v41 = vld [vmem:[%s3222_s4 + $0xf0] sm:$0xff]  }
  0x51   : > { %2393 = vmatpush3.bf16.msra.mxu1 %v2591_v42  ;;  %2374 = vmatprep.subr.bf16.mxu0 %v2674_v1  ;;  %v2648_v42 = vld [vmem:[%s3221_s3 + $0xf8] sm:$0xff]  }
  0x52   : > { %2394 = vmatprep.subr.bf16.mxu1 %v2674_v1 }
  0x54   : > { %2375 = vmatpush3.bf16.msra.mxu0 %v2592_v43  ;;  %v2649_v43 = vld [vmem:[%s3222_s4 + $0xf8] sm:$0xff]  }
  0x55   : > { %2395 = vmatpush3.bf16.msra.mxu1 %v2593_v44  ;;  %2376 = vmatprep.subr.bf16.mxu0 %v2674_v1  ;;  %v1491_v44 = vld [vmem:[%s2816_s22] sm:$0xf] }
  0x56   : > { %2396 = vmatprep.subr.bf16.mxu1 %v2674_v1 }
  0x58   : > { %2377 = vmatpush3.bf16.msra.mxu0 %v2594_v45  ;;  %v1599_v45 = vld [vmem:[%s2889_s23] sm:$0xf]  ;;  %s3197_s23 = scalar_lea.vmem %s3225_s7, %s2177_s30 }
  0x59   : > { %2397 = vmatpush3.bf16.msra.mxu1 %v2595_v46  ;;  %2378 = vmatprep.subr.bf16.mxu0 %v2674_v1 }
  0x5a   : > { %2398 = vmatprep.subr.bf16.mxu1 %v2674_v1 }
  0x5c   : > { %2379 = vmatpush3.bf16.msra.mxu0 %v2596_v47 }
  0x5d   : > { %2399 = vmatpush3.bf16.msra.mxu1 %v2597_v48  ;;  %2380 = vmatprep.subr.bf16.mxu0 %v2674_v1 }
  0x5e   : > { %2400 = vmatprep.subr.bf16.mxu1 %v2674_v1 }
  0x60   : > { %2381 = vmatpush3.bf16.msra.mxu0 %v2598_v49 }
  0x61   : > { %2401 = vmatpush3.bf16.msra.mxu1 %v2599_v50  ;;  %2382 = vmatprep.subr.bf16.mxu0 %v2674_v1 }
  0x62   : > { %2402 = vmatprep.subr.bf16.mxu1 %v2674_v1 }
  0x64   : > { %2383 = vmatpush3.bf16.msra.mxu0 %v2600_v51 }
  0x65   : > { %2403 = vmatpush3.bf16.msra.mxu1 %v2601_v52  ;;  %2408 = vmatprep.subr.bf16.mxu0 %v2674_v1 }
  0x66   : > { %2428 = vmatprep.subr.bf16.mxu1 %v2674_v1 }
  0x67   : > { %2385 = vmatmul.mubr.bf16.vlgmr.msra.gmra.mrb[8].mxu0 %v837_v53 }
  0x68   : > { %2405 = vmatmul.mubr.bf16.vlgmr.msra.gmra.mrb[8].mxu1 %v945_v54  ;;  %2409 = vmatpush3.bf16.msra.mxu0 %v2602_v55 }
  0x69   : > { %2429 = vmatpush3.bf16.msra.mxu1 %v2603_v56  ;;  %2410 = vmatprep.subr.bf16.mxu0 %v2674_v1 }
  0x6a   : > { %2430 = vmatprep.subr.bf16.mxu1 %v2674_v1  ;;  %2424 = vmatprep.mubr.msk.bf16.mxu0 %vm2675_vm0, %v2674_v1 }
  0x6b   : > { %2444 = vmatprep.mubr.msk.bf16.mxu1 %vm2675_vm0, %v2674_v1 }
  0x6c   : > { %2411 = vmatpush3.bf16.msra.mxu0 %v2604_v57 }
  0x6d   : > { %2431 = vmatpush3.bf16.msra.mxu1 %v2605_v58  ;;  %2412 = vmatprep.subr.bf16.mxu0 %v2674_v1 }
  0x6e   : > { %2432 = vmatprep.subr.bf16.mxu1 %v2674_v1 }
  0x70   : > { %2413 = vmatpush3.bf16.msra.mxu0 %v2606_v59 }
  0x71   : > { %2433 = vmatpush3.bf16.msra.mxu1 %v2607_v60  ;;  %2414 = vmatprep.subr.bf16.mxu0 %v2674_v1 }
  0x72   : > { %2434 = vmatprep.subr.bf16.mxu1 %v2674_v1 }
  0x74   : > { %2415 = vmatpush3.bf16.msra.mxu0 %v2608_v61 }
  0x75   : > { %2435 = vmatpush3.bf16.msra.mxu1 %v2609_v62  ;;  %2416 = vmatprep.subr.bf16.mxu0 %v2674_v1 }
  0x76   : > { %2436 = vmatprep.subr.bf16.mxu1 %v2674_v1 }
  0x78   : > { %2417 = vmatpush3.bf16.msra.mxu0 %v2610_v63 }
  0x79   : > { %2437 = vmatpush3.bf16.msra.mxu1 %v2611_v0  ;;  %2418 = vmatprep.subr.bf16.mxu0 %v2674_v1 }
  0x7a   : > { %2438 = vmatprep.subr.bf16.mxu1 %v2674_v1 }
  0x7c   : > { %2419 = vmatpush3.bf16.msra.mxu0 %v2612_v2 }
  0x7d   : > { %2439 = vmatpush3.bf16.msra.mxu1 %v2613_v3  ;;  %2420 = vmatprep.subr.bf16.mxu0 %v2674_v1 }
  0x7e   : > { %2440 = vmatprep.subr.bf16.mxu1 %v2674_v1 }
  0x80   : > { %2421 = vmatpush3.bf16.msra.mxu0 %v2614_v4 }
  0x81   : > { %2441 = vmatpush3.bf16.msra.mxu1 %v2615_v5  ;;  %2422 = vmatprep.subr.bf16.mxu0 %v2674_v1 }
  0x82   : > { %2442 = vmatprep.subr.bf16.mxu1 %v2674_v1 }
  0x84   : > { %2423 = vmatpush3.bf16.msra.mxu0 %v2616_v6 }
  0x85   : > { %2443 = vmatpush3.bf16.msra.mxu1 %v2617_v7  ;;  %2448 = vmatprep.subr.bf16.mxu0 %v2674_v1 }
  0x86   : > { %2468 = vmatprep.subr.bf16.mxu1 %v2674_v1 }
  0x87   : > { %2425 = vmatmul.mubr.bf16.vlgmr.msra.gmra.mrb[12].mxu0 %v1054_v8 }
  0x88   : > { %2445 = vmatmul.mubr.bf16.vlgmr.msra.gmra.mrb[12].mxu1 %v1164_v10  ;;  %2449 = vmatpush3.bf16.msra.mxu0 %v2618_v9 }
  0x89   : > { %2469 = vmatpush3.bf16.msra.mxu1 %v2619_v11  ;;  %2450 = vmatprep.subr.bf16.mxu0 %v2674_v1 }
  0x8a   : > { %2470 = vmatprep.subr.bf16.mxu1 %v2674_v1  ;;  %2464 = vmatprep.mubr.msk.bf16.mxu0 %vm2675_vm0, %v2674_v1 }
  0x8b   : > { %2484 = vmatprep.mubr.msk.bf16.mxu1 %vm2675_vm0, %v2674_v1 }
  0x8c   : > { %2451 = vmatpush3.bf16.msra.mxu0 %v2620_v12 }
  0x8d   : > { %2471 = vmatpush3.bf16.msra.mxu1 %v2621_v13  ;;  %2452 = vmatprep.subr.bf16.mxu0 %v2674_v1 }
  0x8e   : > { %2472 = vmatprep.subr.bf16.mxu1 %v2674_v1 }
  0x90   : > { %2453 = vmatpush3.bf16.msra.mxu0 %v2622_v14 }
  0x91   : > { %2473 = vmatpush3.bf16.msra.mxu1 %v2623_v15  ;;  %2454 = vmatprep.subr.bf16.mxu0 %v2674_v1 }
  0x92   : > { %2474 = vmatprep.subr.bf16.mxu1 %v2674_v1 }
  0x94   : > { %2455 = vmatpush3.bf16.msra.mxu0 %v2624_v16 }
  0x95   : > { %2475 = vmatpush3.bf16.msra.mxu1 %v2625_v17  ;;  %2456 = vmatprep.subr.bf16.mxu0 %v2674_v1 }
  0x96   : > { %2476 = vmatprep.subr.bf16.mxu1 %v2674_v1 }
  0x98   : > { %2457 = vmatpush3.bf16.msra.mxu0 %v2626_v18 }
  0x99   : > { %2477 = vmatpush3.bf16.msra.mxu1 %v2627_v19  ;;  %2458 = vmatprep.subr.bf16.mxu0 %v2674_v1 }
  0x9a   : > { %2478 = vmatprep.subr.bf16.mxu1 %v2674_v1 }
  0x9c   : > { %2459 = vmatpush3.bf16.msra.mxu0 %v2628_v20 }
  0x9d   : > { %2479 = vmatpush3.bf16.msra.mxu1 %v2629_v21  ;;  %2460 = vmatprep.subr.bf16.mxu0 %v2674_v1 }
  0x9e   : > { %2480 = vmatprep.subr.bf16.mxu1 %v2674_v1 }
  0xa0   : > { %2461 = vmatpush3.bf16.msra.mxu0 %v2630_v22 }
  0xa1   : > { %2481 = vmatpush3.bf16.msra.mxu1 %v2631_v23  ;;  %2462 = vmatprep.subr.bf16.mxu0 %v2674_v1 }
  0xa2   : > { %2482 = vmatprep.subr.bf16.mxu1 %v2674_v1 }
  0xa4   : > { %2463 = vmatpush3.bf16.msra.mxu0 %v2632_v24 }
  0xa5   : > { %2483 = vmatpush3.bf16.msra.mxu1 %v2633_v25  ;;  %2488 = vmatprep.subr.bf16.mxu0 %v2674_v1 }
  0xa6   : > { %2508 = vmatprep.subr.bf16.mxu1 %v2674_v1 }
  0xa7   : > { %2465 = vmatmul.mubr.bf16.vlgmr.msra.gmra.mrb[16].mxu0 %v1272_v26 }
  0xa8   : > { %2485 = vmatmul.mubr.bf16.vlgmr.msra.gmra.mrb[16].mxu1 %v1381_v28  ;;  %2489 = vmatpush3.bf16.msra.mxu0 %v2634_v27 }
  0xa9   : > { %2509 = vmatpush3.bf16.msra.mxu1 %v2635_v29  ;;  %2490 = vmatprep.subr.bf16.mxu0 %v2674_v1 }
  0xaa   : > { %2510 = vmatprep.subr.bf16.mxu1 %v2674_v1  ;;  %2504 = vmatprep.mubr.msk.bf16.mxu0 %vm2675_vm0, %v2674_v1 }
  0xab   : > { %2524 = vmatprep.mubr.msk.bf16.mxu1 %vm2675_vm0, %v2674_v1 }
  0xac   : > { %2491 = vmatpush3.bf16.msra.mxu0 %v2636_v30 }
  0xad   : > { %2511 = vmatpush3.bf16.msra.mxu1 %v2637_v31  ;;  %2492 = vmatprep.subr.bf16.mxu0 %v2674_v1 }
  0xae   : > { %2512 = vmatprep.subr.bf16.mxu1 %v2674_v1 }
  0xb0   : > { %2493 = vmatpush3.bf16.msra.mxu0 %v2638_v32 }
  0xb1   : > { %2513 = vmatpush3.bf16.msra.mxu1 %v2639_v33  ;;  %2494 = vmatprep.subr.bf16.mxu0 %v2674_v1 }
  0xb2   : > { %2514 = vmatprep.subr.bf16.mxu1 %v2674_v1 }
  0xb4   : > { %2495 = vmatpush3.bf16.msra.mxu0 %v2640_v34 }
  0xb5   : > { %2515 = vmatpush3.bf16.msra.mxu1 %v2641_v35  ;;  %2496 = vmatprep.subr.bf16.mxu0 %v2674_v1 }
  0xb6   : > { %2516 = vmatprep.subr.bf16.mxu1 %v2674_v1 }
  0xb8   : > { %2497 = vmatpush3.bf16.msra.mxu0 %v2642_v36 }
  0xb9   : > { %2517 = vmatpush3.bf16.msra.mxu1 %v2643_v37  ;;  %2498 = vmatprep.subr.bf16.mxu0 %v2674_v1 }
  0xba   : > { %2518 = vmatprep.subr.bf16.mxu1 %v2674_v1 }
  0xbc   : > { %2499 = vmatpush3.bf16.msra.mxu0 %v2644_v38 }
  0xbd   : > { %2519 = vmatpush3.bf16.msra.mxu1 %v2645_v39  ;;  %2500 = vmatprep.subr.bf16.mxu0 %v2674_v1 }
  0xbe   : > { %2520 = vmatprep.subr.bf16.mxu1 %v2674_v1 }
  0xc0   : > { %2501 = vmatpush3.bf16.msra.mxu0 %v2646_v40 }
  0xc1   : > { %2521 = vmatpush3.bf16.msra.mxu1 %v2647_v41  ;;  %2502 = vmatprep.subr.bf16.mxu0 %v2674_v1 }
  0xc2   : > { %2522 = vmatprep.subr.bf16.mxu1 %v2674_v1 }
  0xc4   : > { %2503 = vmatpush3.bf16.msra.mxu0 %v2648_v42 }
  0xc5   : > { %2523 = vmatpush3.bf16.msra.mxu1 %v2649_v43 }
  0xc7   : > { %2505 = vmatmul.mubr.bf16.vlgmr.msra.gmra.mrb[20].mxu0 %v1491_v44 }
  0xc8   : > { %2525 = vmatmul.mubr.bf16.vlgmr.msra.gmra.mrb[20].mxu1 %v1599_v45 }
  0xfa   : > { %v504_v46 = vpop.f32.mrb[0].mxu0 }
  0xfb   : > { %v510_v47 = vmul.f32 0.35355338, %v504_v46  ;;  %v612_v48 = vpop.f32.mrb[0].mxu1  ;;  %v2306_v49 = vpop.f32.mrb[1].mxu0 }
  0xfc   : > { %v618_v1 = vpack.c.bf16 %v612_v48, %v612_v48  ;;  %v2326_v50 = vpop.f32.mrb[1].mxu1  ;;  %v507_v51 = vpop.f32.mrb[2].mxu0 }
  0xfd   : > { %v511_v52 = vpack.c.bf16 %v510_v47, %v510_v47  ;;  %v615_v53 = vpop.f32.mrb[2].mxu1  ;;  %v2307_v54 = vpop.f32.mrb[3].mxu0 }
  0xfe   : > { %619 = vst [vmem:[%s3185_s9] sm:$0xf] %v618_v1  ;;  %v2327_v55 = vpop.f32.mrb[3].mxu1 }
  0xff   : > { %512 = vst [vmem:[%s3190_s13] sm:$0xf] %v511_v52 }
 0x11a   : > { %v719_v56 = vpop.f32.mrb[4].mxu0 }
 0x11b   : > { %v725_v57 = vpack.c.bf16 %v719_v56, %v719_v56  ;;  %v827_v58 = vpop.f32.mrb[4].mxu1  ;;  %v2346_v59 = vpop.f32.mrb[5].mxu0 }
 0x11c   : > { %v833_v60 = vmul.f32 0.35355338, %v827_v58  ;;  %v2366_v61 = vpop.f32.mrb[5].mxu1  ;;  %v722_v62 = vpop.f32.mrb[6].mxu0 }
 0x11d   : > { %726 = vst [vmem:[%s3197_s23] sm:$0xf] %v725_v57  ;;  %v830_v63 = vpop.f32.mrb[6].mxu1  ;;  %v2347_v0 = vpop.f32.mrb[7].mxu0 }
 0x11e   : > { %v834_v2 = vpack.c.bf16 %v833_v60, %v833_v60  ;;  %v2367_v3 = vpop.f32.mrb[7].mxu1 }
 0x120   : > { %1974 = vst [vmem:[%s3190_s13 + $0x4] sm:$0xf] %v834_v2 }
 0x13a   : > { %v936_v4 = vpop.f32.mrb[8].mxu0 }
 0x13b   : > { %v942_v5 = vpack.c.bf16 %v936_v4, %v936_v4  ;;  %v1045_v6 = vpop.f32.mrb[8].mxu1  ;;  %v2386_v7 = vpop.f32.mrb[9].mxu0 }
 0x13c   : > { %v1051_v8 = vpack.c.bf16 %v1045_v6, %v1045_v6  ;;  %v2406_v9 = vpop.f32.mrb[9].mxu1  ;;  %v939_v10 = vpop.f32.mrb[10].mxu0 }
 0x13d   : > { %1999 = vst [vmem:[%s3185_s9 + $0x4] sm:$0xf] %v942_v5  ;;  %v1048_v11 = vpop.f32.mrb[10].mxu1  ;;  %v2387_v12 = vpop.f32.mrb[11].mxu0 }
 0x13e   : > { %2024 = vst [vmem:[%s3197_s23 + $0x4] sm:$0xf] %v1051_v8  ;;  %v2407_v13 = vpop.f32.mrb[11].mxu1 }
 0x15a   : > { %v1154_v14 = vpop.f32.mrb[12].mxu0 }
 0x15b   : > { %v1160_v15 = vmul.f32 0.35355338, %v1154_v14  ;;  %v1263_v16 = vpop.f32.mrb[12].mxu1  ;;  %v2426_v17 = vpop.f32.mrb[13].mxu0 }
 0x15c   : > { %v1269_v18 = vpack.c.bf16 %v1263_v16, %v1263_v16  ;;  %v2446_v19 = vpop.f32.mrb[13].mxu1  ;;  %v1157_v20 = vpop.f32.mrb[14].mxu0 }
 0x15d   : > { %v1161_v21 = vpack.c.bf16 %v1160_v15, %v1160_v15  ;;  %v1266_v22 = vpop.f32.mrb[14].mxu1  ;;  %v2427_v23 = vpop.f32.mrb[15].mxu0 }
 0x15e   : > { %2074 = vst [vmem:[%s3185_s9 + $0x8] sm:$0xf] %v1269_v18  ;;  %v2447_v24 = vpop.f32.mrb[15].mxu1 }
 0x15f   : > { %2049 = vst [vmem:[%s3190_s13 + $0x8] sm:$0xf] %v1161_v21 }
 0x17a   : > { %v1372_v25 = vpop.f32.mrb[16].mxu0 }
 0x17b   : > { %v1378_v26 = vpack.c.bf16 %v1372_v25, %v1372_v25  ;;  %v1481_v27 = vpop.f32.mrb[16].mxu1  ;;  %v2466_v28 = vpop.f32.mrb[17].mxu0 }
 0x17c   : > { %v1487_v29 = vmul.f32 0.35355338, %v1481_v27  ;;  %v2486_v30 = vpop.f32.mrb[17].mxu1  ;;  %v1375_v31 = vpop.f32.mrb[18].mxu0 }
 0x17d   : > { %2099 = vst [vmem:[%s3197_s23 + $0x8] sm:$0xf] %v1378_v26  ;;  %v1484_v32 = vpop.f32.mrb[18].mxu1  ;;  %v2467_v33 = vpop.f32.mrb[19].mxu0 }
 0x17e   : > { %v1488_v34 = vpack.c.bf16 %v1487_v29, %v1487_v29  ;;  %v2487_v35 = vpop.f32.mrb[19].mxu1 }
 0x180   : > { %2124 = vst [vmem:[%s3190_s13 + $0xc] sm:$0xf] %v1488_v34 }
 0x19a   : > { %v1590_v36 = vpop.f32.mrb[20].mxu0 }
 0x19b   : > { %v1596_v37 = vpack.c.bf16 %v1590_v36, %v1590_v36  ;;  %v1699_v38 = vpop.f32.mrb[20].mxu1  ;;  %v2506_v39 = vpop.f32.mrb[21].mxu0 }
 0x19c   : > { %v1705_v40 = vpack.c.bf16 %v1699_v38, %v1699_v38  ;;  %v2526_v41 = vpop.f32.mrb[21].mxu1  ;;  %v1593_v42 = vpop.f32.mrb[22].mxu0 }
 0x19d   : > { %2149 = vst [vmem:[%s3185_s9 + $0xc] sm:$0xf] %v1596_v37  ;;  %v1702_v43 = vpop.f32.mrb[22].mxu1  ;;  %v2507_v44 = vpop.f32.mrb[23].mxu0 }
 0x19e   : > { %2174 = vst [vmem:[%s3197_s23 + $0xc] sm:$0xf] %v1705_v40  ;;  %v2527_v45 = vpop.f32.mrb[23].mxu1 }
 0x19f PF: > { %s18_s26 = sadd.s32 1, %s2672_s26   ;;  %s3226_s24 = smov %s2668_s25 }
 0x1a0   : > { %p15_p5 = scmp.ge.s32.totalorder %s18_s26, 4   ;;  %s3227_s25 = smov %s3229_s27 }
 0x1a2   :  { %17 = sbr.rel (!%p15_p5) target bundleno = 2 (0x2), region = 115 }

// kernel: multi_head_attention.2
= control target key start
LH: loop header
LB: loop body
LE: loop exit
PB: predicated region body
PF: predicated region fallthrough
CT: control target
= control target key end

     0   :  { %s2716_s24 = smov 0   ;;  %s2718_s25 = smov 0   ;;  %s3218_s0 = inlined_call_operand.vmem [shape: bf16[2,8,128], index: 0, kind: input, shape index: {}]   ;;  %s3219_s1 = inlined_call_operand.vmem [shape: bf16[2,8,128], index: 1, kind: input, shape index: {}]   ;;  %s3220_s2 = inlined_call_operand.vmem [shape: bf16[2,8,128], index: 2, kind: input, shape index: {}]   ;;  %s3221_s3 = inlined_call_operand.vmem [shape: bf16[4,128,128], index: 3, kind: input, shape index: {}]   ;;  %s3222_s4 = inlined_call_operand.vmem [shape: bf16[4,128,128], index: 4, kind: input, shape index: {}]   ;;  %s3223_s5 = inlined_call_operand.vmem [shape: bf16[2,4,8,128], index: 5, kind: output, shape index: {0}]   ;;  %s3224_s6 = inlined_call_operand.vmem [shape: bf16[2,4,8,128], index: 6, kind: output, shape index: {1}]   ;;  %s3225_s7 = inlined_call_operand.vmem [shape: bf16[2,4,8,128], index: 7, kind: output, shape index: {2}]  }
   0x1   :  { %s2720_s26 = smov 0  }
   0x2 LB: > { %s30_s27 = sadd.s32 1, %s2668_s25  ;;  %p1916_p0 = scmp.ge.s32.totalorder %s2672_s26, 1  ;;  %s2672_s26 = sphi %s2720_s26, %s18_s26   ;;  %s2668_s25 = sphi %s2718_s25, %s3227_s25   ;;  %s2664_s24 = sphi %s2716_s24, %s3226_s24  }
   0x3   : > { %p32_p1 = scmp.ge.s32.totalorder %s30_s27, 2  ;;  %p292_p2 = scmp.lt.s32.totalorder %s2672_s26, 3 }
   0x5   : > { %s3229_s27 = smov (%p32_p1, %s30_s27), 0  ;;  %p293_p3 = pnand %p1916_p0, %p292_p2 }
   0x6   : > { %v2554_v0 = vld [vmem:[%s3221_s3] sm:$0xff] (!%p293_p3)   ;;  %v2674_v1 = vmov (!%p293_p3), 0.0   ;;  %v2556_v3 = vld [vmem:[%s3221_s3 + $0x8] sm:$0xff] (!%p293_p3)   ;;  %vm2675_vm0 = vmmov (!%p293_p3), 0   ;;  %v2558_v5 = vld [vmem:[%s3221_s3 + $0x10] sm:$0xff] (!%p293_p3)   ;;  %p359_p4 = scmp.lt.s32.totalorder (!%p293_p3), %s2664_s24, 1 }
   0x7   : > { %296 = sbr.rel (%p293_p3) target bundleno = 415 (0x19f), region = 40  ;;  %2288 = vmatprep.subr.bf16.mxu0 (!%p293_p3), %v2674_v1  ;;  %2308 = vmatprep.subr.bf16.mxu1 (!%p293_p3), %v2674_v1  ;;  %v2555_v2 = vld [vmem:[%s3221_s3] sm:$0xff] (!%p293_p3)   ;;  %v2557_v4 = vld [vmem:[%s3221_s3 + $0x8] sm:$0xff] (!%p293_p3)   ;;  %v2559_v6 = vld [vmem:[%s3221_s3 + $0x10] sm:$0xff] (!%p293_p3)  }
   0x8   : > { %2289 = vmatpush3.bf16.msra.mxu0 (!%p293_p3), %v2554_v0  ;;  %2304 = vmatprep.mubr.msk.bf16.mxu0 (!%p293_p3), %vm2675_vm0, %v2674_v1  ;;  %v2560_v7 = vld [vmem:[%s3221_s3 + $0x18] sm:$0xff] (!%p293_p3)   ;;  %v2562_v9 = vld [vmem:[%s3221_s3 + $0x20] sm:$0xff] (!%p293_p3)   ;;  %v2564_v11 = vld [vmem:[%s3221_s3 + $0x28] sm:$0xff] (!%p293_p3)  }
   0x9   : > { %2309 = vmatpush3.bf16.msra.mxu1 (!%p293_p3), %v2555_v2  ;;  %2290 = vmatprep.subr.bf16.mxu0 (!%p293_p3), %v2674_v1  ;;  %v2561_v8 = vld [vmem:[%s3221_s3 + $0x18] sm:$0xff] (!%p293_p3)   ;;  %v2563_v10 = vld [vmem:[%s3221_s3 + $0x20] sm:$0xff] (!%p293_p3)   ;;  %v2565_v12 = vld [vmem:[%s3221_s3 + $0x28] sm:$0xff] (!%p293_p3)  }
   0xa   : > { %2310 = vmatprep.subr.bf16.mxu1 (!%p293_p3), %v2674_v1  ;;  %2324 = vmatprep.mubr.msk.bf16.mxu1 (!%p293_p3), %vm2675_vm0, %v2674_v1  ;;  %v2566_v13 = vld [vmem:[%s3221_s3 + $0x30] sm:$0xff] (!%p293_p3)   ;;  %v2568_v15 = vld [vmem:[%s3221_s3 + $0x38] sm:$0xff] (!%p293_p3)   ;;  %v2570_v19 = vld [vmem:[%s3222_s4] sm:$0xff] (!%p293_p3)  }
   0xb   : > { %v2567_v14 = vld [vmem:[%s3221_s3 + $0x30] sm:$0xff] (!%p293_p3)   ;;  %v2569_v16 = vld [vmem:[%s3221_s3 + $0x38] sm:$0xff] (!%p293_p3)   ;;  %v2571_v20 = vld [vmem:[%s3221_s3 + $0x40] sm:$0xff] (!%p293_p3)  }
   0xc   : > { %2291 = vmatpush3.bf16.msra.mxu0 (!%p293_p3), %v2556_v3  ;;  %v2572_v21 = vld [vmem:[%s3222_s4 + $0x8] sm:$0xff] (!%p293_p3)   ;;  %v2574_v23 = vld [vmem:[%s3222_s4 + $0x10] sm:$0xff] (!%p293_p3)   ;;  %v2576_v25 = vld [vmem:[%s3222_s4 + $0x18] sm:$0xff] (!%p293_p3)  }
   0xd   : > { %2311 = vmatpush3.bf16.msra.mxu1 (!%p293_p3), %v2557_v4  ;;  %2292 = vmatprep.subr.bf16.mxu0 (!%p293_p3), %v2674_v1  ;;  %v2573_v22 = vld [vmem:[%s3221_s3 + $0x48] sm:$0xff] (!%p293_p3)   ;;  %v2575_v24 = vld [vmem:[%s3221_s3 + $0x50] sm:$0xff] (!%p293_p3)   ;;  %v2577_v26 = vld [vmem:[%s3221_s3 + $0x58] sm:$0xff] (!%p293_p3)  }
   0xe   : > { %2312 = vmatprep.subr.bf16.mxu1 %v2674_v1  ;;  %s3231_s24 = smov (!%p359_p4, %s2664_s24), 1  ;;  %v2578_v27 = vld [vmem:[%s3222_s4 + $0x20] sm:$0xff]   ;;  %v2580_v29 = vld [vmem:[%s3222_s4 + $0x28] sm:$0xff]   ;;  %v2582_v31 = vld [vmem:[%s3222_s4 + $0x30] sm:$0xff]  }
   0xf   : > { %s2796_s12 = sshll.u32 %s3231_s24, 2  ;;  %v2579_v28 = vld [vmem:[%s3221_s3 + $0x60] sm:$0xff]   ;;  %v2581_v30 = vld [vmem:[%s3221_s3 + $0x68] sm:$0xff]   ;;  %v2583_v32 = vld [vmem:[%s3221_s3 + $0x70] sm:$0xff]   ;;  %s2177_s30 = sshll.u32 %s3231_s24, 4 }
  0x10   : > { %2293 = vmatpush3.bf16.msra.mxu0 %v2558_v5  ;;  %s2807_s17 = scalar_lea.vmem %s3218_s0, %s2796_s12  ;;  %s2816_s22 = scalar_lea.vmem %s3219_s1, %s2796_s12  ;;  %v2584_v33 = vld [vmem:[%s3222_s4 + $0x38] sm:$0xff]   ;;  %v2586_v37 = vld [vmem:[%s3221_s3 + $0x40] sm:$0xff]   ;;  %v2588_v39 = vld [vmem:[%s3221_s3 + $0x48] sm:$0xff]  }
  0x11   : > { %2313 = vmatpush3.bf16.msra.mxu1 %v2559_v6  ;;  %2294 = vmatprep.subr.bf16.mxu0 %v2674_v1  ;;  %v405_v17 = vld [vmem:[%s2807_s17] sm:$0xf]  ;;  %s2889_s23 = scalar_lea.vmem %s3220_s2, %s2796_s12  ;;  %v2585_v34 = vld [vmem:[%s3221_s3 + $0x78] sm:$0xff]   ;;  %v2589_v40 = vld [vmem:[%s3222_s4 + $0x48] sm:$0xff]   ;;  %s3185_s9 = scalar_lea.vmem %s3224_s6, %s2177_s30 }
  0x12   : > { %2314 = vmatprep.subr.bf16.mxu1 %v2674_v1  ;;  %v513_v18 = vld [vmem:[%s2816_s22] sm:$0xf]  ;;  %v2590_v41 = vld [vmem:[%s3221_s3 + $0x50] sm:$0xff]   ;;  %v2592_v43 = vld [vmem:[%s3221_s3 + $0x58] sm:$0xff]   ;;  %s3190_s13 = scalar_lea.vmem %s3223_s5, %s2177_s30 }
  0x13   : > { %v620_v35 = vld [vmem:[%s2889_s23] sm:$0xf]  ;;  %v2591_v42 = vld [vmem:[%s3222_s4 + $0x50] sm:$0xff]   ;;  %v2593_v44 = vld [vmem:[%s3222_s4 + $0x58] sm:$0xff]  }
  0x14   : > { %2295 = vmatpush3.bf16.msra.mxu0 %v2560_v7  ;;  %v727_v36 = vld [vmem:[%s2807_s17] sm:$0xf]  ;;  %v2596_v47 = vld [vmem:[%s3221_s3 + $0x68] sm:$0xff]   ;;  %v2598_v49 = vld [vmem:[%s3221_s3 + $0x70] sm:$0xff]  }
  0x15   : > { %2315 = vmatpush3.bf16.msra.mxu1 %v2561_v8  ;;  %2296 = vmatprep.subr.bf16.mxu0 %v2674_v1  ;;  %v2587_v38 = vld [vmem:[%s3222_s4 + $0x40] sm:$0xff]   ;;  %v2597_v48 = vld [vmem:[%s3222_s4 + $0x68] sm:$0xff]   ;;  %v2599_v50 = vld [vmem:[%s3222_s4 + $0x70] sm:$0xff]  }
  0x16   : > { %2316 = vmatprep.subr.bf16.mxu1 %v2674_v1  ;;  %v2594_v45 = vld [vmem:[%s3221_s3 + $0x60] sm:$0xff]   ;;  %v2600_v51 = vld [vmem:[%s3221_s3 + $0x78] sm:$0xff]   ;;  %v2604_v57 = vld [vmem:[%s3221_s3 + $0x88] sm:$0xff]  }
  0x17   : > { %v2595_v46 = vld [vmem:[%s3222_s4 + $0x60] sm:$0xff]   ;;  %v2601_v52 = vld [vmem:[%s3222_s4 + $0x78] sm:$0xff]   ;;  %v2605_v58 = vld [vmem:[%s3221_s3 + $0x88] sm:$0xff]  }
  0x18   : > { %2297 = vmatpush3.bf16.msra.mxu0 %v2562_v9  ;;  %v837_v53 = vld [vmem:[%s2816_s22] sm:$0xf]  ;;  %v2606_v59 = vld [vmem:[%s3221_s3 + $0x90] sm:$0xff]   ;;  %v2608_v61 = vld [vmem:[%s3221_s3 + $0x98] sm:$0xff]  }
  0x19   : > { %2317 = vmatpush3.bf16.msra.mxu1 %v2563_v10  ;;  %2298 = vmatprep.subr.bf16.mxu0 %v2674_v1  ;;  %v945_v54 = vld [vmem:[%s2889_s23] sm:$0xf]  ;;  %v2607_v60 = vld [vmem:[%s3221_s3 + $0x90] sm:$0xff]   ;;  %v2609_v62 = vld [vmem:[%s3221_s3 + $0x98] sm:$0xff]  }
  0x1a   : > { %2318 = vmatprep.subr.bf16.mxu1 %v2674_v1  ;;  %v2602_v55 = vld [vmem:[%s3221_s3 + $0x80] sm:$0xff]   ;;  %v2612_v2 = vld [vmem:[%s3221_s3 + $0xa8] sm:$0xff]   ;;  %v2614_v4 = vld [vmem:[%s3221_s3 + $0xb0] sm:$0xff]  }
  0x1b   : > { %v2603_v56 = vld [vmem:[%s3221_s3 + $0x80] sm:$0xff]   ;;  %v2613_v3 = vld [vmem:[%s3221_s3 + $0xa8] sm:$0xff]   ;;  %v2615_v5 = vld [vmem:[%s3221_s3 + $0xb0] sm:$0xff]  }
  0x1c   : > { %2299 = vmatpush3.bf16.msra.mxu0 %v2564_v11  ;;  %v2610_v63 = vld [vmem:[%s3221_s3 + $0xa0] sm:$0xff]   ;;  %v2616_v6 = vld [vmem:[%s3221_s3 + $0xb8] sm:$0xff]  }
  0x1d   : > { %2319 = vmatpush3.bf16.msra.mxu1 %v2565_v12  ;;  %2300 = vmatprep.subr.bf16.mxu0 %v2674_v1  ;;  %v2611_v0 = vld [vmem:[%s3221_s3 + $0xa0] sm:$0xff]   ;;  %v2617_v7 = vld [vmem:[%s3221_s3 + $0xb8] sm:$0xff]   ;;  %v2620_v12 = vld [vmem:[%s3222_s4 + $0x88] sm:$0xff]  }
  0x1e   : > { %2320 = vmatprep.subr.bf16.mxu1 %v2674_v1  ;;  %v1054_v8 = vld [vmem:[%s2807_s17] sm:$0xf] }
  0x1f   : > { %v2618_v9 = vld [vmem:[%s3222_s4 + $0x80] sm:$0xff]  }
  0x20   : > { %2301 = vmatpush3.bf16.msra.mxu0 %v2566_v13  ;;  %v1164_v10 = vld [vmem:[%s2816_s22] sm:$0xf]  ;;  %v2621_v13 = vld [vmem:[%s3221_s3 + $0xc8] sm:$0xff]  }
  0x21   : > { %2321 = vmatpush3.bf16.msra.mxu1 %v2567_v14  ;;  %2302 = vmatprep.subr.bf16.mxu0 %v2674_v1  ;;  %v2619_v11 = vld [vmem:[%s3221_s3 + $0xc0] sm:$0xff]   ;;  %v2622_v14 = vld [vmem:[%s3222_s4 + $0x90] sm:$0xff]  }
  0x22   : > { %2322 = vmatprep.subr.bf16.mxu1 %v2674_v1 }
  0x24   : > { %2303 = vmatpush3.bf16.msra.mxu0 %v2568_v15  ;;  %v2623_v15 = vld [vmem:[%s3221_s3 + $0xd0] sm:$0xff]  }
  0x25   : > { %2323 = vmatpush3.bf16.msra.mxu1 %v2569_v16  ;;  %2328 = vmatprep.subr.bf16.mxu0 %v2674_v1  ;;  %v2624_v16 = vld [vmem:[%s3222_s4 + $0x98] sm:$0xff]  }
  0x26   : > { %2348 = vmatprep.subr.bf16.mxu1 %v2674_v1 }
  0x27   : > { %2305 = vmatmul.mubr.bf16.vlgmr.msra.gmra.mrb[0].mxu0 %v405_v17  ;;  %v2625_v17 = vld [vmem:[%s3221_s3 + $0xd8] sm:$0xff]  }
  0x28   : > { %2325 = vmatmul.mubr.bf16.vlgmr.msra.gmra.mrb[0].mxu1 %v513_v18  ;;  %2329 = vmatpush3.bf16.msra.mxu0 %v2570_v19  ;;  %v2626_v18 = vld [vmem:[%s3222_s4 + $0xa0] sm:$0xff]  }
  0x29   : > { %2349 = vmatpush3.bf16.msra.mxu1 %v2571_v20  ;;  %2330 = vmatprep.subr.bf16.mxu0 %v2674_v1  ;;  %v2627_v19 = vld [vmem:[%s3221_s3 + $0xe0] sm:$0xff]   ;;  %v2628_v20 = vld [vmem:[%s3222_s4 + $0xa8] sm:$0xff]  }
  0x2a   : > { %2350 = vmatprep.subr.bf16.mxu1 %v2674_v1  ;;  %2344 = vmatprep.mubr.msk.bf16.mxu0 %vm2675_vm0, %v2674_v1 }
  0x2b   : > { %2364 = vmatprep.mubr.msk.bf16.mxu1 %vm2675_vm0, %v2674_v1 }
  0x2c   : > { %2331 = vmatpush3.bf16.msra.mxu0 %v2572_v21  ;;  %v2629_v21 = vld [vmem:[%s3221_s3 + $0xe8] sm:$0xff]  }
  0x2d   : > { %2351 = vmatpush3.bf16.msra.mxu1 %v2573_v22  ;;  %2332 = vmatprep.subr.bf16.mxu0 %v2674_v1  ;;  %v2630_v22 = vld [vmem:[%s3222_s4 + $0xb0] sm:$0xff]  }
  0x2e   : > { %2352 = vmatprep.subr.bf16.mxu1 %v2674_v1 }
  0x30   : > { %2333 = vmatpush3.bf16.msra.mxu0 %v2574_v23  ;;  %v2631_v23 = vld [vmem:[%s3221_s3 + $0xf0] sm:$0xff]  }
  0x31   : > { %2353 = vmatpush3.bf16.msra.mxu1 %v2575_v24  ;;  %2334 = vmatprep.subr.bf16.mxu0 %v2674_v1  ;;  %v2632_v24 = vld [vmem:[%s3222_s4 + $0xb8] sm:$0xff]  }
  0x32   : > { %2354 = vmatprep.subr.bf16.mxu1 %v2674_v1 }
  0x34   : > { %2335 = vmatpush3.bf16.msra.mxu0 %v2576_v25  ;;  %v2633_v25 = vld [vmem:[%s3221_s3 + $0xf8] sm:$0xff]  }
  0x35   : > { %2355 = vmatpush3.bf16.msra.mxu1 %v2577_v26  ;;  %2336 = vmatprep.subr.bf16.mxu0 %v2674_v1  ;;  %v1272_v26 = vld [vmem:[%s2889_s23] sm:$0xf] }
  0x36   : > { %2356 = vmatprep.subr.bf16.mxu1 %v2674_v1 }
  0x38   : > { %2337 = vmatpush3.bf16.msra.mxu0 %v2578_v27  ;;  %v2634_v27 = vld [vmem:[%s3221_s3 + $0xc0] sm:$0xff]  }
  0x39   : > { %2357 = vmatpush3.bf16.msra.mxu1 %v2579_v28  ;;  %2338 = vmatprep.subr.bf16.mxu0 %v2674_v1  ;;  %v1381_v28 = vld [vmem:[%s2807_s17] sm:$0xf] }
  0x3a   : > { %2358 = vmatprep.subr.bf16.mxu1 %v2674_v1 }
  0x3c   : > { %2339 = vmatpush3.bf16.msra.mxu0 %v2580_v29  ;;  %v2635_v29 = vld [vmem:[%s3222_s4 + $0xc0] sm:$0xff]  }
  0x3d   : > { %2359 = vmatpush3.bf16.msra.mxu1 %v2581_v30  ;;  %2340 = vmatprep.subr.bf16.mxu0 %v2674_v1  ;;  %v2636_v30 = vld [vmem:[%s3221_s3 + $0xc8] sm:$0xff]  }
  0x3e   : > { %2360 = vmatprep.subr.bf16.mxu1 %v2674_v1 }
  0x40   : > { %2341 = vmatpush3.bf16.msra.mxu0 %v2582_v31  ;;  %v2637_v31 = vld [vmem:[%s3222_s4 + $0xc8] sm:$0xff]  }
  0x41   : > { %2361 = vmatpush3.bf16.msra.mxu1 %v2583_v32  ;;  %2342 = vmatprep.subr.bf16.mxu0 %v2674_v1  ;;  %v2638_v32 = vld [vmem:[%s3221_s3 + $0xd0] sm:$0xff]  }
  0x42   : > { %2362 = vmatprep.subr.bf16.mxu1 %v2674_v1 }
  0x44   : > { %2343 = vmatpush3.bf16.msra.mxu0 %v2584_v33  ;;  %v2639_v33 = vld [vmem:[%s3222_s4 + $0xd0] sm:$0xff]  }
  0x45   : > { %2363 = vmatpush3.bf16.msra.mxu1 %v2585_v34  ;;  %2368 = vmatprep.subr.bf16.mxu0 %v2674_v1  ;;  %v2640_v34 = vld [vmem:[%s3221_s3 + $0xd8] sm:$0xff]  }
  0x46   : > { %2388 = vmatprep.subr.bf16.mxu1 %v2674_v1 }
  0x47   : > { %2345 = vmatmul.mubr.bf16.vlgmr.msra.gmra.mrb[4].mxu0 %v620_v35  ;;  %v2641_v35 = vld [vmem:[%s3222_s4 + $0xd8] sm:$0xff]  }
  0x48   : > { %2365 = vmatmul.mubr.bf16.vlgmr.msra.gmra.mrb[4].mxu1 %v727_v36  ;;  %2369 = vmatpush3.bf16.msra.mxu0 %v2586_v37  ;;  %v2642_v36 = vld [vmem:[%s3221_s3 + $0xe0] sm:$0xff]  }
  0x49   : > { %2389 = vmatpush3.bf16.msra.mxu1 %v2587_v38  ;;  %2370 = vmatprep.subr.bf16.mxu0 %v2674_v1  ;;  %v2643_v37 = vld [vmem:[%s3222_s4 + $0xe0] sm:$0xff]   ;;  %v2644_v38 = vld [vmem:[%s3221_s3 + $0xe8] sm:$0xff]  }
  0x4a   : > { %2390 = vmatprep.subr.bf16.mxu1 %v2674_v1  ;;  %2384 = vmatprep.mubr.msk.bf16.mxu0 %vm2675_vm0, %v2674_v1 }
  0x4b   : > { %2404 = vmatprep.mubr.msk.bf16.mxu1 %vm2675_vm0, %v2674_v1 }
  0x4c   : > { %2371 = vmatpush3.bf16.msra.mxu0 %v2588_v39  ;;  %v2645_v39 = vld [vmem:[%s3222_s4 + $0xe8] sm:$0xff]  }
  0x4d   : > { %2391 = vmatpush3.bf16.msra.mxu1 %v2589_v40  ;;  %2372 = vmatprep.subr.bf16.mxu0 %v2674_v1  ;;  %v2646_v40 = vld [vmem:[%s3221_s3 + $0xf0] sm:$0xff]  }
  0x4e   : > { %2392 = vmatprep.subr.bf16.mxu1 %v2674_v1 }
  0x50   : > { %2373 = vmatpush3.bf16.msra.mxu0 %v2590_v41  ;;  %v2647_v41 = vld [vmem:[%s3222_s4 + $0xf0] sm:$0xff]  }
  0x51   : > { %2393 = vmatpush3.bf16.msra.mxu1 %v2591_v42  ;;  %2374 = vmatprep.subr.bf16.mxu0 %v2674_v1  ;;  %v2648_v42 = vld [vmem:[%s3221_s3 + $0xf8] sm:$0xff]  }
  0x52   : > { %2394 = vmatprep.subr.bf16.mxu1 %v2674_v1 }
  0x54   : > { %2375 = vmatpush3.bf16.msra.mxu0 %v2592_v43  ;;  %v2649_v43 = vld [vmem:[%s3222_s4 + $0xf8] sm:$0xff]  }
  0x55   : > { %2395 = vmatpush3.bf16.msra.mxu1 %v2593_v44  ;;  %2376 = vmatprep.subr.bf16.mxu0 %v2674_v1  ;;  %v1491_v44 = vld [vmem:[%s2816_s22] sm:$0xf] }
  0x56   : > { %2396 = vmatprep.subr.bf16.mxu1 %v2674_v1 }
  0x58   : > { %2377 = vmatpush3.bf16.msra.mxu0 %v2594_v45  ;;  %v1599_v45 = vld [vmem:[%s2889_s23] sm:$0xf]  ;;  %s3197_s23 = scalar_lea.vmem %s3225_s7, %s2177_s30 }
  0x59   : > { %2397 = vmatpush3.bf16.msra.mxu1 %v2595_v46  ;;  %2378 = vmatprep.subr.bf16.mxu0 %v2674_v1 }
  0x5a   : > { %2398 = vmatprep.subr.bf16.mxu1 %v2674_v1 }
  0x5c   : > { %2379 = vmatpush3.bf16.msra.mxu0 %v2596_v47 }
  0x5d   : > { %2399 = vmatpush3.bf16.msra.mxu1 %v2597_v48  ;;  %2380 = vmatprep.subr.bf16.mxu0 %v2674_v1 }
  0x5e   : > { %2400 = vmatprep.subr.bf16.mxu1 %v2674_v1 }
  0x60   : > { %2381 = vmatpush3.bf16.msra.mxu0 %v2598_v49 }
  0x61   : > { %2401 = vmatpush3.bf16.msra.mxu1 %v2599_v50  ;;  %2382 = vmatprep.subr.bf16.mxu0 %v2674_v1 }
  0x62   : > { %2402 = vmatprep.subr.bf16.mxu1 %v2674_v1 }
  0x64   : > { %2383 = vmatpush3.bf16.msra.mxu0 %v2600_v51 }
  0x65   : > { %2403 = vmatpush3.bf16.msra.mxu1 %v2601_v52  ;;  %2408 = vmatprep.subr.bf16.mxu0 %v2674_v1 }
  0x66   : > { %2428 = vmatprep.subr.bf16.mxu1 %v2674_v1 }
  0x67   : > { %2385 = vmatmul.mubr.bf16.vlgmr.msra.gmra.mrb[8].mxu0 %v837_v53 }
  0x68   : > { %2405 = vmatmul.mubr.bf16.vlgmr.msra.gmra.mrb[8].mxu1 %v945_v54  ;;  %2409 = vmatpush3.bf16.msra.mxu0 %v2602_v55 }
  0x69   : > { %2429 = vmatpush3.bf16.msra.mxu1 %v2603_v56  ;;  %2410 = vmatprep.subr.bf16.mxu0 %v2674_v1 }
  0x6a   : > { %2430 = vmatprep.subr.bf16.mxu1 %v2674_v1  ;;  %2424 = vmatprep.mubr.msk.bf16.mxu0 %vm2675_vm0, %v2674_v1 }
  0x6b   : > { %2444 = vmatprep.mubr.msk.bf16.mxu1 %vm2675_vm0, %v2674_v1 }
  0x6c   : > { %2411 = vmatpush3.bf16.msra.mxu0 %v2604_v57 }
  0x6d   : > { %2431 = vmatpush3.bf16.msra.mxu1 %v2605_v58  ;;  %2412 = vmatprep.subr.bf16.mxu0 %v2674_v1 }
  0x6e   : > { %2432 = vmatprep.subr.bf16.mxu1 %v2674_v1 }
  0x70   : > { %2413 = vmatpush3.bf16.msra.mxu0 %v2606_v59 }
  0x71   : > { %2433 = vmatpush3.bf16.msra.mxu1 %v2607_v60  ;;  %2414 = vmatprep.subr.bf16.mxu0 %v2674_v1 }
  0x72   : > { %2434 = vmatprep.subr.bf16.mxu1 %v2674_v1 }
  0x74   : > { %2415 = vmatpush3.bf16.msra.mxu0 %v2608_v61 }
  0x75   : > { %2435 = vmatpush3.bf16.msra.mxu1 %v2609_v62  ;;  %2416 = vmatprep.subr.bf16.mxu0 %v2674_v1 }
  0x76   : > { %2436 = vmatprep.subr.bf16.mxu1 %v2674_v1 }
  0x78   : > { %2417 = vmatpush3.bf16.msra.mxu0 %v2610_v63 }
  0x79   : > { %2437 = vmatpush3.bf16.msra.mxu1 %v2611_v0  ;;  %2418 = vmatprep.subr.bf16.mxu0 %v2674_v1 }
  0x7a   : > { %2438 = vmatprep.subr.bf16.mxu1 %v2674_v1 }
  0x7c   : > { %2419 = vmatpush3.bf16.msra.mxu0 %v2612_v2 }
  0x7d   : > { %2439 = vmatpush3.bf16.msra.mxu1 %v2613_v3  ;;  %2420 = vmatprep.subr.bf16.mxu0 %v2674_v1 }
  0x7e   : > { %2440 = vmatprep.subr.bf16.mxu1 %v2674_v1 }
  0x80   : > { %2421 = vmatpush3.bf16.msra.mxu0 %v2614_v4 }
  0x81   : > { %2441 = vmatpush3.bf16.msra.mxu1 %v2615_v5  ;;  %2422 = vmatprep.subr.bf16.mxu0 %v2674_v1 }
  0x82   : > { %2442 = vmatprep.subr.bf16.mxu1 %v2674_v1 }
  0x84   : > { %2423 = vmatpush3.bf16.msra.mxu0 %v2616_v6 }
  0x85   : > { %2443 = vmatpush3.bf16.msra.mxu1 %v2617_v7  ;;  %2448 = vmatprep.subr.bf16.mxu0 %v2674_v1 }
  0x86   : > { %2468 = vmatprep.subr.bf16.mxu1 %v2674_v1 }
  0x87   : > { %2425 = vmatmul.mubr.bf16.vlgmr.msra.gmra.mrb[12].mxu0 %v1054_v8 }
  0x88   : > { %2445 = vmatmul.mubr.bf16.vlgmr.msra.gmra.mrb[12].mxu1 %v1164_v10  ;;  %2449 = vmatpush3.bf16.msra.mxu0 %v2618_v9 }
  0x89   : > { %2469 = vmatpush3.bf16.msra.mxu1 %v2619_v11  ;;  %2450 = vmatprep.subr.bf16.mxu0 %v2674_v1 }
  0x8a   : > { %2470 = vmatprep.subr.bf16.mxu1 %v2674_v1  ;;  %2464 = vmatprep.mubr.msk.bf16.mxu0 %vm2675_vm0, %v2674_v1 }
  0x8b   : > { %2484 = vmatprep.mubr.msk.bf16.mxu1 %vm2675_vm0, %v2674_v1 }
  0x8c   : > { %2451 = vmatpush3.bf16.msra.mxu0 %v2620_v12 }
  0x8d   : > { %2471 = vmatpush3.bf16.msra.mxu1 %v2621_v13  ;;  %2452 = vmatprep.subr.bf16.mxu0 %v2674_v1 }
  0x8e   : > { %2472 = vmatprep.subr.bf16.mxu1 %v2674_v1 }
  0x90   : > { %2453 = vmatpush3.bf16.msra.mxu0 %v2622_v14 }
  0x91   : > { %2473 = vmatpush3.bf16.msra.mxu1 %v2623_v15  ;;  %2454 = vmatprep.subr.bf16.mxu0 %v2674_v1 }
  0x92   : > { %2474 = vmatprep.subr.bf16.mxu1 %v2674_v1 }
  0x94   : > { %2455 = vmatpush3.bf16.msra.mxu0 %v2624_v16 }
  0x95   : > { %2475 = vmatpush3.bf16.msra.mxu1 %v2625_v17  ;;  %2456 = vmatprep.subr.bf16.mxu0 %v2674_v1 }
  0x96   : > { %2476 = vmatprep.subr.bf16.mxu1 %v2674_v1 }
  0x98   : > { %2457 = vmatpush3.bf16.msra.mxu0 %v2626_v18 }
  0x99   : > { %2477 = vmatpush3.bf16.msra.mxu1 %v2627_v19  ;;  %2458 = vmatprep.subr.bf16.mxu0 %v2674_v1 }
  0x9a   : > { %2478 = vmatprep.subr.bf16.mxu1 %v2674_v1 }
  0x9c   : > { %2459 = vmatpush3.bf16.msra.mxu0 %v2628_v20 }
  0x9d   : > { %2479 = vmatpush3.bf16.msra.mxu1 %v2629_v21  ;;  %2460 = vmatprep.subr.bf16.mxu0 %v2674_v1 }
  0x9e   : > { %2480 = vmatprep.subr.bf16.mxu1 %v2674_v1 }
  0xa0   : > { %2461 = vmatpush3.bf16.msra.mxu0 %v2630_v22 }
  0xa1   : > { %2481 = vmatpush3.bf16.msra.mxu1 %v2631_v23  ;;  %2462 = vmatprep.subr.bf16.mxu0 %v2674_v1 }
  0xa2   : > { %2482 = vmatprep.subr.bf16.mxu1 %v2674_v1 }
  0xa4   : > { %2463 = vmatpush3.bf16.msra.mxu0 %v2632_v24 }
  0xa5   : > { %2483 = vmatpush3.bf16.msra.mxu1 %v2633_v25  ;;  %2488 = vmatprep.subr.bf16.mxu0 %v2674_v1 }
  0xa6   : > { %2508 = vmatprep.subr.bf16.mxu1 %v2674_v1 }
  0xa7   : > { %2465 = vmatmul.mubr.bf16.vlgmr.msra.gmra.mrb[16].mxu0 %v1272_v26 }
  0xa8   : > { %2485 = vmatmul.mubr.bf16.vlgmr.msra.gmra.mrb[16].mxu1 %v1381_v28  ;;  %2489 = vmatpush3.bf16.msra.mxu0 %v2634_v27 }
  0xa9   : > { %2509 = vmatpush3.bf16.msra.mxu1 %v2635_v29  ;;  %2490 = vmatprep.subr.bf16.mxu0 %v2674_v1 }
  0xaa   : > { %2510 = vmatprep.subr.bf16.mxu1 %v2674_v1  ;;  %2504 = vmatprep.mubr.msk.bf16.mxu0 %vm2675_vm0, %v2674_v1 }
  0xab   : > { %2524 = vmatprep.mubr.msk.bf16.mxu1 %vm2675_vm0, %v2674_v1 }
  0xac   : > { %2491 = vmatpush3.bf16.msra.mxu0 %v2636_v30 }
  0xad   : > { %2511 = vmatpush3.bf16.msra.mxu1 %v2637_v31  ;;  %2492 = vmatprep.subr.bf16.mxu0 %v2674_v1 }
  0xae   : > { %2512 = vmatprep.subr.bf16.mxu1 %v2674_v1 }
  0xb0   : > { %2493 = vmatpush3.bf16.msra.mxu0 %v2638_v32 }
  0xb1   : > { %2513 = vmatpush3.bf16.msra.mxu1 %v2639_v33  ;;  %2494 = vmatprep.subr.bf16.mxu0 %v2674_v1 }
  0xb2   : > { %2514 = vmatprep.subr.bf16.mxu1 %v2674_v1 }
  0xb4   : > { %2495 = vmatpush3.bf16.msra.mxu0 %v2640_v34 }
  0xb5   : > { %2515 = vmatpush3.bf16.msra.mxu1 %v2641_v35  ;;  %2496 = vmatprep.subr.bf16.mxu0 %v2674_v1 }
  0xb6   : > { %2516 = vmatprep.subr.bf16.mxu1 %v2674_v1 }
  0xb8   : > { %2497 = vmatpush3.bf16.msra.mxu0 %v2642_v36 }
  0xb9   : > { %2517 = vmatpush3.bf16.msra.mxu1 %v2643_v37  ;;  %2498 = vmatprep.subr.bf16.mxu0 %v2674_v1 }
  0xba   : > { %2518 = vmatprep.subr.bf16.mxu1 %v2674_v1 }
  0xbc   : > { %2499 = vmatpush3.bf16.msra.mxu0 %v2644_v38 }
  0xbd   : > { %2519 = vmatpush3.bf16.msra.mxu1 %v2645_v39  ;;  %2500 = vmatprep.subr.bf16.mxu0 %v2674_v1 }
  0xbe   : > { %2520 = vmatprep.subr.bf16.mxu1 %v2674_v1 }
  0xc0   : > { %2501 = vmatpush3.bf16.msra.mxu0 %v2646_v40 }
  0xc1   : > { %2521 = vmatpush3.bf16.msra.mxu1 %v2647_v41  ;;  %2502 = vmatprep.subr.bf16.mxu0 %v2674_v1 }
  0xc2   : > { %2522 = vmatprep.subr.bf16.mxu1 %v2674_v1 }
  0xc4   : > { %2503 = vmatpush3.bf16.msra.mxu0 %v2648_v42 }
  0xc5   : > { %2523 = vmatpush3.bf16.msra.mxu1 %v2649_v43 }
  0xc7   : > { %2505 = vmatmul.mubr.bf16.vlgmr.msra.gmra.mrb[20].mxu0 %v1491_v44 }
  0xc8   : > { %2525 = vmatmul.mubr.bf16.vlgmr.msra.gmra.mrb[20].mxu1 %v1599_v45 }
  0xfa   : > { %v504_v46 = vpop.f32.mrb[0].mxu0 }
  0xfb   : > { %v510_v47 = vmul.f32 0.35355338, %v504_v46  ;;  %v612_v48 = vpop.f32.mrb[0].mxu1  ;;  %v2306_v49 = vpop.f32.mrb[1].mxu0 }
  0xfc   : > { %v618_v1 = vpack.c.bf16 %v612_v48, %v612_v48  ;;  %v2326_v50 = vpop.f32.mrb[1].mxu1  ;;  %v507_v51 = vpop.f32.mrb[2].mxu0 }
  0xfd   : > { %v511_v52 = vpack.c.bf16 %v510_v47, %v510_v47  ;;  %v615_v53 = vpop.f32.mrb[2].mxu1  ;;  %v2307_v54 = vpop.f32.mrb[3].mxu0 }
  0xfe   : > { %619 = vst [vmem:[%s3185_s9] sm:$0xf] %v618_v1  ;;  %v2327_v55 = vpop.f32.mrb[3].mxu1 }
  0xff   : > { %512 = vst [vmem:[%s3190_s13] sm:$0xf] %v511_v52 }
 0x11a   : > { %v719_v56 = vpop.f32.mrb[4].mxu0 }
 0x11b   : > { %v725_v57 = vpack.c.bf16 %v719_v56, %v719_v56  ;;  %v827_v58 = vpop.f32.mrb[4].mxu1  ;;  %v2346_v59 = vpop.f32.mrb[5].mxu0 }
 0x11c   : > { %v833_v60 = vmul.f32 0.35355338, %v827_v58  ;;  %v2366_v61 = vpop.f32.mrb[5].mxu1  ;;  %v722_v62 = vpop.f32.mrb[6].mxu0 }
 0x11d   : > { %726 = vst [vmem:[%s3197_s23] sm:$0xf] %v725_v57  ;;  %v830_v63 = vpop.f32.mrb[6].mxu1  ;;  %v2347_v0 = vpop.f32.mrb[7].mxu0 }
 0x11e   : > { %v834_v2 = vpack.c.bf16 %v833_v60, %v833_v60  ;;  %v2367_v3 = vpop.f32.mrb[7].mxu1 }
 0x120   : > { %1974 = vst [vmem:[%s3190_s13 + $0x4] sm:$0xf] %v834_v2 }
 0x13a   : > { %v936_v4 = vpop.f32.mrb[8].mxu0 }
 0x13b   : > { %v942_v5 = vpack.c.bf16 %v936_v4, %v936_v4  ;;  %v1045_v6 = vpop.f32.mrb[8].mxu1  ;;  %v2386_v7 = vpop.f32.mrb[9].mxu0 }
 0x13c   : > { %v1051_v8 = vpack.c.bf16 %v1045_v6, %v1045_v6  ;;  %v2406_v9 = vpop.f32.mrb[9].mxu1  ;;  %v939_v10 = vpop.f32.mrb[10].mxu0 }
 0x13d   : > { %1999 = vst [vmem:[%s3185_s9 + $0x4] sm:$0xf] %v942_v5  ;;  %v1048_v11 = vpop.f32.mrb[10].mxu1  ;;  %v2387_v12 = vpop.f32.mrb[11].mxu0 }
 0x13e   : > { %2024 = vst [vmem:[%s3197_s23 + $0x4] sm:$0xf] %v1051_v8  ;;  %v2407_v13 = vpop.f32.mrb[11].mxu1 }
 0x15a   : > { %v1154_v14 = vpop.f32.mrb[12].mxu0 }
 0x15b   : > { %v1160_v15 = vmul.f32 0.35355338, %v1154_v14  ;;  %v1263_v16 = vpop.f32.mrb[12].mxu1  ;;  %v2426_v17 = vpop.f32.mrb[13].mxu0 }
 0x15c   : > { %v1269_v18 = vpack.c.bf16 %v1263_v16, %v1263_v16  ;;  %v2446_v19 = vpop.f32.mrb[13].mxu1  ;;  %v1157_v20 = vpop.f32.mrb[14].mxu0 }
 0x15d   : > { %v1161_v21 = vpack.c.bf16 %v1160_v15, %v1160_v15  ;;  %v1266_v22 = vpop.f32.mrb[14].mxu1  ;;  %v2427_v23 = vpop.f32.mrb[15].mxu0 }
 0x15e   : > { %2074 = vst [vmem:[%s3185_s9 + $0x8] sm:$0xf] %v1269_v18  ;;  %v2447_v24 = vpop.f32.mrb[15].mxu1 }
 0x15f   : > { %2049 = vst [vmem:[%s3190_s13 + $0x8] sm:$0xf] %v1161_v21 }
 0x17a   : > { %v1372_v25 = vpop.f32.mrb[16].mxu0 }
 0x17b   : > { %v1378_v26 = vpack.c.bf16 %v1372_v25, %v1372_v25  ;;  %v1481_v27 = vpop.f32.mrb[16].mxu1  ;;  %v2466_v28 = vpop.f32.mrb[17].mxu0 }
 0x17c   : > { %v1487_v29 = vmul.f32 0.35355338, %v1481_v27  ;;  %v2486_v30 = vpop.f32.mrb[17].mxu1  ;;  %v1375_v31 = vpop.f32.mrb[18].mxu0 }
 0x17d   : > { %2099 = vst [vmem:[%s3197_s23 + $0x8] sm:$0xf] %v1378_v26  ;;  %v1484_v32 = vpop.f32.mrb[18].mxu1  ;;  %v2467_v33 = vpop.f32.mrb[19].mxu0 }
 0x17e   : > { %v1488_v34 = vpack.c.bf16 %v1487_v29, %v1487_v29  ;;  %v2487_v35 = vpop.f32.mrb[19].mxu1 }
 0x180   : > { %2124 = vst [vmem:[%s3190_s13 + $0xc] sm:$0xf] %v1488_v34 }
 0x19a   : > { %v1590_v36 = vpop.f32.mrb[20].mxu0 }
 0x19b   : > { %v1596_v37 = vpack.c.bf16 %v1590_v36, %v1590_v36  ;;  %v1699_v38 = vpop.f32.mrb[20].mxu1  ;;  %v2506_v39 = vpop.f32.mrb[21].mxu0 }
 0x19c   : > { %v1705_v40 = vpack.c.bf16 %v1699_v38, %v1699_v38  ;;  %v2526_v41 = vpop.f32.mrb[21].mxu1  ;;  %v1593_v42 = vpop.f32.mrb[22].mxu0 }
 0x19d   : > { %2149 = vst [vmem:[%s3185_s9 + $0xc] sm:$0xf] %v1596_v37  ;;  %v1702_v43 = vpop.f32.mrb[22].mxu1  ;;  %v2507_v44 = vpop.f32.mrb[23].mxu0 }
 0x19e   : > { %2174 = vst [vmem:[%s3197_s23 + $0xc] sm:$0xf] %v1705_v40  ;;  %v2527_v45 = vpop.f32.mrb[23].mxu1 }
 0x19f PF: > { %s18_s26 = sadd.s32 1, %s2672_s26   ;;  %s3226_s24 = smov %s2668_s25 }
 0x1a0   : > { %p15_p5 = scmp.ge.s32.totalorder %s18_s26, 4   ;;  %s3227_s25 = smov %s3229_s27 }
 0x1a2   :  { %17 = sbr.rel (!%p15_p5) target bundleno = 2 (0x2), region = 115 }

// kernel: multi_head_attention.3
= control target key start
LH: loop header
LB: loop body
LE: loop exit
PB: predicated region body
PF: predicated region fallthrough
CT: control target
= control target key end

     0   :  { %10 = vsyncpa [#allocation6], 0  ;;  %s2348_s0 = inlined_call_operand.vmem [shape: bf16[2,4,8,128], index: 0, kind: input, shape index: {}]   ;;  %s2349_s1 = inlined_call_operand.vmem [shape: bf16[2,4,8,128], index: 1, kind: input, shape index: {}]   ;;  %s2350_s2 = inlined_call_operand.vmem [shape: bf16[2,4,8,128], index: 2, kind: input, shape index: {}]   ;;  %s2351_s3 = inlined_call_operand.vmem [shape: bf16[4,128,128], index: 3, kind: input, shape index: {}]   ;;  %s2352_s4 = inlined_call_operand.vmem [shape: f32[1,128], index: 4, kind: input, shape index: {}]   ;;  %s2353_s5 = inlined_call_operand.hbm [shape: f32[2,8,128], index: 5, kind: output, shape index: {}]  }
   0x1   :  { %12 = vsyncpa [#allocation6 + $0x1], 0  ;;  %s1964_s18 = smov 0   ;;  %s1966_s19 = smov 0  }
   0x2   :  { %s1968_s20 = smov 0   ;;  %s1970_s21 = smov 0  }
   0x3   :  { %s1972_s22 = smov 0   ;;  %s1974_s23 = smov 0  }
   0x4 LB: > { %s1438_s24 = sadd.s32 4294967295, %s1927_s23   ;;  %s1439_s25 = sadd.s32 4294967294, %s1927_s23   ;;  %s1927_s23 = sphi %s1974_s23, %s18_s23   ;;  %s1923_s22 = sphi %s1972_s22, %s2360_s22   ;;  %s1919_s21 = sphi %s1970_s21, %s2359_s21   ;;  %s1915_s20 = sphi %s1968_s20, %s2358_s20   ;;  %s1911_s19 = sphi %s1966_s19, %s2357_s19   ;;  %s1907_s18 = sphi %s1964_s18, %s2356_s18  }
   0x5   : > { %s37_s26 = sadd.s32 1, %s1923_s22  ;;  %s172_s27 = sadd.s32 1, %s1915_s20 }
   0x6   : > { %p39_p0 = scmp.ge.s32.totalorder %s37_s26, 2  ;;  %p182_p1 = scmp.ne.s32.totalorder %s1915_s20, %s1911_s19 }
   0x7   : > { %p183_p2 = scmp.eq.s32.totalorder %s1438_s24, 1  ;;  %p188_p3 = scmp.ne.s32.totalorder %s1911_s19, %s1907_s18 }
   0x8   : > { %s2362_s26 = smov (%p39_p0, %s37_s26), 0  ;;  %p189_p5 = scmp.eq.s32.totalorder %s1439_s25, 1 }
   0x9   : > { %p2004_p4 = por %p183_p2, %p182_p1  ;;  %s167_s29 = ssub.s32 %s1923_s22, %s2362_s26 }
   0xa   : > { %p1442_p6 = scmp.ge.s32.totalorder %s1927_s23, 1  ;;  %p170_p7 = scmp.eq.s32.totalorder %s167_s29, 0 }
   0xb   : > { %p2011_p8 = por %p189_p5, %p188_p3  ;;  %p246_p9 = scmp.lt.s32.totalorder %s1927_s23, 3 }
   0xc   : > { %s2017_s6 = scalar_select %p170_p7, %s1915_s20, %s172_s27  }
   0xd   : > { %p247_p10 = pnand %p1442_p6, %p246_p9 }
   0xe   : > { %p293_p11 = scmp.lt.s32.totalorder (!%p247_p10), %s1919_s21, 1  ;;  %v1929_v0 = vmov (!%p247_p10), 0.0   ;;  %vm1930_vm0 = vmmov (!%p247_p10), 0   ;;  %vm322_vm1 = vcmask (!%p247_p10), 7168   ;;  %v1931_v9 = vmov (!%p247_p10), -inf   ;;  %s1933_s24 = smov (!%p247_p10), [#allocation5]  }
   0xf   : > { %250 = sbr.rel (%p247_p10) target bundleno = 1098 (0x44a), region = 40  ;;  %1594 = vmatprep.subr.bf16.mxu0 (!%p247_p10), %v1929_v0  ;;  %1596 = vmatprep.mubr.msk.bf16.mxu0 (!%p247_p10), %vm1930_vm0, %v1929_v0  ;;  %323 = vst.msk [vmem:[#allocation3] sm:$0xff] (!%p247_p10), %vm322_vm1, %v1931_v9  ;;  %324 = vst.msk [vmem:[#allocation3 + $0x8] sm:$0xff] (!%p247_p10), %vm322_vm1, %v1931_v9  ;;  %vm507_vm2 = vcmask (!%p247_p10), 64512   ;;  %v1932_v30 = vmov (!%p247_p10), 0   ;;  %vm636_vm3 = vcmask (!%p247_p10), 1043456  }
  0x10   : > { %1600 = vmatprep.subr.bf16.mxu1 (!%p247_p10), %v1929_v0  ;;  %1602 = vmatprep.mubr.msk.bf16.mxu1 (!%p247_p10), %vm1930_vm0, %v1929_v0  ;;  %325 = vst.msk [vmem:[#allocation3 + $0x10] sm:$0xff] (!%p247_p10), %vm322_vm1, %v1931_v9  ;;  %326 = vst.msk [vmem:[#allocation3 + $0x18] sm:$0xff] (!%p247_p10), %vm322_vm1, %v1931_v9  ;;  %s1853_s25 = sshll.u32 (!%p247_p10), %s1933_s24, 4  ;;  %s1854_s25 = int_to_ptr.vmem [resolvable:$false] %s1853_s25 }
  0x11   : > { %327 = vst.msk [vmem:[#allocation4] sm:$0xff] (!%p247_p10), %vm322_vm1, %v1929_v0  ;;  %328 = vst.msk [vmem:[#allocation4 + $0x8] sm:$0xff] (!%p247_p10), %vm322_vm1, %v1929_v0  ;;  %1791 = vset.pattern.permute.xlu0 (!%p247_p10), %v1932_v30  ;;  %1792 = vset.pattern.permute.xlu1 (!%p247_p10), %v1932_v30  ;;  %s1855_s27 = scalar_lea.vmem (!%p247_p10), %s1854_s25, 256 }
  0x12   : > { %329 = vst.msk [vmem:[#allocation4 + $0x10] sm:$0xff] (!%p247_p10), %vm322_vm1, %v1929_v0  ;;  %330 = vst.msk [vmem:[#allocation4 + $0x18] sm:$0xff] (!%p247_p10), %vm322_vm1, %v1929_v0 }
  0x16   : > { %s294_s7 = scalar_select %p293_p11, %s1919_s21, 1  ;;  %v2074_v31 = vld [vmem:[#allocation3] sm:$0xff]  ;;  %v2076_v32 = vld [vmem:[#allocation3 + $0x8] sm:$0xff] }
  0x17   : > { %v2093_v39 = vld [vmem:[#allocation3 + $0x10] sm:$0xff]  ;;  %v2095_v40 = vld [vmem:[#allocation3 + $0x18] sm:$0xff] }
  0x18   : > { %s2027_s8 = sshll.u32 %s294_s7, 4  ;;  %s290_s7 = sand.u32 1, %s1911_s19  }
  0x19   : > { %s308_s11 = scalar_lea.vmem %s2349_s1, %s2027_s8  ;;  %s300_s14 = scalar_lea.vmem %s2348_s0, %s2027_s8 }
  0x1a   : > { %v339_v1 = vld [vmem:[%s308_s11] sm:$0xf]  ;;  %v340_v2 = vld [vmem:[%s308_s11 + $0x4] sm:$0xf]  ;;  %v341_v5 = vld [vmem:[%s308_s11 + $0x8] sm:$0xf]  ;;  %s316_s17 = scalar_lea.vmem %s2350_s2, %s2027_s8 }
  0x1b   : > { %1595 = vmatpush3.bf16.xpose.msra.mxu0 %v339_v1  ;;  %1601 = vmatpush3.bf16.xpose.msra.mxu1 %v340_v2  ;;  %v335_v3 = vld [vmem:[%s300_s14] sm:$0xf]  ;;  %v336_v4 = vld [vmem:[%s300_s14 + $0x4] sm:$0xf]  ;;  %v342_v6 = vld [vmem:[%s308_s11 + $0xc] sm:$0xf] }
  0x1c   : > { %1606 = vmatprep.subr.bf16.mxu0 %v1929_v0  ;;  %1612 = vmatprep.subr.bf16.mxu1 %v1929_v0  ;;  %v337_v7 = vld [vmem:[%s300_s14 + $0x8] sm:$0xf]  ;;  %v338_v8 = vld [vmem:[%s300_s14 + $0xc] sm:$0xf]  ;;  %v629_v47 = vld [vmem:[%s316_s17] sm:$0xf] }
  0x1d   : > { %v638_v48 = vsel %vm636_vm3, %v629_v47, 0  ;;  %v631_v49 = vld [vmem:[%s316_s17 + $0x8] sm:$0xf]  ;;  %v630_v51 = vld [vmem:[%s316_s17 + $0x4] sm:$0xf]  ;;  %s1443_s8 = sshll.u32 %s290_s7, 3 }
  0x1e   : > { %v730_v50 = vsel %vm636_vm3, %v631_v49, 0  ;;  %v684_v52 = vsel %vm636_vm3, %v630_v51, 0  ;;  %v632_v53 = vld [vmem:[%s316_s17 + $0xc] sm:$0xf]  ;;  %v1804_v51 = vld [vmem:[%s2351_s3 + $0xa0] sm:$0xff]   ;;  %s1536_s11 = sshll.u32 %s1919_s21, 7 }
  0x1f   : > { %v776_v54 = vsel %vm636_vm3, %v632_v53, 0  ;;  %s292_s12 = scalar_lea.vmem [#allocation5], %s1443_s8  ;;  %s2301_s16 = scalar_lea.hbm %s2353_s5, %s1536_s11 }
  0x20   : > { %s1325_s13 = sshll.u32 %s292_s12, 4  ;;  %s1311_s21 = scalar_lea.sflag [#allocation6], %s290_s7  ;;  %s2303_s13 = int_to_ptr.vmem [resolvable:$true] %s1325_s13 }
  0x21   : > { %s1849_s17 = scalar_lea.vmem %s2303_s13, 128  ;;  %p1856_p1 = scmp.lt.s32.totalorder %s2303_s13, %s1854_s25 }
  0x22   : > { %1597 = vmatmul.mubr.bf16.vlgmr.msra.gmra.mrb[0].mxu0 %v335_v3  ;;  %1603 = vmatmul.mubr.bf16.vlgmr.msra.gmra.mrb[0].mxu1 %v336_v4  ;;  %p1850_p12 = scmp.ne.s32.totalorder %s2303_s13, %s1849_s17  ;;  %p1857_p2 = scmp.lt.s32.totalorder %s1855_s27, %s1849_s17 }
  0x23   : > { %1607 = vmatpush3.bf16.xpose.msra.mxu0 %v341_v5  ;;  %1608 = vmatprep.mubr.msk.bf16.mxu0 %vm1930_vm0, %v1929_v0 }
  0x24   : > { %1613 = vmatpush3.bf16.xpose.msra.mxu1 %v342_v6  ;;  %1614 = vmatprep.mubr.msk.bf16.mxu1 %vm1930_vm0, %v1929_v0  ;;  %p1851_p13 = pnand %p1850_p12, %p2004_p4  ;;  %p1858_p3 = por %p1857_p2, %p1856_p1 }
  0x25   : > { %1618 = vmatprep.subr.bf16.mxu0 %v1929_v0  ;;  %1624 = vmatprep.subr.bf16.mxu1 %v1929_v0 }
  0x26   : > { %p1852_p0 = pneg %p1851_p13 }
  0x28   : > { %p1859_p5 = pnand %p1858_p3, %p1852_p0 }
  0x2a   : > { %1609 = vmatmul.mubr.bf16.vlgmr.msra.gmra.mrb[4].mxu0 %v337_v7 }
  0x2b   : > { %1615 = vmatmul.mubr.bf16.vlgmr.msra.gmra.mrb[4].mxu1 %v338_v8  ;;  %1620 = vmatprep.mubr.msk.bf16.mxu0 %vm1930_vm0, %v1929_v0 }
  0x2c   : > { %1626 = vmatprep.mubr.msk.bf16.mxu1 %vm1930_vm0, %v1929_v0  ;;  %1619 = vmatpush3.bf16.msra.mxu0 %v638_v48 }
  0x2d   : > { %1630 = vmatprep.subr.bf16.mxu0 %v1929_v0  ;;  %1625 = vmatpush3.bf16.msra.mxu1 %v684_v52 }
  0x2e   : > { %1636 = vmatprep.subr.bf16.mxu1 %v1929_v0 }
  0xf5   : > { %v2061_v10 = vpop.f32.mrb[0].mxu0  ;;  %v2063_v11 = vpop.f32.mrb[0].mxu1 }
  0xf6   : > { %v1598_v12 = vpop.f32.mrb[1].mxu0  ;;  %v508_v13 = vsel %vm507_vm2, %v2061_v10, -inf  ;;  %v1604_v14 = vpop.f32.mrb[1].mxu1  ;;  %v511_v15 = vsel %vm507_vm2, %v2063_v11, -inf }
  0xf7   : > { %509 = vmax.xlane.f32.xlu0 %v508_v13  ;;  %v380_v16 = vpop.f32.mrb[2].mxu0  ;;  %512 = vmax.xlane.f32.xlu1 %v511_v15  ;;  %v420_v17 = vpop.f32.mrb[2].mxu1 }
  0xf8   : > { %v1599_v18 = vpop.f32.mrb[3].mxu0  ;;  %v1605_v19 = vpop.f32.mrb[3].mxu1  ;;  %v1793_v16 = vld [vmem:[%s2351_s3] sm:$0xff]  }
  0xf9   : > { %v1796_v17 = vld [vmem:[%s2351_s3 + $0x80] sm:$0xff]   ;;  %v1794_v18 = vld [vmem:[%s2351_s3 + $0x8] sm:$0xff]  }
  0xfa   : > { %v1798_v19 = vld [vmem:[%s2351_s3 + $0x88] sm:$0xff]  }
  0xfd   : > { %v457_v20 = vpop.f32.mrb[4].mxu0 }
  0xfe   : > { %v1610_v21 = vpop.f32.mrb[5].mxu0  ;;  %v514_v22 = vsel %vm507_vm2, %v457_v20, -inf  ;;  %v2070_v23 = vpop.f32.mrb[4].mxu1 }
  0xff   : > { %515 = vmax.xlane.f32.xlu0 %v514_v22  ;;  %v460_v24 = vpop.f32.mrb[6].mxu0  ;;  %v517_v25 = vsel %vm507_vm2, %v2070_v23, -inf  ;;  %v1616_v26 = vpop.f32.mrb[5].mxu1  ;;  %v1800_v21 = vld [vmem:[%s2351_s3 + $0x90] sm:$0xff]   ;;  %v1797_v22 = vld [vmem:[%s2351_s3 + $0x18] sm:$0xff]  }
 0x100   : > { %v1611_v27 = vpop.f32.mrb[7].mxu0  ;;  %518 = vmax.xlane.f32.xlu1 %v517_v25  ;;  %v500_v28 = vpop.f32.mrb[6].mxu1 }
 0x101   : > { %v1617_v29 = vpop.f32.mrb[7].mxu1  ;;  %v568_v28 = vld [vmem:[#allocation4] sm:$0xff] }
 0x184   : > { %v510_v33 = vpop.xlane.xlu0 %509  ;;  %v513_v34 = vpop.xlane.xlu1 %512 }
 0x185   : > { %v2079_v35 = vmax.f32 %v2074_v31, %v510_v33  ;;  %v2082_v36 = vmax.f32 %v2076_v32, %v513_v34 }
 0x187   : > { %v524_v37 = vsub.f32 %v2074_v31, %v2079_v35  ;;  %826 = vst.msk [vmem:[#allocation3] sm:$0xff] %vm322_vm1, %v2079_v35  ;;  %538 = vperm.xlu0 %1791, %v2079_v35   ;;  %v525_v38 = vsub.f32 %v2076_v32, %v2082_v36  ;;  %827 = vst.msk [vmem:[#allocation3 + $0x8] sm:$0xff] %vm322_vm1, %v2082_v36  ;;  %v570_v35 = vld [vmem:[#allocation4 + $0x10] sm:$0xff]  ;;  %v569_v32 = vld [vmem:[#allocation4 + $0x8] sm:$0xff] }
 0x189   : > { %v528_v24 = vmul.f32 1.442695, %v524_v37  ;;  %v530_v26 = vmul.f32 1.442695, %v525_v38 }
 0x18c   : > { %v516_v41 = vpop.xlane.xlu0 %515 }
 0x18d   : > { %v2098_v42 = vmax.f32 %v2093_v39, %v516_v41  ;;  %v519_v43 = vpop.xlane.xlu1 %518 }
 0x18e   : > { %v2101_v44 = vmax.f32 %v2095_v40, %v519_v43  ;;  %v1802_v43 = vld [vmem:[%s2351_s3 + $0x98] sm:$0xff]  }
 0x18f   : > { %v526_v45 = vsub.f32 %v2093_v39, %v2098_v42  ;;  %828 = vst.msk [vmem:[#allocation3 + $0x10] sm:$0xff] %vm322_vm1, %v2098_v42  ;;  %548 = vperm.xlu1 %1792, %v2098_v42  }
 0x190   : > { %v527_v46 = vsub.f32 %v2095_v40, %v2101_v44  ;;  %829 = vst.msk [vmem:[#allocation3 + $0x18] sm:$0xff] %vm322_vm1, %v2101_v44  ;;  %v1801_v40 = vld [vmem:[%s2351_s3 + $0x28] sm:$0xff]  }
 0x191   : > { %v532_v25 = vmul.f32 1.442695, %v526_v45 }
 0x192   : > { %v534_v29 = vmul.f32 1.442695, %v527_v46  ;;  %v571_v46 = vld [vmem:[#allocation4 + $0x18] sm:$0xff] }
 0x193   : > { %543 = vperm.xlu1 %1792, %v2082_v36  }
 0x197   : > { %553 = vperm.xlu1 %1792, %v2101_v44  }
 0x206   : > { %v539_v55 = vpop.permute.xlu0 %538 }
 0x207   : > { %v556_v56 = vsub.f32 %v2061_v10, %v539_v55  ;;  %v1806_v55 = vld [vmem:[%s2351_s3 + $0xa8] sm:$0xff]  }
 0x209   : > { %v560_v57 = vmul.f32 1.442695, %v556_v56 }
 0x20b   : > { %1825 = vpow2.f32 %v560_v57  ;;  %v1807_v57 = vld [vmem:[%s2351_s3 + $0xb0] sm:$0xff]  }
 0x20e   : > { %v549_v58 = vpop.permute.xlu1 %548 }
 0x20f   : > { %v558_v59 = vsub.f32 %v457_v20, %v549_v58  ;;  %v1795_v20 = vld [vmem:[%s2351_s3 + $0x10] sm:$0xff]  }
 0x211   : > { %v564_v60 = vmul.f32 1.442695, %v558_v59  ;;  %v1809_v59 = vld [vmem:[%s2351_s3 + $0xb8] sm:$0xff]  }
 0x212   : > { %v544_v61 = vpop.permute.xlu1 %543 }
 0x213   : > { %1827 = vpow2.f32 %v564_v60  ;;  %v557_v62 = vsub.f32 %v2063_v11, %v544_v61 }
 0x215   : > { %v1826_v63 = vpop.eup %1825  ;;  %v562_v1 = vmul.f32 1.442695, %v557_v62 }
 0x216   : > { %v554_v2 = vpop.permute.xlu1 %553  ;;  %v576_v3 = vsel %vm507_vm2, %v1826_v63, 0.0  ;;  %v625_v4 = vpack.c.bf16 %v1826_v63, %v1826_v63 }
 0x217   : > { %1829 = vpow2.f32 %v562_v1  ;;  %v559_v5 = vsub.f32 %v2070_v23, %v554_v2  ;;  %577 = vadd.xlane.f32.xlu1 %v576_v3  ;;  %v1799_v23 = vld [vmem:[%s2351_s3 + $0x20] sm:$0xff]  }
 0x218   : > { %1621 = vmatmul.mubr.msk.bf16.vlgmr.msra.gmra.mrb[8].mxu0 %vm507_vm2, %v625_v4 }
 0x219   : > { %v566_v6 = vmul.f32 1.442695, %v559_v5  ;;  %1631 = vmatpush3.bf16.msra.mxu0 %v730_v50  ;;  %1632 = vmatprep.mubr.msk.bf16.mxu0 %vm1930_vm0, %v1929_v0  ;;  %v1803_v50 = vld [vmem:[%s2351_s3 + $0x30] sm:$0xff]  }
 0x21a   : > { %1682 = vmatprep.subr.bf16.mxu0 %v1929_v0 }
 0x21b   : > { %1831 = vpow2.f32 %v566_v6 }
 0x21c   : > { %1833 = vpow2.f32 %v528_v24  ;;  %v1810_v24 = vld [vmem:[%s2351_s3 + $0x48] sm:$0xff]  }
 0x21d   : > { %v1828_v7 = vpop.eup %1827  ;;  %1835 = vpow2.f32 %v532_v25 }
 0x21e   : > { %v582_v8 = vsel %vm507_vm2, %v1828_v7, 0.0  ;;  %v627_v9 = vpack.c.bf16 %v1828_v7, %v1828_v7  ;;  %1837 = vpow2.f32 %v530_v26 }
 0x21f   : > { %583 = vadd.xlane.f32.xlu0 %v582_v8  ;;  %1839 = vpow2.f32 %v534_v29  ;;  %v1812_v29 = vld [vmem:[%s2351_s3 + $0xc0] sm:$0xff]  }
 0x220   : > { %1633 = vmatmul.mubr.msk.bf16.vlgmr.msra.gmra.mrb[12].mxu0 %vm507_vm2, %v627_v9 }
 0x221   : > { %v1830_v10 = vpop.eup %1829  ;;  %1698 = vmatprep.mubr.msk.bf16.mxu0 %vm1930_vm0, %v1929_v0  ;;  %1683 = vmatpush3.bf16.msra.mxu0 %v1796_v17 }
 0x222   : > { %v579_v11 = vsel %vm507_vm2, %v1830_v10, 0.0  ;;  %v626_v12 = vpack.c.bf16 %v1830_v10, %v1830_v10  ;;  %1684 = vmatprep.subr.bf16.mxu0 %v1929_v0 }
 0x223   : > { %580 = vadd.xlane.f32.xlu1 %v579_v11 }
 0x224   : > { %1627 = vmatmul.mubr.msk.bf16.vlgmr.msra.gmra.mrb[8].mxu1 %vm507_vm2, %v626_v12 }
 0x225   : > { %v1832_v13 = vpop.eup %1831  ;;  %1637 = vmatpush3.bf16.msra.mxu1 %v776_v54  ;;  %1638 = vmatprep.mubr.msk.bf16.mxu1 %vm1930_vm0, %v1929_v0  ;;  %v1805_v54 = vld [vmem:[%s2351_s3 + $0x38] sm:$0xff]  }
 0x226   : > { %v585_v14 = vsel %vm507_vm2, %v1832_v13, 0.0  ;;  %1642 = vmatprep.subr.bf16.mxu1 %v1929_v0  ;;  %v628_v15 = vpack.c.bf16 %v1832_v13, %v1832_v13  ;;  %1685 = vmatpush3.bf16.msra.mxu0 %v1798_v19  ;;  %v1834_v27 = vpop.eup %1833 }
 0x227   : > { %586 = vadd.xlane.f32.xlu1 %v585_v14  ;;  %1686 = vmatprep.subr.bf16.mxu0 %v1929_v0  ;;  %v572_v30 = vmul.f32 %v1834_v27, %v568_v28  ;;  %v1836_v34 = vpop.eup %1835  ;;  %v1811_v28 = vld [vmem:[%s2351_s3 + $0x50] sm:$0xff]  }
 0x228   : > { %v574_v37 = vmul.f32 %v1836_v34, %v570_v35  ;;  %v1838_v39 = vpop.eup %1837  ;;  %v1815_v35 = vld [vmem:[%s2351_s3 + $0x60] sm:$0xff]  }
 0x229   : > { %v573_v42 = vmul.f32 %v1838_v39, %v569_v32  ;;  %v1840_v44 = vpop.eup %1839  ;;  %v1818_v32 = vld [vmem:[%s2351_s3 + $0xd8] sm:$0xff]  }
 0x22a   : > { %1687 = vmatpush3.bf16.msra.mxu0 %v1800_v21  ;;  %v575_v48 = vmul.f32 %v1840_v44, %v571_v46  ;;  %v1808_v21 = vld [vmem:[%s2351_s3 + $0x40] sm:$0xff]   ;;  %v1821_v46 = vld [vmem:[%s2351_s3 + $0x78] sm:$0xff]  }
 0x22b   : > { %1688 = vmatprep.subr.bf16.mxu0 %v1929_v0 }
 0x22c   : > { %1639 = vmatmul.mubr.msk.bf16.vlgmr.msra.gmra.mrb[12].mxu1 %vm507_vm2, %v628_v15 }
 0x22d   : > { %1658 = vmatprep.mubr.msk.bf16.mxu1 %vm1930_vm0, %v1929_v0  ;;  %1643 = vmatpush3.bf16.msra.mxu1 %v1793_v16 }
 0x22e   : > { %1644 = vmatprep.subr.bf16.mxu1 %v1929_v0  ;;  %1689 = vmatpush3.bf16.msra.mxu0 %v1802_v43 }
 0x22f   : > { %1690 = vmatprep.subr.bf16.mxu0 %v1929_v0 }
 0x231   : > { %1645 = vmatpush3.bf16.msra.mxu1 %v1794_v18 }
 0x232   : > { %1646 = vmatprep.subr.bf16.mxu1 %v1929_v0  ;;  %1691 = vmatpush3.bf16.msra.mxu0 %v1804_v51 }
 0x233   : > { %1692 = vmatprep.subr.bf16.mxu0 %v1929_v0 }
 0x235   : > { %1647 = vmatpush3.bf16.msra.mxu1 %v1795_v20 }
 0x236   : > { %1648 = vmatprep.subr.bf16.mxu1 %v1929_v0  ;;  %1693 = vmatpush3.bf16.msra.mxu0 %v1806_v55 }
 0x237   : > { %1694 = vmatprep.subr.bf16.mxu0 %v1929_v0 }
 0x239   : > { %1649 = vmatpush3.bf16.msra.mxu1 %v1797_v22 }
 0x23a   : > { %1650 = vmatprep.subr.bf16.mxu1 %v1929_v0  ;;  %1695 = vmatpush3.bf16.msra.mxu0 %v1807_v57 }
 0x23b   : > { %1696 = vmatprep.subr.bf16.mxu0 %v1929_v0 }
 0x23d   : > { %1651 = vmatpush3.bf16.msra.mxu1 %v1799_v23 }
 0x23e   : > { %1652 = vmatprep.subr.bf16.mxu1 %v1929_v0  ;;  %1697 = vmatpush3.bf16.msra.mxu0 %v1809_v59 }
 0x23f   : > { %1702 = vmatprep.subr.bf16.mxu0 %v1929_v0 }
 0x241   : > { %1653 = vmatpush3.bf16.msra.mxu1 %v1801_v40  ;;  %v1820_v40 = vld [vmem:[%s2351_s3 + $0xe0] sm:$0xff]  }
 0x242   : > { %1654 = vmatprep.subr.bf16.mxu1 %v1929_v0 }
 0x245   : > { %1655 = vmatpush3.bf16.msra.mxu1 %v1803_v50  ;;  %v1823_v50 = vld [vmem:[%s2351_s3 + $0xf0] sm:$0xff]  }
 0x246   : > { %1656 = vmatprep.subr.bf16.mxu1 %v1929_v0 }
 0x249   : > { %1657 = vmatpush3.bf16.msra.mxu1 %v1805_v54  ;;  %v1824_v54 = vld [vmem:[%s2351_s3 + $0xf8] sm:$0xff]  }
 0x24a   : > { %1662 = vmatprep.subr.bf16.mxu1 %v1929_v0 }
 0x2a4   : > { %v578_v31 = vpop.xlane.xlu1 %577 }
 0x2a5   : > { %v588_v33 = vadd.f32 %v578_v31, %v572_v30  ;;  %v1813_v31 = vld [vmem:[%s2351_s3 + $0x58] sm:$0xff]  }
 0x2a7   : > { %593 = vst.msk [vmem:[#allocation4] sm:$0xff] %vm322_vm1, %v588_v33  ;;  %v1814_v33 = vld [vmem:[%s2351_s3 + $0xc8] sm:$0xff]  }
 0x2ac   : > { %v584_v41 = vpop.xlane.xlu0 %583 }
 0x2ad   : > { %v590_v36 = vadd.f32 %v584_v41, %v574_v37  ;;  %v1816_v37 = vld [vmem:[%s2351_s3 + $0xd0] sm:$0xff]   ;;  %v1817_v41 = vld [vmem:[%s2351_s3 + $0x68] sm:$0xff]  }
 0x2ae   : > { %v835_v38 = vld [vmem:[#allocation4] sm:$0xff] }
 0x2af   : > { %595 = vst.msk [vmem:[#allocation4 + $0x10] sm:$0xff] %vm322_vm1, %v590_v36  ;;  %838 = vperm.xlu1 %1792, %v835_v38  }
 0x2b0   : > { %v581_v45 = vpop.xlane.xlu1 %580 }
 0x2b1   : > { %v589_v47 = vadd.f32 %v581_v45, %v573_v42  ;;  %v1819_v42 = vld [vmem:[%s2351_s3 + $0x70] sm:$0xff]  }
 0x2b3   : > { %594 = vst.msk [vmem:[#allocation4 + $0x8] sm:$0xff] %vm322_vm1, %v589_v47  ;;  %603 = vperm.xlu1 %1792, %v1834_v27   ;;  %v1822_v47 = vld [vmem:[%s2351_s3 + $0xe8] sm:$0xff]  }
 0x2b4   : > { %v587_v49 = vpop.xlane.xlu1 %586 }
 0x2b5   : > { %v591_v52 = vadd.f32 %v587_v49, %v575_v48 }
 0x2b6   : > { %v1076_v53 = vld [vmem:[#allocation4 + $0x10] sm:$0xff] }
 0x2b7   : > { %596 = vst.msk [vmem:[#allocation4 + $0x18] sm:$0xff] %vm322_vm1, %v591_v52  ;;  %613 = vperm.xlu1 %1792, %v1836_v34   ;;  %1079 = vperm.xlu0 %1791, %v1076_v53  }
 0x2ba   : > { %v958_v56 = vld [vmem:[#allocation4 + $0x8] sm:$0xff] }
 0x2bb   : > { %961 = vperm.xlu1 %1792, %v958_v56  }
 0x2be   : > { %v1194_v58 = vld [vmem:[#allocation4 + $0x18] sm:$0xff] }
 0x2bf   : > { %608 = vperm.xlu1 %1792, %v1838_v39   ;;  %1197 = vperm.xlu0 %1791, %v1194_v58  }
 0x2c3   : > { %618 = vperm.xlu0 %1791, %v1840_v44  }
 0x2eb   : > { %v674_v60 = vpop.f32.mrb[8].mxu0 }
 0x2ec   : > { %v1622_v61 = vpop.f32.mrb[9].mxu0 }
 0x2ed   : > { %v677_v62 = vpop.f32.mrb[10].mxu0  ;;  %v1462_v61 = vld [vmem:[%s2352_s4] ss:$0 sm:$0xff] }
 0x2ee   : > { %v1623_v63 = vpop.f32.mrb[11].mxu0 }
 0x2f3   : > { %v766_v1 = vpop.f32.mrb[12].mxu0 }
 0x2f4   : > { %v1634_v2 = vpop.f32.mrb[13].mxu0 }
 0x2f5   : > { %v769_v3 = vpop.f32.mrb[14].mxu0 }
 0x2f6   : > { %v1635_v4 = vpop.f32.mrb[15].mxu0 }
 0x2f7   : > { %v2221_v5 = vpop.f32.mrb[8].mxu1 }
 0x2f8   : > { %v1628_v6 = vpop.f32.mrb[9].mxu1 }
 0x2f9   : > { %v723_v7 = vpop.f32.mrb[10].mxu1 }
 0x2fa   : > { %v1629_v8 = vpop.f32.mrb[11].mxu1 }
 0x2ff   : > { %v2223_v9 = vpop.f32.mrb[12].mxu1 }
 0x300   : > { %v1640_v10 = vpop.f32.mrb[13].mxu1 }
 0x301   : > { %v815_v11 = vpop.f32.mrb[14].mxu1 }
 0x302   : > { %v1641_v12 = vpop.f32.mrb[15].mxu1 }
 0x32e   : > { %v839_v13 = vpop.permute.xlu1 %838 }
 0x32f   : > { %1841 = vrcp.f32 %v839_v13 }
 0x332   : > { %v604_v14 = vpop.permute.xlu1 %603 }
 0x333   : > { %v621_v15 = vmul.f32 0.0, %v604_v14 }
 0x335   : > { %v818_v17 = vadd.f32 %v674_v60, %v621_v15 }
 0x336   : > { %v1080_v16 = vpop.permute.xlu0 %1079  ;;  %v614_v19 = vpop.permute.xlu1 %613 }
 0x337   : > { %1843 = vrcp.f32 %v1080_v16  ;;  %v623_v23 = vmul.f32 0.0, %v614_v19 }
 0x339   : > { %v1842_v18 = vpop.eup %1841  ;;  %v820_v25 = vadd.f32 %v766_v1, %v623_v23 }
 0x33a   : > { %v842_v20 = vmul.f32 %v1842_v18, %v818_v17  ;;  %v962_v34 = vpop.permute.xlu1 %961 }
 0x33b   : > { %1845 = vrcp.f32 %v962_v34 }
 0x33c   : > { %v843_v22 = vpack.c.bf16 %v842_v20, %v842_v20 }
 0x33e   : > { %1659 = vmatmul.mubr.bf16.vlgmr.msra.gmra.mrb[16].mxu1 %v843_v22  ;;  %v609_v39 = vpop.permute.xlu1 %608  ;;  %v1198_v36 = vpop.permute.xlu0 %1197 }
 0x33f   : > { %1663 = vmatpush3.bf16.msra.mxu1 %v1808_v21  ;;  %1678 = vmatprep.mubr.msk.bf16.mxu1 %vm1930_vm0, %v1929_v0  ;;  %v622_v38 = vmul.f32 0.0, %v609_v39  ;;  %1847 = vrcp.f32 %v1198_v36 }
 0x340   : > { %1664 = vmatprep.subr.bf16.mxu1 %v1929_v0 }
 0x341   : > { %v1844_v26 = vpop.eup %1843  ;;  %v819_v44 = vadd.f32 %v2221_v5, %v622_v38 }
 0x342   : > { %v1083_v27 = vmul.f32 %v1844_v26, %v820_v25  ;;  %v619_v45 = vpop.permute.xlu0 %618 }
 0x343   : > { %1665 = vmatpush3.bf16.msra.mxu1 %v1810_v24  ;;  %v624_v49 = vmul.f32 0.0, %v619_v45 }
 0x344   : > { %1666 = vmatprep.subr.bf16.mxu1 %v1929_v0  ;;  %v1084_v30 = vpack.c.bf16 %v1083_v27, %v1083_v27 }
 0x345   : > { %v1846_v43 = vpop.eup %1845  ;;  %v821_v53 = vadd.f32 %v2223_v9, %v624_v49 }
 0x346   : > { %1699 = vmatmul.mubr.bf16.vlgmr.msra.gmra.mrb[16].mxu0 %v1084_v30  ;;  %v965_v48 = vmul.f32 %v1846_v43, %v819_v44 }
 0x347   : > { %1667 = vmatpush3.bf16.msra.mxu1 %v1811_v28  ;;  %1703 = vmatpush3.bf16.msra.mxu0 %v1812_v29 }
 0x348   : > { %1668 = vmatprep.subr.bf16.mxu1 %v1929_v0  ;;  %1704 = vmatprep.subr.bf16.mxu0 %v1929_v0  ;;  %v966_v51 = vpack.c.bf16 %v965_v48, %v965_v48 }
 0x349   : > { %1718 = vmatprep.mubr.msk.bf16.mxu0 %vm1930_vm0, %v1929_v0  ;;  %v1848_v52 = vpop.eup %1847 }
 0x34a   : > { %v1201_v55 = vmul.f32 %v1848_v52, %v821_v53 }
 0x34b   : > { %1669 = vmatpush3.bf16.msra.mxu1 %v1813_v31  ;;  %1705 = vmatpush3.bf16.msra.mxu0 %v1814_v33 }
 0x34c   : > { %1670 = vmatprep.subr.bf16.mxu1 %v1929_v0  ;;  %1706 = vmatprep.subr.bf16.mxu0 %v1929_v0  ;;  %v1202_v56 = vpack.c.bf16 %v1201_v55, %v1201_v55 }
 0x34f   : > { %1671 = vmatpush3.bf16.msra.mxu1 %v1815_v35  ;;  %1707 = vmatpush3.bf16.msra.mxu0 %v1816_v37 }
 0x350   : > { %1672 = vmatprep.subr.bf16.mxu1 %v1929_v0  ;;  %1708 = vmatprep.subr.bf16.mxu0 %v1929_v0 }
 0x353   : > { %1673 = vmatpush3.bf16.msra.mxu1 %v1817_v41  ;;  %1709 = vmatpush3.bf16.msra.mxu0 %v1818_v32 }
 0x354   : > { %1674 = vmatprep.subr.bf16.mxu1 %v1929_v0  ;;  %1710 = vmatprep.subr.bf16.mxu0 %v1929_v0 }
 0x357   : > { %1675 = vmatpush3.bf16.msra.mxu1 %v1819_v42  ;;  %1711 = vmatpush3.bf16.msra.mxu0 %v1820_v40 }
 0x358   : > { %1676 = vmatprep.subr.bf16.mxu1 %v1929_v0  ;;  %1712 = vmatprep.subr.bf16.mxu0 %v1929_v0 }
 0x35b   : > { %1677 = vmatpush3.bf16.msra.mxu1 %v1821_v46  ;;  %1713 = vmatpush3.bf16.msra.mxu0 %v1822_v47 }
 0x35c   : > { %1714 = vmatprep.subr.bf16.mxu0 %v1929_v0 }
 0x35e   : > { %1679 = vmatmul.mubr.bf16.vlgmr.msra.gmra.mrb[16].mxu1 %v966_v51 }
 0x35f   : > { %1715 = vmatpush3.bf16.msra.mxu0 %v1823_v50 }
 0x360   : > { %1716 = vmatprep.subr.bf16.mxu0 %v1929_v0 }
 0x363   : > { %1717 = vmatpush3.bf16.msra.mxu0 %v1824_v54 }
 0x366   : > { %1719 = vmatmul.mubr.bf16.vlgmr.msra.gmra.mrb[16].mxu0 %v1202_v56 }
 0x431   : > { %v1066_v57 = vpop.f32.mrb[16].mxu1 }
 0x432   : > { %v1680_v58 = vpop.f32.mrb[17].mxu1  ;;  %v1722_v62 = vadd.f32 %v1462_v61, %v1066_v57 }
 0x433   : > { %v1069_v59 = vpop.f32.mrb[18].mxu1 }
 0x434   : > { %v1681_v60 = vpop.f32.mrb[19].mxu1 }
 0x439   : > { %v1302_v63 = vpop.f32.mrb[16].mxu0 }
 0x43a   : > { %v1723_v0 = vadd.f32 %v1722_v62, %v1302_v63  ;;  %v1720_v1 = vpop.f32.mrb[17].mxu0 }
 0x43b   : > { %v1305_v2 = vpop.f32.mrb[18].mxu0 }
 0x43c   : > { %1309 = vst [vmem:[%s292_s12] sm:$0xff] %v1723_v0  ;;  %v1721_v3 = vpop.f32.mrb[19].mxu0 }
 0x43d   : > { %1862 = shalt.err (!%p1859_p5)
}
 0x43e   : > { %s1863_s29 = scalar_lea.hbm %s2301_s16, 128  ;;  %s1867_s9 = scalar_lea.hbm %s2353_s5, 256 }
 0x43f   : > { %p1864_p6 = scmp.ne.s32.totalorder %s2301_s16, %s1863_s29  ;;  %p1868_p10 = scmp.lt.u32.totalorder %s2301_s16, %s2353_s5 }
 0x440   : > { %p1869_p11 = scmp.lt.u32.totalorder %s1867_s9, %s1863_s29  ;;  %p1871_p13 = scmp.lt.u32.totalorder %s1863_s29, %s2301_s16 }
 0x441   : > { %p1865_p7 = pnand %p1864_p6, %p2004_p4 }
 0x442   : > { %p1870_p12 = por %p1869_p11, %p1868_p10 }
 0x443   : > { %p1866_p9 = pneg %p1865_p7 }
 0x444   : > { %p1872_p0 = por %p1871_p13, %p1870_p12 }
 0x446   : > { %p1873_p1 = pnand %p1872_p0, %p1866_p9 }
 0x448   : > { %1876 = shalt.err (!%p1873_p1)
}
 0x449   : > { %1732 = dma.vmem_to_hbm [thread:$0]  (%p2004_p4), %s2303_s13, 128, %s2301_s16, %s1311_s21  }
 0x44a PF: > { %p1738_p2 = scmp.ge.s32.totalorder %s1927_s23, 2  ;;  %s1337_s12 = sand.u32 1, %s1907_s18  }
 0x44b   : > { %s1338_s14 = scalar_lea.sflag [#allocation6], %s1337_s12 }
 0x44c   : > { %p1735_p3 = pnand %p1738_p2, %p2011_p8 }
 0x44e   : > { %1902 = dma.done.wait (!%p1735_p3), %s1338_s14, 128  }
 0x44f   : > { %1904 = vsyncadd (!%p1735_p3), %s1338_s14, 4294967168  ;;  %s18_s23 = sadd.s32 1, %s1927_s23   ;;  %s2356_s18 = smov %s1911_s19 }
 0x450   : > { %p15_p5 = scmp.ge.s32.totalorder %s18_s23, 4   ;;  %s2357_s19 = smov %s1915_s20 }
 0x451   : > { %s2358_s20 = smov %s2017_s6  ;;  %s2359_s21 = smov %s1923_s22 }
 0x452   : > { %s2360_s22 = smov %s2362_s26  ;;  %17 = sbr.rel (!%p15_p5) target bundleno = 4 (0x4), region = 98 }
 0x459   :  { %1343 = vsyncpa [#allocation6], 1 }
 0x45a   :  { %1345 = vsyncpa [#allocation6 + $0x1], 1 }

</bundles_post_ra>
